<compile_context>
chip_gen: v7x
topology: tpu7x:2x2x1
jax: 0.10.0
libtpu: 0.0.40
codegen_flags: <defaults>
</compile_context>

<pallas_src>
import functools

import jax
import jax.numpy as jnp
from jax.experimental import pallas as pl
from jax.experimental.pallas import tpu as pltpu


def lora_kernel(x_ref, wt_ref, bias_ref, bscaled_ref, ax_ref, o_ref, acc_ref):
    """Grid point (i, j, k): accumulate x[i,k] @ W.T[k,j]; epilogue adds bias + LoRA."""
    k = pl.program_id(2)

    @pl.when(k == 0)
    def _():
        acc_ref[...] = jnp.zeros_like(acc_ref)

    # Main GEMM: contract the last dim of x against the first dim of W.T (MXU path).
    acc_ref[...] += jnp.dot(x_ref[...], wt_ref[...],
                            preferred_element_type=jnp.float32)

    @pl.when(k == pl.num_programs(2) - 1)
    def _():
        # LoRA contribution for this (i, j) output tile:
        #   (scaling * lora_B)[i-rows, :] @ (lora_A @ x)[:, j-cols]
        # K = r is tiny; not worth tiling — it's ~r/D of the main GEMM's FLOPs.
        lora = jnp.dot(bscaled_ref[...], ax_ref[...],
                       preferred_element_type=jnp.float32)
        # TODO(synk): training-mode dropout would mask `lora` here via
        # pltpu.prng_seed + pltpu.prng_random_bits; identity at inference.
        o_ref[...] = (acc_ref[...] + bias_ref[...] + lora).astype(o_ref.dtype)


def _pick_tile(dim):
    """Largest lane/MXU-friendly tile that divides the dimension."""
    for t in (512, 256, 128):
        if dim % t == 0:
            return t
    return dim  # fall back to the full (unblocked) dimension


def lora_layer_forward(x, w, bias, lora_A, lora_B, *, lora_alpha, r,
                       compute_dtype=jnp.float32):
    """x: (D, D); w: (d_out, D); bias: (1, d_out); lora_A: (r, D); lora_B: (d_out, r).

    compute_dtype: jnp.float32 (safe everywhere, preferred on v5e) or
                   jnp.bfloat16 (feeds the v6e/v7x MXU natively; f32 accumulation).
    """
    M, D_in = x.shape
    d_out = w.shape[0]
    assert w.shape[1] == D_in, "Linear weight in_features mismatch"
    assert lora_A.shape == (r, M), "lora_A must contract over the rows of x"
    assert lora_B.shape == (d_out, r)
    assert M == D_in == d_out, "module's final add requires square x and in==out"
    scaling = lora_alpha / r

    # --- one-time (outside the hot loop) preparation -------------------------
    # Pre-transpose the static Linear weight -> plain [M,K]x[K,N] in-kernel.
    wT = jnp.transpose(w)                                    # (D_in, d_out)
    # Fold the scalar `scaling` into lora_B (static weight).
    b_scaled = lora_B * jnp.float32(scaling)                 # (d_out, r)
    # Hoist the tiny rank-r matmul: ax = lora_A @ x, only r*D floats.
    ax = jnp.dot(lora_A, x, preferred_element_type=jnp.float32,
                 precision=jax.lax.Precision.HIGHEST)        # (r, D_in)

    cd = compute_dtype
    x_c = x.astype(cd)
    wT_c = wT.astype(cd)
    b_c = b_scaled.astype(cd)
    ax_c = ax.astype(cd)
    bias_c = bias.astype(jnp.float32)                        # epilogue add stays f32

    # --- tiling ---------------------------------------------------------------
    tm = _pick_tile(M)
    tn = _pick_tile(d_out)
    tk = _pick_tile(D_in)
    assert M % tm == 0 and d_out % tn == 0 and D_in % tk == 0
    grid = (M // tm, d_out // tn, D_in // tk)

    return pl.pallas_call(
        lora_kernel,
        out_shape=jax.ShapeDtypeStruct((M, d_out), jnp.float32),
        grid_spec=pltpu.PrefetchScalarGridSpec(
            num_scalar_prefetch=0,
            grid=grid,
            in_specs=[
                pl.BlockSpec((tm, tk), lambda i, j, k: (i, k)),   # x tile
                pl.BlockSpec((tk, tn), lambda i, j, k: (k, j)),   # W.T tile
                pl.BlockSpec((1, tn), lambda i, j, k: (0, j)),    # bias slice
                pl.BlockSpec((tm, r), lambda i, j, k: (i, 0)),    # scaling * lora_B
                pl.BlockSpec((r, tn), lambda i, j, k: (0, j)),    # lora_A @ x
            ],
            out_specs=pl.BlockSpec((tm, tn), lambda i, j, k: (i, j)),
            scratch_shapes=[pltpu.VMEM((tm, tn), jnp.float32)],
        ),
        compiler_params=pltpu.CompilerParams(
            # M, N parallel (v7x megacore); K is the sequential reduction axis.
            dimension_semantics=("parallel", "parallel", "arbitrary"),
            # Fits v5e (16 MiB default scoped), v6e, and v7x (64 MiB physical).
            vmem_limit_bytes=48 * 1024 * 1024,
        ),
    )(x_c, wT_c, bias_c, b_c, ax_c)


if __name__ == "__main__":
    key = jax.random.PRNGKey(0)
    D = 512            # in_features == out_features (required by the module's add)
    r = 8
    lora_alpha = 16.0  # scaling = lora_alpha / r = 2.0
    # nn.Dropout is identity at inference / p=0.

    k1, k2, k3, k4, k5 = jax.random.split(key, 5)
    x      = jax.random.normal(k1, (D, D), jnp.float32)
    w      = jax.random.normal(k2, (D, D), jnp.float32) * 0.02   # original Linear weight
    bias   = jax.random.normal(k3, (1, D), jnp.float32) * 0.02   # original Linear bias
    lora_A = jax.random.normal(k4, (r, D), jnp.float32)          # torch.randn((r, in_features))
    lora_B = jax.random.normal(k5, (D, r), jnp.float32)          # torch.randn((out_features, r))

    # High-precision pure-JAX reference.
    scaling = lora_alpha / r
    hp = jax.lax.Precision.HIGHEST
    ax_ref = jnp.dot(lora_A, x, precision=hp)
    ref = (jnp.dot(x, w.T, precision=hp) + bias
           + scaling * jnp.dot(lora_B, ax_ref, precision=hp))

    def rel_err(a, b):
        return float(jnp.linalg.norm(a - b) / jnp.linalg.norm(b))

    # f32 path (safe everywhere, preferred on v5e).
    out_f32 = lora_layer_forward(x, w, bias, lora_A, lora_B,
                                 lora_alpha=lora_alpha, r=r,
                                 compute_dtype=jnp.float32)
    jax.block_until_ready(out_f32)
    assert out_f32.shape == (D, D)
    e32 = rel_err(out_f32, ref)
    assert e32 < 1e-2, f"f32 path mismatch vs reference (rel err {e32})"

    # bf16 MXU-feed path (v6e/v7x fast path), f32 accumulation.
    out_bf16 = lora_layer_forward(x, w, bias, lora_A, lora_B,
                                  lora_alpha=lora_alpha, r=r,
                                  compute_dtype=jnp.bfloat16)
    jax.block_until_ready(out_bf16)
    e16 = rel_err(out_bf16, ref)
    assert e16 < 3e-2, f"bf16 path mismatch vs reference (rel err {e16})"

    print("KERNEL_OK")
</pallas_src>

<mosaic_0001>
module attributes {stable_mosaic.version = 11 : i64} {
  func.func @lora_kernel(%arg0: i32, %arg1: i32, %arg2: i32, %arg3: memref<512x512xf32, #tpu.memory_space<vmem>>, %arg4: memref<512x512xf32, #tpu.memory_space<vmem>>, %arg5: memref<1x512xf32, #tpu.memory_space<vmem>>, %arg6: memref<512x8xf32, #tpu.memory_space<vmem>>, %arg7: memref<8x512xf32, #tpu.memory_space<vmem>>, %arg8: memref<512x512xf32, #tpu.memory_space<vmem>>, %arg9: memref<512x512xf32, #tpu.memory_space<vmem>>) attributes {dimension_semantics = [#tpu.dimension_semantics<parallel>, #tpu.dimension_semantics<parallel>, #tpu.dimension_semantics<arbitrary>], iteration_bounds = array<i64: 1, 1, 1>, scalar_prefetch = 0 : i64, scratch_operands = 1 : i64, tpu.core_type = #tpu.core_type<tc>, window_params = [{transform_indices = @transform_0, window_bounds = array<i64: 512, 512>}, {transform_indices = @transform_1, window_bounds = array<i64: 512, 512>}, {transform_indices = @transform_2, window_bounds = array<i64: 1, 512>}, {transform_indices = @transform_3, window_bounds = array<i64: 512, 8>}, {transform_indices = @transform_4, window_bounds = array<i64: 8, 512>}, {transform_indices = @transform_5, window_bounds = array<i64: 512, 512>}]} {
    %c0_i32 = arith.constant 0 : i32
    %0 = arith.cmpi eq, %arg2, %c0_i32 : i32
    %1 = arith.extui %0 : i1 to i32
    %c0_i32_0 = arith.constant 0 : i32
    %2 = arith.cmpi ne, %1, %c0_i32_0 : i32
    scf.if %2 {
      %cst_10 = arith.constant 0.000000e+00 : f32
      %12 = vector.broadcast %cst_10 : f32 to vector<512x512xf32>
      %c0_11 = arith.constant 0 : index
      %c0_12 = arith.constant 0 : index
      %13 = vector.load %arg9[%c0_11, %c0_12] : memref<512x512xf32, #tpu.memory_space<vmem>>, vector<512x512xf32>
      tpu.vector_store %arg9[%c0_11, %c0_12], %12 {strides = array<i32>} : memref<512x512xf32, #tpu.memory_space<vmem>>, vector<512x512xf32>,
    } else {
    }
    %c0 = arith.constant 0 : index
    %c0_1 = arith.constant 0 : index
    %3 = vector.load %arg9[%c0, %c0_1] : memref<512x512xf32, #tpu.memory_space<vmem>>, vector<512x512xf32>
    %c0_2 = arith.constant 0 : index
    %c0_3 = arith.constant 0 : index
    %4 = vector.load %arg3[%c0_2, %c0_3] : memref<512x512xf32, #tpu.memory_space<vmem>>, vector<512x512xf32>
    %c0_4 = arith.constant 0 : index
    %c0_5 = arith.constant 0 : index
    %5 = vector.load %arg4[%c0_4, %c0_5] : memref<512x512xf32, #tpu.memory_space<vmem>>, vector<512x512xf32>
    %cst = arith.constant dense<0.000000e+00> : vector<512x512xf32>
    %6 = tpu.matmul %4, %5, %cst {dimension_numbers = #tpu.dot_dimension_numbers<[1], [0], [0], [1], [0, 0, 1, 1], [], []>} : vector<512x512xf32>, vector<512x512xf32>, vector<512x512xf32> -> vector<512x512xf32>
    %7 = arith.addf %3, %6 : vector<512x512xf32>
    %c0_6 = arith.constant 0 : index
    %c0_7 = arith.constant 0 : index
    %8 = vector.load %arg9[%c0_6, %c0_7] : memref<512x512xf32, #tpu.memory_space<vmem>>, vector<512x512xf32>
    tpu.vector_store %arg9[%c0_6, %c0_7], %7 {strides = array<i32>} : memref<512x512xf32, #tpu.memory_space<vmem>>, vector<512x512xf32>,
    %c0_i32_8 = arith.constant 0 : i32
    %9 = arith.cmpi eq, %arg2, %c0_i32_8 : i32
    %10 = arith.extui %9 : i1 to i32
    %c0_i32_9 = arith.constant 0 : i32
    %11 = arith.cmpi ne, %10, %c0_i32_9 : i32
    scf.if %11 {
      %c0_10 = arith.constant 0 : index
      %c0_11 = arith.constant 0 : index
      %12 = vector.load %arg6[%c0_10, %c0_11] : memref<512x8xf32, #tpu.memory_space<vmem>>, vector<512x8xf32>
      %c0_12 = arith.constant 0 : index
      %c0_13 = arith.constant 0 : index
      %13 = vector.load %arg7[%c0_12, %c0_13] : memref<8x512xf32, #tpu.memory_space<vmem>>, vector<8x512xf32>
      %cst_14 = arith.constant dense<0.000000e+00> : vector<512x512xf32>
      %14 = tpu.matmul %12, %13, %cst_14 {dimension_numbers = #tpu.dot_dimension_numbers<[1], [0], [0], [1], [0, 0, 1, 1], [], []>} : vector<512x8xf32>, vector<8x512xf32>, vector<512x512xf32> -> vector<512x512xf32>
      %c0_15 = arith.constant 0 : index
      %c0_16 = arith.constant 0 : index
      %15 = vector.load %arg9[%c0_15, %c0_16] : memref<512x512xf32, #tpu.memory_space<vmem>>, vector<512x512xf32>
      %c0_17 = arith.constant 0 : index
      %c0_18 = arith.constant 0 : index
      %16 = vector.load %arg5[%c0_17, %c0_18] : memref<1x512xf32, #tpu.memory_space<vmem>>, vector<1x512xf32>
      %17 = vector.broadcast %16 : vector<1x512xf32> to vector<512x512xf32>
      %18 = arith.addf %15, %17 : vector<512x512xf32>
      %19 = arith.addf %18, %14 : vector<512x512xf32>
      %c0_19 = arith.constant 0 : index
      %c0_20 = arith.constant 0 : index
      %20 = vector.load %arg8[%c0_19, %c0_20] : memref<512x512xf32, #tpu.memory_space<vmem>>, vector<512x512xf32>
      tpu.vector_store %arg8[%c0_19, %c0_20], %19 {strides = array<i32>} : memref<512x512xf32, #tpu.memory_space<vmem>>, vector<512x512xf32>,
    } else {
    }
    return
  }
  func.func @transform_0(%arg0: i32, %arg1: i32, %arg2: i32) -> (i32, i32) {
    %c0_i32 = arith.constant 0 : i32
    return %arg0, %arg2 : i32, i32
  }
  func.func @transform_1(%arg0: i32, %arg1: i32, %arg2: i32) -> (i32, i32) {
    %c0_i32 = arith.constant 0 : i32
    return %arg2, %arg1 : i32, i32
  }
  func.func @transform_2(%arg0: i32, %arg1: i32, %arg2: i32) -> (i32, i32) {
    %c0_i32 = arith.constant 0 : i32
    %c0_i32_0 = arith.constant 0 : i32
    return %c0_i32, %arg1 : i32, i32
  }
  func.func @transform_3(%arg0: i32, %arg1: i32, %arg2: i32) -> (i32, i32) {
    %c0_i32 = arith.constant 0 : i32
    %c0_i32_0 = arith.constant 0 : i32
    return %arg0, %c0_i32 : i32, i32
  }
  func.func @transform_4(%arg0: i32, %arg1: i32, %arg2: i32) -> (i32, i32) {
    %c0_i32 = arith.constant 0 : i32
    %c0_i32_0 = arith.constant 0 : i32
    return %c0_i32, %arg1 : i32, i32
  }
  func.func @transform_5(%arg0: i32, %arg1: i32, %arg2: i32) -> (i32, i32) {
    %c0_i32 = arith.constant 0 : i32
    return %arg0, %arg1 : i32, i32
  }
}

</mosaic_0001>

<bundles_post_ra>
// kernel: tpu_custom_call.1
= control target key start
LH: loop header
LB: loop body
LE: loop exit
PB: predicated region body
PF: predicated region fallthrough
CT: control target
= control target key end

     0   :  { %10 = vsyncpa [#allocation4], 0  ;;  %s7649_s0 = inlined_call_operand.hbm [shape: f32[512,512], index: 0, kind: input, shape index: {}]   ;;  %s7650_s1 = inlined_call_operand.hbm [shape: f32[512,512], index: 1, kind: input, shape index: {}]   ;;  %s7651_s2 = inlined_call_operand.vmem [shape: f32[1,512], index: 2, kind: input, shape index: {}]   ;;  %s7652_s3 = inlined_call_operand.vmem [shape: f32[512,8], index: 3, kind: input, shape index: {}]   ;;  %s7653_s4 = inlined_call_operand.vmem [shape: f32[8,512], index: 4, kind: input, shape index: {}]   ;;  %s7654_s5 = inlined_call_operand.hbm [shape: f32[512,512], index: 5, kind: output, shape index: {}]  }
   0x1   :  { %11 = vsyncpa [#allocation7], 0 }
   0x2   :  { %12 = vsyncpa [#allocation5], 0  ;;  %s6841_s18 = smov [#allocation3]   ;;  %s6769_s22 = scalar_lea.hbm %s7649_s0, 32768 }
   0x3   :  { %s18_s19 = sshll.u32 %s6841_s18, 4  ;;  %p6770_p0 = scmp.ne.s32.totalorder %s7649_s0, %s6769_s22  ;;  %s19_s19 = int_to_ptr.vmem [resolvable:$true] %s18_s19 }
   0x4   :  { %p6773_p1 = scmp.lt.u32.totalorder %s6769_s22, %s7649_s0 }
   0x6   :  { %p6775_p2 = pnand %p6773_p1, %p6770_p0 }
   0x8   :  { %6778 = shalt.err (!%p6775_p2)
}
   0x9   :  { %s6779_s27 = scalar_lea.vmem %s19_s19, 32768  ;;  %p6784_p4 = scmp.lt.s32.totalorder %s19_s19, %s19_s19 }
   0xa   :  { %p6780_p3 = scmp.ne.s32.totalorder %s19_s19, %s6779_s27  ;;  %p6785_p5 = scmp.lt.s32.totalorder %s6779_s27, %s6779_s27 }
   0xc   :  { %p6786_p6 = por %p6785_p5, %p6784_p4 }
   0xe   :  { %p6787_p7 = pnand %p6786_p6, %p6780_p3 }
  0x10   :  { %6790 = shalt.err (!%p6787_p7)
}
  0x11   :  { %s6842_s28 = smov 512   ;;  %s6843_s29 = smov 32  }
  0x12   :  { %24 = dma.hbm_to_vmem [thread:$0]  %s7649_s0, 32768, %s19_s19, [#allocation4], %s6842_s28, %s6842_s28, %s6843_s29  }
  0x13   :  { %s6844_s7 = smov [#allocation6]   ;;  %s6791_s11 = scalar_lea.hbm %s7650_s1, 32768 }
  0x14   :  { %s30_s8 = sshll.u32 %s6844_s7, 4  ;;  %p6792_p8 = scmp.ne.s32.totalorder %s7650_s1, %s6791_s11  ;;  %s31_s8 = int_to_ptr.vmem [resolvable:$true] %s30_s8 }
  0x15   :  { %p6795_p9 = scmp.lt.u32.totalorder %s6791_s11, %s7650_s1 }
  0x17   :  { %p6797_p10 = pnand %p6795_p9, %p6792_p8 }
  0x19   :  { %6800 = shalt.err (!%p6797_p10)
}
  0x1a   :  { %s6801_s16 = scalar_lea.vmem %s31_s8, 32768  ;;  %p6806_p12 = scmp.lt.s32.totalorder %s31_s8, %s31_s8 }
  0x1b   :  { %p6802_p11 = scmp.ne.s32.totalorder %s31_s8, %s6801_s16  ;;  %p6807_p13 = scmp.lt.s32.totalorder %s6801_s16, %s6801_s16 }
  0x1d   :  { %p6808_p0 = por %p6807_p13, %p6806_p12 }
  0x1f   :  { %p6809_p1 = pnand %p6808_p0, %p6802_p11 }
  0x21   :  { %6812 = shalt.err (!%p6809_p1)
}
  0x22   :  { %36 = dma.hbm_to_vmem [thread:$0]  %s7650_s1, 32768, %s31_s8, [#allocation7], %s6842_s28, %s6842_s28, %s6843_s29  }
  0x23   :  { %6835 = dma.done.wait [#allocation4], 32768  }
  0x24   :  { %6836 = vsyncadd [#allocation4], 4294934528 }
  0x25   :  { %6837 = dma.done.wait [#allocation7], 32768  }
  0x26   :  { %6838 = vsyncadd [#allocation7], 4294934528  ;;  %v822_v0 = vld [vmem:[#allocation6 + $0x8] sm:$0xff]  ;;  %v824_v2 = vld [vmem:[#allocation6 + $0x18] sm:$0xff]  ;;  %vm3456_vm0 = vcmask 64512  }
  0x27   :  { %v826_v1 = vld [vmem:[#allocation6 + $0x28] sm:$0xff]  ;;  %v828_v4 = vld [vmem:[#allocation6 + $0x38] sm:$0xff]  ;;  %v821_v5 = vld [vmem:[#allocation6] sm:$0xff] }
  0x28   :  { %v5739_v3 = vpack.c.bf16 %v826_v1, %v822_v0  ;;  %v825_v6 = vld [vmem:[#allocation6 + $0x20] sm:$0xff]  ;;  %v5867_v7 = vpack.c.bf16 %v828_v4, %v824_v2  ;;  %v823_v9 = vld [vmem:[#allocation6 + $0x10] sm:$0xff]  ;;  %v830_v11 = vld [vmem:[#allocation6 + $0x48] sm:$0xff] }
  0x29   :  { %v5741_v8 = vpack.c.bf16 %v825_v6, %v821_v5  ;;  %v827_v10 = vld [vmem:[#allocation6 + $0x30] sm:$0xff]  ;;  %v834_v13 = vld [vmem:[#allocation6 + $0x68] sm:$0xff]  ;;  %v832_v14 = vld [vmem:[#allocation6 + $0x58] sm:$0xff] }
  0x2a   :  { %5740 = vmatprep.subr.bf16.mxu0 %v5739_v3  ;;  %v5869_v12 = vpack.c.bf16 %v827_v10, %v823_v9  ;;  %v836_v15 = vld [vmem:[#allocation6 + $0x78] sm:$0xff]  ;;  %5868 = vmatprep.subr.bf16.mxu1 %v5867_v7  ;;  %v5743_v16 = vpack.c.bf16 %v834_v13, %v830_v11  ;;  %v829_v18 = vld [vmem:[#allocation6 + $0x40] sm:$0xff]  ;;  %v831_v20 = vld [vmem:[#allocation6 + $0x50] sm:$0xff] }
  0x2b   :  { %5742 = vmatpush1.bf16.msra.mxu0 %v5741_v8  ;;  %v5871_v17 = vpack.c.bf16 %v836_v15, %v832_v14  ;;  %v833_v19 = vld [vmem:[#allocation6 + $0x60] sm:$0xff]  ;;  %v835_v22 = vld [vmem:[#allocation6 + $0x70] sm:$0xff]  ;;  %v838_v23 = vld [vmem:[#allocation6 + $0x88] sm:$0xff] }
  0x2c   :  { %5870 = vmatpush1.bf16.msra.mxu1 %v5869_v12  ;;  %v5745_v21 = vpack.c.bf16 %v833_v19, %v829_v18  ;;  %v842_v24 = vld [vmem:[#allocation6 + $0xa8] sm:$0xff]  ;;  %5744 = vmatprep.subr.bf16.mxu0 %v5743_v16  ;;  %v5873_v25 = vpack.c.bf16 %v835_v22, %v831_v20  ;;  %v840_v27 = vld [vmem:[#allocation6 + $0x98] sm:$0xff]  ;;  %v837_v29 = vld [vmem:[#allocation6 + $0x80] sm:$0xff] }
  0x2d   :  { %5872 = vmatprep.subr.bf16.mxu1 %v5871_v17  ;;  %v5747_v26 = vpack.c.bf16 %v842_v24, %v838_v23  ;;  %v844_v28 = vld [vmem:[#allocation6 + $0xb8] sm:$0xff]  ;;  %v841_v31 = vld [vmem:[#allocation6 + $0xa0] sm:$0xff]  ;;  %v839_v32 = vld [vmem:[#allocation6 + $0x90] sm:$0xff] }
  0x2e   :  { %v5875_v30 = vpack.c.bf16 %v844_v28, %v840_v27  ;;  %v843_v33 = vld [vmem:[#allocation6 + $0xb0] sm:$0xff]  ;;  %v5749_v34 = vpack.c.bf16 %v841_v31, %v837_v29  ;;  %v846_v35 = vld [vmem:[#allocation6 + $0xc8] sm:$0xff]  ;;  %v848_v37 = vld [vmem:[#allocation6 + $0xd8] sm:$0xff] }
  0x2f   :  { %5746 = vmatpush1.bf16.msra.mxu0 %v5745_v21  ;;  %v850_v36 = vld [vmem:[#allocation6 + $0xe8] sm:$0xff]  ;;  %v5877_v38 = vpack.c.bf16 %v843_v33, %v839_v32  ;;  %v852_v40 = vld [vmem:[#allocation6 + $0xf8] sm:$0xff]  ;;  %v845_v41 = vld [vmem:[#allocation6 + $0xc0] sm:$0xff] }
  0x30   :  { %5874 = vmatpush1.bf16.msra.mxu1 %v5873_v25  ;;  %5748 = vmatprep.subr.bf16.mxu0 %v5747_v26  ;;  %v5751_v39 = vpack.c.bf16 %v850_v36, %v846_v35  ;;  %v849_v42 = vld [vmem:[#allocation6 + $0xe0] sm:$0xff]  ;;  %v5879_v43 = vpack.c.bf16 %v852_v40, %v848_v37  ;;  %v847_v44 = vld [vmem:[#allocation6 + $0xd0] sm:$0xff]  ;;  %v854_v46 = vld [vmem:[#allocation6 + $0x108] sm:$0xff] }
  0x31   :  { %5876 = vmatprep.subr.bf16.mxu1 %v5875_v30  ;;  %v851_v45 = vld [vmem:[#allocation6 + $0xf0] sm:$0xff]  ;;  %v858_v47 = vld [vmem:[#allocation6 + $0x128] sm:$0xff]  ;;  %v856_v48 = vld [vmem:[#allocation6 + $0x118] sm:$0xff]  ;;  %v5753_v50 = vpack.c.bf16 %v849_v42, %v845_v41 }
  0x32   :  { %v860_v49 = vld [vmem:[#allocation6 + $0x138] sm:$0xff]  ;;  %v5881_v51 = vpack.c.bf16 %v851_v45, %v847_v44  ;;  %v5755_v52 = vpack.c.bf16 %v858_v47, %v854_v46  ;;  %v853_v53 = vld [vmem:[#allocation6 + $0x100] sm:$0xff]  ;;  %v855_v55 = vld [vmem:[#allocation6 + $0x110] sm:$0xff] }
  0x33   :  { %5750 = vmatpush1.bf16.msra.mxu0 %v5749_v34  ;;  %v857_v54 = vld [vmem:[#allocation6 + $0x120] sm:$0xff]  ;;  %v5883_v56 = vpack.c.bf16 %v860_v49, %v856_v48  ;;  %v859_v57 = vld [vmem:[#allocation6 + $0x130] sm:$0xff]  ;;  %v862_v58 = vld [vmem:[#allocation6 + $0x148] sm:$0xff] }
  0x34   :  { %5878 = vmatpush1.bf16.msra.mxu1 %v5877_v38  ;;  %5752 = vmatprep.subr.bf16.mxu0 %v5751_v39  ;;  %v866_v59 = vld [vmem:[#allocation6 + $0x168] sm:$0xff]  ;;  %v864_v60 = vld [vmem:[#allocation6 + $0x158] sm:$0xff]  ;;  %v5757_v62 = vpack.c.bf16 %v857_v54, %v853_v53  ;;  %v5885_v63 = vpack.c.bf16 %v859_v57, %v855_v55  ;;  %v861_v1 = vld [vmem:[#allocation6 + $0x140] sm:$0xff] }
  0x35   :  { %5880 = vmatprep.subr.bf16.mxu1 %v5879_v43  ;;  %v868_v61 = vld [vmem:[#allocation6 + $0x178] sm:$0xff]  ;;  %v5759_v0 = vpack.c.bf16 %v866_v59, %v862_v58  ;;  %v865_v2 = vld [vmem:[#allocation6 + $0x160] sm:$0xff]  ;;  %v863_v3 = vld [vmem:[#allocation6 + $0x150] sm:$0xff] }
  0x36   :  { %v5887_v4 = vpack.c.bf16 %v868_v61, %v864_v60  ;;  %v867_v5 = vld [vmem:[#allocation6 + $0x170] sm:$0xff]  ;;  %v870_v6 = vld [vmem:[#allocation6 + $0x188] sm:$0xff]  ;;  %v872_v8 = vld [vmem:[#allocation6 + $0x198] sm:$0xff]  ;;  %v5761_v10 = vpack.c.bf16 %v865_v2, %v861_v1 }
  0x37   :  { %5754 = vmatpush1.bf16.msra.mxu0 %v5753_v50  ;;  %v874_v7 = vld [vmem:[#allocation6 + $0x1a8] sm:$0xff]  ;;  %v876_v9 = vld [vmem:[#allocation6 + $0x1b8] sm:$0xff]  ;;  %v5889_v11 = vpack.c.bf16 %v867_v5, %v863_v3  ;;  %v869_v13 = vld [vmem:[#allocation6 + $0x180] sm:$0xff] }
  0x38   :  { %5882 = vmatpush1.bf16.msra.mxu1 %v5881_v51  ;;  %5756 = vmatprep.subr.bf16.mxu0 %v5755_v52  ;;  %v5763_v12 = vpack.c.bf16 %v874_v7, %v870_v6  ;;  %v873_v14 = vld [vmem:[#allocation6 + $0x1a0] sm:$0xff]  ;;  %v871_v15 = vld [vmem:[#allocation6 + $0x190] sm:$0xff]  ;;  %v5891_v16 = vpack.c.bf16 %v876_v9, %v872_v8  ;;  %v878_v18 = vld [vmem:[#allocation6 + $0x1c8] sm:$0xff] }
  0x39   :  { %5884 = vmatprep.subr.bf16.mxu1 %v5883_v56  ;;  %v875_v17 = vld [vmem:[#allocation6 + $0x1b0] sm:$0xff]  ;;  %v882_v19 = vld [vmem:[#allocation6 + $0x1e8] sm:$0xff]  ;;  %v880_v20 = vld [vmem:[#allocation6 + $0x1d8] sm:$0xff]  ;;  %v5765_v22 = vpack.c.bf16 %v873_v14, %v869_v13 }
  0x3a   :  { %v884_v21 = vld [vmem:[#allocation6 + $0x1f8] sm:$0xff]  ;;  %v5893_v23 = vpack.c.bf16 %v875_v17, %v871_v15  ;;  %v5767_v24 = vpack.c.bf16 %v882_v19, %v878_v18  ;;  %v877_v25 = vld [vmem:[#allocation6 + $0x1c0] sm:$0xff]  ;;  %v879_v27 = vld [vmem:[#allocation6 + $0x1d0] sm:$0xff] }
  0x3b   :  { %5758 = vmatpush1.bf16.msra.mxu0 %v5757_v62  ;;  %v881_v26 = vld [vmem:[#allocation6 + $0x1e0] sm:$0xff]  ;;  %v5895_v28 = vpack.c.bf16 %v884_v21, %v880_v20  ;;  %v883_v29 = vld [vmem:[#allocation6 + $0x1f0] sm:$0xff]  ;;  %v886_v30 = vld [vmem:[#allocation6 + $0x208] sm:$0xff] }
  0x3c   :  { %5886 = vmatpush1.bf16.msra.mxu1 %v5885_v63  ;;  %5760 = vmatprep.subr.bf16.mxu0 %v5759_v0  ;;  %v890_v31 = vld [vmem:[#allocation6 + $0x228] sm:$0xff]  ;;  %v888_v32 = vld [vmem:[#allocation6 + $0x218] sm:$0xff]  ;;  %v5769_v34 = vpack.c.bf16 %v881_v26, %v877_v25  ;;  %v5897_v35 = vpack.c.bf16 %v883_v29, %v879_v27  ;;  %v885_v37 = vld [vmem:[#allocation6 + $0x200] sm:$0xff] }
  0x3d   :  { %5888 = vmatprep.subr.bf16.mxu1 %v5887_v4  ;;  %v892_v33 = vld [vmem:[#allocation6 + $0x238] sm:$0xff]  ;;  %v5771_v36 = vpack.c.bf16 %v890_v31, %v886_v30  ;;  %v889_v38 = vld [vmem:[#allocation6 + $0x220] sm:$0xff]  ;;  %v887_v39 = vld [vmem:[#allocation6 + $0x210] sm:$0xff] }
  0x3e   :  { %v5899_v40 = vpack.c.bf16 %v892_v33, %v888_v32  ;;  %v891_v41 = vld [vmem:[#allocation6 + $0x230] sm:$0xff]  ;;  %v894_v42 = vld [vmem:[#allocation6 + $0x248] sm:$0xff]  ;;  %v896_v44 = vld [vmem:[#allocation6 + $0x258] sm:$0xff]  ;;  %v5773_v46 = vpack.c.bf16 %v889_v38, %v885_v37 }
  0x3f   :  { %5762 = vmatpush1.bf16.msra.mxu0 %v5761_v10  ;;  %v898_v43 = vld [vmem:[#allocation6 + $0x268] sm:$0xff]  ;;  %v900_v45 = vld [vmem:[#allocation6 + $0x278] sm:$0xff]  ;;  %v5901_v47 = vpack.c.bf16 %v891_v41, %v887_v39  ;;  %v893_v49 = vld [vmem:[#allocation6 + $0x240] sm:$0xff] }
  0x40   :  { %5890 = vmatpush1.bf16.msra.mxu1 %v5889_v11  ;;  %5764 = vmatprep.subr.bf16.mxu0 %v5763_v12  ;;  %v5775_v48 = vpack.c.bf16 %v898_v43, %v894_v42  ;;  %v897_v50 = vld [vmem:[#allocation6 + $0x260] sm:$0xff]  ;;  %v895_v51 = vld [vmem:[#allocation6 + $0x250] sm:$0xff]  ;;  %v5903_v52 = vpack.c.bf16 %v900_v45, %v896_v44  ;;  %v902_v54 = vld [vmem:[#allocation6 + $0x288] sm:$0xff] }
  0x41   :  { %5892 = vmatprep.subr.bf16.mxu1 %v5891_v16  ;;  %v899_v53 = vld [vmem:[#allocation6 + $0x270] sm:$0xff]  ;;  %v906_v55 = vld [vmem:[#allocation6 + $0x2a8] sm:$0xff]  ;;  %v904_v56 = vld [vmem:[#allocation6 + $0x298] sm:$0xff]  ;;  %v5777_v58 = vpack.c.bf16 %v897_v50, %v893_v49 }
  0x42   :  { %v908_v57 = vld [vmem:[#allocation6 + $0x2b8] sm:$0xff]  ;;  %v5905_v59 = vpack.c.bf16 %v899_v53, %v895_v51  ;;  %v5779_v60 = vpack.c.bf16 %v906_v55, %v902_v54  ;;  %v901_v61 = vld [vmem:[#allocation6 + $0x280] sm:$0xff]  ;;  %v903_v63 = vld [vmem:[#allocation6 + $0x290] sm:$0xff] }
  0x43   :  { %5766 = vmatpush1.bf16.msra.mxu0 %v5765_v22  ;;  %v905_v62 = vld [vmem:[#allocation6 + $0x2a0] sm:$0xff]  ;;  %v5907_v0 = vpack.c.bf16 %v908_v57, %v904_v56  ;;  %v907_v1 = vld [vmem:[#allocation6 + $0x2b0] sm:$0xff]  ;;  %v910_v2 = vld [vmem:[#allocation6 + $0x2c8] sm:$0xff] }
  0x44   :  { %5894 = vmatpush1.bf16.msra.mxu1 %v5893_v23  ;;  %5768 = vmatprep.subr.bf16.mxu0 %v5767_v24  ;;  %v914_v3 = vld [vmem:[#allocation6 + $0x2e8] sm:$0xff]  ;;  %v912_v4 = vld [vmem:[#allocation6 + $0x2d8] sm:$0xff]  ;;  %v5781_v6 = vpack.c.bf16 %v905_v62, %v901_v61  ;;  %v909_v7 = vld [vmem:[#allocation6 + $0x2c0] sm:$0xff]  ;;  %v5909_v8 = vpack.c.bf16 %v907_v1, %v903_v63 }
  0x45   :  { %5896 = vmatprep.subr.bf16.mxu1 %v5895_v28  ;;  %v916_v5 = vld [vmem:[#allocation6 + $0x2f8] sm:$0xff]  ;;  %v5783_v9 = vpack.c.bf16 %v914_v3, %v910_v2  ;;  %v913_v10 = vld [vmem:[#allocation6 + $0x2e0] sm:$0xff]  ;;  %v911_v11 = vld [vmem:[#allocation6 + $0x2d0] sm:$0xff] }
  0x46   :  { %v915_v12 = vld [vmem:[#allocation6 + $0x2f0] sm:$0xff]  ;;  %v5911_v13 = vpack.c.bf16 %v916_v5, %v912_v4  ;;  %v918_v14 = vld [vmem:[#allocation6 + $0x308] sm:$0xff]  ;;  %v920_v17 = vld [vmem:[#allocation6 + $0x318] sm:$0xff]  ;;  %v5785_v19 = vpack.c.bf16 %v913_v10, %v909_v7 }
  0x47   :  { %5770 = vmatpush1.bf16.msra.mxu0 %v5769_v34  ;;  %v922_v15 = vld [vmem:[#allocation6 + $0x328] sm:$0xff]  ;;  %v924_v18 = vld [vmem:[#allocation6 + $0x338] sm:$0xff]  ;;  %v5913_v20 = vpack.c.bf16 %v915_v12, %v911_v11  ;;  %v917_v22 = vld [vmem:[#allocation6 + $0x300] sm:$0xff] }
  0x48   :  { %5898 = vmatpush1.bf16.msra.mxu1 %v5897_v35  ;;  %5772 = vmatprep.subr.bf16.mxu0 %v5771_v36  ;;  %v566_v16 = vld [vmem:[#allocation3 + $0x8] sm:$0xff]  ;;  %v5787_v21 = vpack.c.bf16 %v922_v15, %v918_v14  ;;  %v921_v23 = vld [vmem:[#allocation6 + $0x320] sm:$0xff]  ;;  %v919_v24 = vld [vmem:[#allocation6 + $0x310] sm:$0xff]  ;;  %v5915_v25 = vpack.c.bf16 %v924_v18, %v920_v17 }
  0x49   :  { %5900 = vmatprep.subr.bf16.mxu1 %v5899_v40  ;;  %1141 = vmatprep.mubr.f32.mxu0 %v566_v16  ;;  %v923_v26 = vld [vmem:[#allocation6 + $0x330] sm:$0xff]  ;;  %v926_v27 = vld [vmem:[#allocation6 + $0x348] sm:$0xff]  ;;  %v928_v29 = vld [vmem:[#allocation6 + $0x358] sm:$0xff]  ;;  %v5789_v31 = vpack.c.bf16 %v921_v23, %v917_v22 }
  0x4a   :  { %2039 = vmatprep.mubr.f32.mxu1 %v566_v16  ;;  %v930_v28 = vld [vmem:[#allocation6 + $0x368] sm:$0xff]  ;;  %v932_v30 = vld [vmem:[#allocation6 + $0x378] sm:$0xff]  ;;  %v5917_v32 = vpack.c.bf16 %v923_v26, %v919_v24  ;;  %v925_v34 = vld [vmem:[#allocation6 + $0x340] sm:$0xff] }
  0x4b   :  { %5774 = vmatpush1.bf16.msra.mxu0 %v5773_v46  ;;  %v5791_v33 = vpack.c.bf16 %v930_v28, %v926_v27  ;;  %v929_v35 = vld [vmem:[#allocation6 + $0x360] sm:$0xff]  ;;  %v927_v36 = vld [vmem:[#allocation6 + $0x350] sm:$0xff]  ;;  %v5919_v37 = vpack.c.bf16 %v932_v30, %v928_v29  ;;  %v934_v39 = vld [vmem:[#allocation6 + $0x388] sm:$0xff] }
  0x4c   :  { %5902 = vmatpush1.bf16.msra.mxu1 %v5901_v47  ;;  %5776 = vmatprep.subr.bf16.mxu0 %v5775_v48  ;;  %v931_v38 = vld [vmem:[#allocation6 + $0x370] sm:$0xff]  ;;  %v938_v40 = vld [vmem:[#allocation6 + $0x3a8] sm:$0xff]  ;;  %v936_v41 = vld [vmem:[#allocation6 + $0x398] sm:$0xff]  ;;  %v5793_v43 = vpack.c.bf16 %v929_v35, %v925_v34 }
  0x4d   :  { %5904 = vmatprep.subr.bf16.mxu1 %v5903_v52  ;;  %v940_v42 = vld [vmem:[#allocation6 + $0x3b8] sm:$0xff]  ;;  %v5921_v44 = vpack.c.bf16 %v931_v38, %v927_v36  ;;  %v5795_v45 = vpack.c.bf16 %v938_v40, %v934_v39  ;;  %v933_v46 = vld [vmem:[#allocation6 + $0x380] sm:$0xff]  ;;  %v935_v48 = vld [vmem:[#allocation6 + $0x390] sm:$0xff] }
  0x4e   :  { %v937_v47 = vld [vmem:[#allocation6 + $0x3a0] sm:$0xff]  ;;  %v5923_v49 = vpack.c.bf16 %v940_v42, %v936_v41  ;;  %v939_v50 = vld [vmem:[#allocation6 + $0x3b0] sm:$0xff]  ;;  %v942_v51 = vld [vmem:[#allocation6 + $0x3c8] sm:$0xff] }
  0x4f   :  { %5778 = vmatpush1.bf16.msra.mxu0 %v5777_v58  ;;  %v946_v52 = vld [vmem:[#allocation6 + $0x3e8] sm:$0xff]  ;;  %v944_v53 = vld [vmem:[#allocation6 + $0x3d8] sm:$0xff]  ;;  %v5797_v55 = vpack.c.bf16 %v937_v47, %v933_v46  ;;  %v5925_v56 = vpack.c.bf16 %v939_v50, %v935_v48  ;;  %v941_v58 = vld [vmem:[#allocation6 + $0x3c0] sm:$0xff] }
  0x50   :  { %5906 = vmatpush1.bf16.msra.mxu1 %v5905_v59  ;;  %5780 = vmatprep.subr.bf16.mxu0 %v5779_v60  ;;  %v948_v54 = vld [vmem:[#allocation6 + $0x3f8] sm:$0xff]  ;;  %v5799_v57 = vpack.c.bf16 %v946_v52, %v942_v51  ;;  %v945_v59 = vld [vmem:[#allocation6 + $0x3e0] sm:$0xff]  ;;  %v943_v60 = vld [vmem:[#allocation6 + $0x3d0] sm:$0xff] }
  0x51   :  { %5908 = vmatprep.subr.bf16.mxu1 %v5907_v0  ;;  %v5927_v61 = vpack.c.bf16 %v948_v54, %v944_v53  ;;  %v947_v62 = vld [vmem:[#allocation6 + $0x3f0] sm:$0xff]  ;;  %v950_v63 = vld [vmem:[#allocation6 + $0x408] sm:$0xff]  ;;  %v952_v1 = vld [vmem:[#allocation6 + $0x418] sm:$0xff]  ;;  %v5801_v3 = vpack.c.bf16 %v945_v59, %v941_v58 }
  0x52   :  { %v954_v0 = vld [vmem:[#allocation6 + $0x428] sm:$0xff]  ;;  %v956_v2 = vld [vmem:[#allocation6 + $0x438] sm:$0xff]  ;;  %v5929_v4 = vpack.c.bf16 %v947_v62, %v943_v60  ;;  %v953_v7 = vld [vmem:[#allocation6 + $0x420] sm:$0xff] }
  0x53   :  { %5782 = vmatpush1.bf16.msra.mxu0 %v5781_v6  ;;  %v5803_v5 = vpack.c.bf16 %v954_v0, %v950_v63  ;;  %v949_v6 = vld [vmem:[#allocation6 + $0x400] sm:$0xff]  ;;  %v955_v10 = vld [vmem:[#allocation6 + $0x430] sm:$0xff]  ;;  %v958_v11 = vld [vmem:[#allocation6 + $0x448] sm:$0xff] }
  0x54   :  { %5910 = vmatpush1.bf16.msra.mxu1 %v5909_v8  ;;  %5784 = vmatprep.subr.bf16.mxu0 %v5783_v9  ;;  %v5931_v8 = vpack.c.bf16 %v956_v2, %v952_v1  ;;  %v951_v9 = vld [vmem:[#allocation6 + $0x410] sm:$0xff]  ;;  %v962_v12 = vld [vmem:[#allocation6 + $0x468] sm:$0xff]  ;;  %v5805_v14 = vpack.c.bf16 %v953_v7, %v949_v6  ;;  %v960_v15 = vld [vmem:[#allocation6 + $0x458] sm:$0xff] }
  0x55   :  { %5912 = vmatprep.subr.bf16.mxu1 %v5911_v13  ;;  %v565_v13 = vld [vmem:[#allocation3] sm:$0xff]  ;;  %v964_v16 = vld [vmem:[#allocation6 + $0x478] sm:$0xff]  ;;  %v5933_v17 = vpack.c.bf16 %v955_v10, %v951_v9  ;;  %v570_v18 = vld [vmem:[#allocation3 + $0x28] sm:$0xff] }
  0x56   :  { %v959_v22 = vld [vmem:[#allocation6 + $0x450] sm:$0xff]  ;;  %v5935_v23 = vpack.c.bf16 %v964_v16, %v960_v15  ;;  %v970_v26 = vld [vmem:[#allocation6 + $0x4a8] sm:$0xff]  ;;  %v569_v27 = vld [vmem:[#allocation3 + $0x20] sm:$0xff] }
  0x57   :  { %5786 = vmatpush1.bf16.msra.mxu0 %v5785_v19  ;;  %v5807_v19 = vpack.c.bf16 %v962_v12, %v958_v11  ;;  %v963_v24 = vld [vmem:[#allocation6 + $0x470] sm:$0xff]  ;;  %v968_v28 = vld [vmem:[#allocation6 + $0x498] sm:$0xff]  ;;  %v574_v30 = vld [vmem:[#allocation3 + $0x48] sm:$0xff] }
  0x58   :  { %5914 = vmatpush1.bf16.msra.mxu1 %v5913_v20  ;;  %5788 = vmatprep.subr.bf16.mxu0 %v5787_v21  ;;  %v957_v20 = vld [vmem:[#allocation6 + $0x440] sm:$0xff]  ;;  %v972_v29 = vld [vmem:[#allocation6 + $0x4b8] sm:$0xff]  ;;  %v967_v36 = vld [vmem:[#allocation6 + $0x490] sm:$0xff] }
  0x59   :  { %5916 = vmatprep.subr.bf16.mxu1 %v5915_v25  ;;  %v961_v21 = vld [vmem:[#allocation6 + $0x460] sm:$0xff]  ;;  %v966_v25 = vld [vmem:[#allocation6 + $0x488] sm:$0xff]  ;;  %v971_v38 = vld [vmem:[#allocation6 + $0x4b0] sm:$0xff] }
  0x5a   :  { %v965_v34 = vld [vmem:[#allocation6 + $0x480] sm:$0xff]  ;;  %v974_v39 = vld [vmem:[#allocation6 + $0x4c8] sm:$0xff]  ;;  %v976_v42 = vld [vmem:[#allocation6 + $0x4d8] sm:$0xff]  ;;  %v5941_v46 = vpack.c.bf16 %v971_v38, %v967_v36 }
  0x5b   :  { %5790 = vmatpush1.bf16.msra.mxu0 %v5789_v31  ;;  %v5809_v31 = vpack.c.bf16 %v961_v21, %v957_v20  ;;  %v969_v35 = vld [vmem:[#allocation6 + $0x4a0] sm:$0xff]  ;;  %v978_v40 = vld [vmem:[#allocation6 + $0x4e8] sm:$0xff]  ;;  %v975_v50 = vld [vmem:[#allocation6 + $0x4d0] sm:$0xff] }
  0x5c   :  { %5918 = vmatpush1.bf16.msra.mxu1 %v5917_v32  ;;  %5792 = vmatprep.subr.bf16.mxu0 %v5791_v33  ;;  %v5937_v32 = vpack.c.bf16 %v963_v24, %v959_v22  ;;  %v5811_v33 = vpack.c.bf16 %v970_v26, %v966_v25  ;;  %v573_v41 = vld [vmem:[#allocation3 + $0x40] sm:$0xff]  ;;  %v5815_v47 = vpack.c.bf16 %v978_v40, %v974_v39  ;;  %v979_v52 = vld [vmem:[#allocation6 + $0x4f0] sm:$0xff]  ;;  %v982_v53 = vld [vmem:[#allocation6 + $0x508] sm:$0xff] }
  0x5d   :  { %5920 = vmatprep.subr.bf16.mxu1 %v5919_v37  ;;  %v5939_v37 = vpack.c.bf16 %v972_v29, %v968_v28  ;;  %v973_v48 = vld [vmem:[#allocation6 + $0x4c0] sm:$0xff]  ;;  %v986_v54 = vld [vmem:[#allocation6 + $0x528] sm:$0xff]  ;;  %v5945_v60 = vpack.c.bf16 %v979_v52, %v975_v50  ;;  %v983_v0 = vld [vmem:[#allocation6 + $0x510] sm:$0xff] }
  0x5e   :  { %v582_v58 = vld [vmem:[#allocation3 + $0x88] sm:$0xff]  ;;  %v981_v62 = vld [vmem:[#allocation6 + $0x500] sm:$0xff]  ;;  %v987_v2 = vld [vmem:[#allocation6 + $0x530] sm:$0xff] }
  0x5f   :  { %5794 = vmatpush1.bf16.msra.mxu0 %v5793_v43  ;;  %v980_v43 = vld [vmem:[#allocation6 + $0x4f8] sm:$0xff]  ;;  %v985_v63 = vld [vmem:[#allocation6 + $0x520] sm:$0xff]  ;;  %v5949_v10 = vpack.c.bf16 %v987_v2, %v983_v0  ;;  %v995_v16 = vld [vmem:[#allocation6 + $0x570] sm:$0xff] }
  0x60   :  { %5922 = vmatpush1.bf16.msra.mxu1 %v5921_v44  ;;  %5796 = vmatprep.subr.bf16.mxu0 %v5795_v45  ;;  %v578_v44 = vld [vmem:[#allocation3 + $0x68] sm:$0xff]  ;;  %v5813_v45 = vpack.c.bf16 %v969_v35, %v965_v34  ;;  %v5943_v51 = vpack.c.bf16 %v980_v43, %v976_v42  ;;  %v992_v6 = vld [vmem:[#allocation6 + $0x558] sm:$0xff]  ;;  %v5821_v9 = vpack.c.bf16 %v985_v63, %v981_v62  ;;  %v989_v12 = vld [vmem:[#allocation6 + $0x540] sm:$0xff] }
  0x61   :  { %5924 = vmatprep.subr.bf16.mxu1 %v5923_v49  ;;  %v977_v49 = vld [vmem:[#allocation6 + $0x4e0] sm:$0xff]  ;;  %v996_v7 = vld [vmem:[#allocation6 + $0x578] sm:$0xff]  ;;  %v590_v22 = vld [vmem:[#allocation3 + $0xc8] sm:$0xff] }
  0x62   :  { %v5817_v59 = vpack.c.bf16 %v977_v49, %v973_v48  ;;  %v5951_v15 = vpack.c.bf16 %v996_v7, %v992_v6  ;;  %v1000_v20 = vld [vmem:[#allocation6 + $0x598] sm:$0xff]  ;;  %v997_v26 = vld [vmem:[#allocation6 + $0x580] sm:$0xff]  ;;  %v999_v28 = vld [vmem:[#allocation6 + $0x590] sm:$0xff] }
  0x63   :  { %5798 = vmatpush1.bf16.msra.mxu0 %v5797_v55  ;;  %v577_v55 = vld [vmem:[#allocation3 + $0x60] sm:$0xff]  ;;  %v1004_v21 = vld [vmem:[#allocation6 + $0x5b8] sm:$0xff]  ;;  %v594_v36 = vld [vmem:[#allocation3 + $0xe8] sm:$0xff] }
  0x64   :  { %5926 = vmatpush1.bf16.msra.mxu1 %v5925_v56  ;;  %5800 = vmatprep.subr.bf16.mxu0 %v5799_v57  ;;  %v984_v56 = vld [vmem:[#allocation6 + $0x518] sm:$0xff]  ;;  %v5955_v29 = vpack.c.bf16 %v1004_v21, %v1000_v20  ;;  %v1005_v40 = vld [vmem:[#allocation6 + $0x5c0] sm:$0xff]  ;;  %v1007_v42 = vld [vmem:[#allocation6 + $0x5d0] sm:$0xff] }
  0x65   :  { %5928 = vmatprep.subr.bf16.mxu1 %v5927_v61  ;;  %v988_v57 = vld [vmem:[#allocation6 + $0x538] sm:$0xff]  ;;  %v5819_v61 = vpack.c.bf16 %v986_v54, %v982_v53  ;;  %v598_v50 = vld [vmem:[#allocation3 + $0x108] sm:$0xff]  ;;  %v1013_v54 = vld [vmem:[#allocation6 + $0x600] sm:$0xff] }
  0x66   :  { %v5947_v1 = vpack.c.bf16 %v988_v57, %v984_v56  ;;  %v1008_v34 = vld [vmem:[#allocation6 + $0x5d8] sm:$0xff]  ;;  %v1015_v56 = vld [vmem:[#allocation6 + $0x610] sm:$0xff]  ;;  %v602_v0 = vld [vmem:[#allocation3 + $0x128] sm:$0xff] }
  0x67   :  { %5802 = vmatpush1.bf16.msra.mxu0 %v5801_v3  ;;  %v990_v3 = vld [vmem:[#allocation6 + $0x548] sm:$0xff]  ;;  %v1012_v35 = vld [vmem:[#allocation6 + $0x5f8] sm:$0xff]  ;;  %v1023_v6 = vld [vmem:[#allocation6 + $0x650] sm:$0xff] }
  0x68   :  { %5930 = vmatpush1.bf16.msra.mxu1 %v5929_v4  ;;  %5804 = vmatprep.subr.bf16.mxu0 %v5803_v5  ;;  %v994_v4 = vld [vmem:[#allocation6 + $0x568] sm:$0xff]  ;;  %v581_v5 = vld [vmem:[#allocation3 + $0x80] sm:$0xff]  ;;  %v5959_v43 = vpack.c.bf16 %v1012_v35, %v1008_v34  ;;  %v1016_v48 = vld [vmem:[#allocation6 + $0x618] sm:$0xff] }
  0x69   :  { %5932 = vmatprep.subr.bf16.mxu1 %v5931_v8  ;;  %v586_v8 = vld [vmem:[#allocation3 + $0xa8] sm:$0xff]  ;;  %v5823_v11 = vpack.c.bf16 %v994_v4, %v990_v3  ;;  %v1020_v49 = vld [vmem:[#allocation6 + $0x638] sm:$0xff]  ;;  %v1021_v4 = vld [vmem:[#allocation6 + $0x640] sm:$0xff] }
  0x6a   :  { %1142 = vmatmul.mubr.f32.vlgmr.msra.gmra.mrb[0].mxu0 %v565_v13  ;;  %v5963_v57 = vpack.c.bf16 %v1020_v49, %v1016_v48  ;;  %v1024_v62 = vld [vmem:[#allocation6 + $0x658] sm:$0xff]  ;;  %v1031_v21 = vld [vmem:[#allocation6 + $0x690] sm:$0xff]  ;;  %v1042_v34 = vld [vmem:[#allocation6 + $0x6e8] sm:$0xff] }
  0x6b   :  { %2040 = vmatmul.mubr.f32.vlgmr.msra.gmra.mrb[0].mxu1 %v565_v13  ;;  %5806 = vmatpush1.bf16.msra.mxu0 %v5805_v14  ;;  %v993_v13 = vld [vmem:[#allocation6 + $0x560] sm:$0xff]  ;;  %v991_v14 = vld [vmem:[#allocation6 + $0x550] sm:$0xff]  ;;  %v1028_v63 = vld [vmem:[#allocation6 + $0x678] sm:$0xff] }
  0x6c   :  { %5934 = vmatpush1.bf16.msra.mxu1 %v5933_v17  ;;  %1147 = vmatprep.mubr.f32.mxu0 %v570_v18  ;;  %v998_v17 = vld [vmem:[#allocation6 + $0x588] sm:$0xff]  ;;  %v5953_v24 = vpack.c.bf16 %v995_v16, %v991_v14  ;;  %v5967_v7 = vpack.c.bf16 %v1028_v63, %v1024_v62  ;;  %v629_v49 = vld [vmem:[#allocation3 + $0x200] sm:$0xff]  ;;  %v1051_v62 = vld [vmem:[#allocation6 + $0x730] sm:$0xff] }
  0x6d   :  { %2045 = vmatprep.mubr.f32.mxu1 %v570_v18  ;;  %5808 = vmatprep.subr.bf16.mxu0 %v5807_v19  ;;  %v1002_v18 = vld [vmem:[#allocation6 + $0x5a8] sm:$0xff]  ;;  %v585_v19 = vld [vmem:[#allocation3 + $0xa0] sm:$0xff] }
  0x6e   :  { %1148 = vmatmul.mubr.f32.gmra.mrb[2].mxu0 %v569_v27  ;;  %5936 = vmatprep.subr.bf16.mxu1 %v5935_v23  ;;  %v5825_v23 = vpack.c.bf16 %v993_v13, %v989_v12  ;;  %v5827_v25 = vpack.c.bf16 %v1002_v18, %v998_v17  ;;  %v1032_v12 = vld [vmem:[#allocation6 + $0x698] sm:$0xff]  ;;  %v606_v14 = vld [vmem:[#allocation3 + $0x148] sm:$0xff]  ;;  %v1029_v18 = vld [vmem:[#allocation6 + $0x680] sm:$0xff] }
  0x6f   :  { %2046 = vmatmul.mubr.f32.gmra.mrb[2].mxu1 %v569_v27  ;;  %1153 = vmatprep.mubr.f32.mxu0 %v574_v30  ;;  %v1001_v27 = vld [vmem:[#allocation6 + $0x5a0] sm:$0xff]  ;;  %v1036_v13 = vld [vmem:[#allocation6 + $0x6b8] sm:$0xff]  ;;  %v630_v48 = vld [vmem:[#allocation3 + $0x208] sm:$0xff] }
  0x70   :  { %2051 = vmatprep.mubr.f32.mxu1 %v574_v30  ;;  %5810 = vmatpush1.bf16.msra.mxu0 %v5809_v31  ;;  %v1003_v30 = vld [vmem:[#allocation6 + $0x5b0] sm:$0xff]  ;;  %v1006_v31 = vld [vmem:[#allocation6 + $0x5c8] sm:$0xff]  ;;  %v5971_v20 = vpack.c.bf16 %v1036_v13, %v1032_v12  ;;  %v1056_v12 = vld [vmem:[#allocation6 + $0x758] sm:$0xff] }
  0x71   :  { %5938 = vmatpush1.bf16.msra.mxu1 %v5937_v32  ;;  %5812 = vmatprep.subr.bf16.mxu0 %v5811_v33  ;;  %v1010_v32 = vld [vmem:[#allocation6 + $0x5e8] sm:$0xff]  ;;  %v589_v33 = vld [vmem:[#allocation3 + $0xc0] sm:$0xff]  ;;  %v5957_v38 = vpack.c.bf16 %v1003_v30, %v999_v28  ;;  %v1060_v13 = vld [vmem:[#allocation6 + $0x778] sm:$0xff] }
  0x72   :  { %1154 = vmatmul.mubr.f32.gmra.mrb[4].mxu0 %v573_v41  ;;  %5940 = vmatprep.subr.bf16.mxu1 %v5939_v37  ;;  %v5829_v37 = vpack.c.bf16 %v1001_v27, %v997_v26  ;;  %v5831_v39 = vpack.c.bf16 %v1010_v32, %v1006_v31  ;;  %v609_v27 = vld [vmem:[#allocation3 + $0x160] sm:$0xff]  ;;  %v614_v28 = vld [vmem:[#allocation3 + $0x188] sm:$0xff] }
  0x73   :  { %2052 = vmatmul.mubr.f32.gmra.mrb[4].mxu1 %v573_v41  ;;  %1159 = vmatprep.mubr.f32.mxu0 %v578_v44  ;;  %v1009_v41 = vld [vmem:[#allocation6 + $0x5e0] sm:$0xff]  ;;  %v618_v30 = vld [vmem:[#allocation3 + $0x1a8] sm:$0xff] }
  0x74   :  { %2057 = vmatprep.mubr.f32.mxu1 %v578_v44  ;;  %5814 = vmatpush1.bf16.msra.mxu0 %v5813_v45  ;;  %v1011_v44 = vld [vmem:[#allocation6 + $0x5f0] sm:$0xff]  ;;  %v1014_v45 = vld [vmem:[#allocation6 + $0x608] sm:$0xff]  ;;  %v617_v31 = vld [vmem:[#allocation3 + $0x1a0] sm:$0xff] }
  0x75   :  { %5942 = vmatpush1.bf16.msra.mxu1 %v5941_v46  ;;  %5816 = vmatprep.subr.bf16.mxu0 %v5815_v47  ;;  %v1018_v46 = vld [vmem:[#allocation6 + $0x628] sm:$0xff]  ;;  %v593_v47 = vld [vmem:[#allocation3 + $0xe0] sm:$0xff]  ;;  %v5961_v52 = vpack.c.bf16 %v1011_v44, %v1007_v42  ;;  %v1043_v42 = vld [vmem:[#allocation6 + $0x6f0] sm:$0xff] }
  0x76   :  { %1160 = vmatmul.mubr.f32.gmra.mrb[6].mxu0 %v577_v55  ;;  %5944 = vmatprep.subr.bf16.mxu1 %v5943_v51  ;;  %v5833_v51 = vpack.c.bf16 %v1009_v41, %v1005_v40  ;;  %v5835_v53 = vpack.c.bf16 %v1018_v46, %v1014_v45  ;;  %v622_v32 = vld [vmem:[#allocation3 + $0x1c8] sm:$0xff]  ;;  %v1041_v40 = vld [vmem:[#allocation6 + $0x6e0] sm:$0xff]  ;;  %v1039_v41 = vld [vmem:[#allocation6 + $0x6d0] sm:$0xff] }
  0x77   :  { %2058 = vmatmul.mubr.f32.gmra.mrb[6].mxu1 %v577_v55  ;;  %1165 = vmatprep.mubr.f32.mxu0 %v582_v58  ;;  %v1017_v55 = vld [vmem:[#allocation6 + $0x620] sm:$0xff]  ;;  %v5977_v44 = vpack.c.bf16 %v1043_v42, %v1039_v41  ;;  %v626_v46 = vld [vmem:[#allocation3 + $0x1e8] sm:$0xff] }
  0x78   :  { %2063 = vmatprep.mubr.f32.mxu1 %v582_v58  ;;  %5818 = vmatpush1.bf16.msra.mxu0 %v5817_v59  ;;  %v1019_v58 = vld [vmem:[#allocation6 + $0x630] sm:$0xff]  ;;  %v1022_v59 = vld [vmem:[#allocation6 + $0x648] sm:$0xff]  ;;  %v621_v45 = vld [vmem:[#allocation3 + $0x1c0] sm:$0xff] }
  0x79   :  { %5946 = vmatpush1.bf16.msra.mxu1 %v5945_v60  ;;  %5820 = vmatprep.subr.bf16.mxu0 %v5819_v61  ;;  %v1026_v60 = vld [vmem:[#allocation6 + $0x668] sm:$0xff]  ;;  %v597_v61 = vld [vmem:[#allocation3 + $0x100] sm:$0xff]  ;;  %v5965_v2 = vpack.c.bf16 %v1019_v58, %v1015_v56  ;;  %v1048_v56 = vld [vmem:[#allocation6 + $0x718] sm:$0xff] }
  0x7a   :  { %1166 = vmatmul.mubr.f32.gmra.mrb[8].mxu0 %v581_v5  ;;  %5948 = vmatprep.subr.bf16.mxu1 %v5947_v1  ;;  %v5837_v1 = vpack.c.bf16 %v1017_v55, %v1013_v54  ;;  %v5839_v3 = vpack.c.bf16 %v1026_v60, %v1022_v59  ;;  %v1050_v54 = vld [vmem:[#allocation6 + $0x728] sm:$0xff]  ;;  %v1045_v58 = vld [vmem:[#allocation6 + $0x700] sm:$0xff] }
  0x7b   :  { %2064 = vmatmul.mubr.f32.gmra.mrb[8].mxu1 %v581_v5  ;;  %1171 = vmatprep.mubr.f32.mxu0 %v586_v8  ;;  %v1025_v5 = vld [vmem:[#allocation6 + $0x660] sm:$0xff]  ;;  %v674_v42 = vld [vmem:[#allocation3 + $0x368] sm:$0xff] }
  0x7c   :  { %2069 = vmatprep.mubr.f32.mxu1 %v586_v8  ;;  %5822 = vmatpush1.bf16.msra.mxu0 %v5821_v9  ;;  %v1027_v8 = vld [vmem:[#allocation6 + $0x670] sm:$0xff]  ;;  %v1030_v9 = vld [vmem:[#allocation6 + $0x688] sm:$0xff]  ;;  %v1049_v60 = vld [vmem:[#allocation6 + $0x720] sm:$0xff] }
  0x7d   :  { %5950 = vmatpush1.bf16.msra.mxu1 %v5949_v10  ;;  %5824 = vmatprep.subr.bf16.mxu0 %v5823_v11  ;;  %v1034_v10 = vld [vmem:[#allocation6 + $0x6a8] sm:$0xff]  ;;  %v601_v11 = vld [vmem:[#allocation3 + $0x120] sm:$0xff]  ;;  %v5969_v16 = vpack.c.bf16 %v1027_v8, %v1023_v6  ;;  %v5853_v63 = vpack.c.bf16 %v1049_v60, %v1045_v58  ;;  %v1075_v58 = vld [vmem:[#allocation6 + $0x7f0] sm:$0xff] }
  0x7e   :  { %1172 = vmatmul.mubr.f32.gmra.mrb[10].mxu0 %v585_v19  ;;  %5952 = vmatprep.subr.bf16.mxu1 %v5951_v15  ;;  %v5841_v15 = vpack.c.bf16 %v1025_v5, %v1021_v4  ;;  %v5843_v17 = vpack.c.bf16 %v1034_v10, %v1030_v9  ;;  %v646_v4 = vld [vmem:[#allocation3 + $0x288] sm:$0xff]  ;;  %v645_v5 = vld [vmem:[#allocation3 + $0x280] sm:$0xff] }
  0x7f   :  { %2070 = vmatmul.mubr.f32.gmra.mrb[10].mxu1 %v585_v19  ;;  %1177 = vmatprep.mubr.f32.mxu0 %v590_v22  ;;  %v1033_v19 = vld [vmem:[#allocation6 + $0x6a0] sm:$0xff]  ;;  %v650_v6 = vld [vmem:[#allocation3 + $0x2a8] sm:$0xff] }
  0x80   :  { %2075 = vmatprep.mubr.f32.mxu1 %v590_v22  ;;  %5826 = vmatpush1.bf16.msra.mxu0 %v5825_v23  ;;  %v1035_v22 = vld [vmem:[#allocation6 + $0x6b0] sm:$0xff]  ;;  %v605_v23 = vld [vmem:[#allocation3 + $0x140] sm:$0xff]  ;;  %v654_v8 = vld [vmem:[#allocation3 + $0x2c8] sm:$0xff] }
  0x81   :  { %5954 = vmatpush1.bf16.msra.mxu1 %v5953_v24  ;;  %5828 = vmatprep.subr.bf16.mxu0 %v5827_v25  ;;  %v610_v24 = vld [vmem:[#allocation3 + $0x168] sm:$0xff]  ;;  %v5845_v25 = vpack.c.bf16 %v1033_v19, %v1029_v18  ;;  %v5973_v26 = vpack.c.bf16 %v1035_v22, %v1031_v21  ;;  %v1059_v18 = vld [vmem:[#allocation6 + $0x770] sm:$0xff]  ;;  %v653_v21 = vld [vmem:[#allocation3 + $0x2c0] sm:$0xff] }
  0x82   :  { %1178 = vmatmul.mubr.f32.gmra.mrb[12].mxu0 %v589_v33  ;;  %5956 = vmatprep.subr.bf16.mxu1 %v5955_v29  ;;  %v613_v29 = vld [vmem:[#allocation3 + $0x180] sm:$0xff]  ;;  %v1054_v9 = vld [vmem:[#allocation6 + $0x748] sm:$0xff] }
  0x83   :  { %2076 = vmatmul.mubr.f32.gmra.mrb[12].mxu1 %v589_v33  ;;  %1183 = vmatprep.mubr.f32.mxu0 %v594_v36  ;;  %v1038_v33 = vld [vmem:[#allocation6 + $0x6c8] sm:$0xff]  ;;  %v669_v41 = vld [vmem:[#allocation3 + $0x340] sm:$0xff] }
  0x84   :  { %2081 = vmatprep.mubr.f32.mxu1 %v594_v36  ;;  %5830 = vmatpush1.bf16.msra.mxu0 %v5829_v37  ;;  %v5847_v35 = vpack.c.bf16 %v1042_v34, %v1038_v33  ;;  %v1040_v36 = vld [vmem:[#allocation6 + $0x6d8] sm:$0xff]  ;;  %v1058_v10 = vld [vmem:[#allocation6 + $0x768] sm:$0xff]  ;;  %v1061_v34 = vld [vmem:[#allocation6 + $0x780] sm:$0xff] }
  0x85   :  { %5958 = vmatpush1.bf16.msra.mxu1 %v5957_v38  ;;  %5832 = vmatprep.subr.bf16.mxu0 %v5831_v39  ;;  %v1044_v37 = vld [vmem:[#allocation6 + $0x6f8] sm:$0xff]  ;;  %v1037_v38 = vld [vmem:[#allocation6 + $0x6c0] sm:$0xff]  ;;  %v658_v22 = vld [vmem:[#allocation3 + $0x2e8] sm:$0xff] }
  0x86   :  { %1184 = vmatmul.mubr.f32.gmra.mrb[14].mxu0 %v593_v47  ;;  %5960 = vmatprep.subr.bf16.mxu1 %v5959_v43  ;;  %v5975_v39 = vpack.c.bf16 %v1044_v37, %v1040_v36  ;;  %v5849_v43 = vpack.c.bf16 %v1041_v40, %v1037_v38  ;;  %v1068_v33 = vld [vmem:[#allocation6 + $0x7b8] sm:$0xff]  ;;  %v1065_v36 = vld [vmem:[#allocation6 + $0x7a0] sm:$0xff]  ;;  %v1063_v37 = vld [vmem:[#allocation6 + $0x790] sm:$0xff] }
  0x87   :  { %2082 = vmatmul.mubr.f32.gmra.mrb[14].mxu1 %v593_v47  ;;  %1189 = vmatprep.mubr.f32.mxu0 %v598_v50  ;;  %v625_v47 = vld [vmem:[#allocation3 + $0x1e0] sm:$0xff]  ;;  %v1067_v38 = vld [vmem:[#allocation6 + $0x7b0] sm:$0xff] }
  0x88   :  { %2087 = vmatprep.mubr.f32.mxu1 %v598_v50  ;;  %5834 = vmatpush1.bf16.msra.mxu0 %v5833_v51  ;;  %v634_v50 = vld [vmem:[#allocation3 + $0x228] sm:$0xff]  ;;  %v633_v51 = vld [vmem:[#allocation3 + $0x220] sm:$0xff]  ;;  %v5989_v40 = vpack.c.bf16 %v1067_v38, %v1063_v37 }
  0x89   :  { %5962 = vmatpush1.bf16.msra.mxu1 %v5961_v52  ;;  %5836 = vmatprep.subr.bf16.mxu0 %v5835_v53  ;;  %v638_v52 = vld [vmem:[#allocation3 + $0x248] sm:$0xff]  ;;  %v761_v37 = vld [vmem:[#allocation3 + $0x620] sm:$0xff] }
  0x8a   :  { %1190 = vmatmul.mubr.f32.gmra.mrb[16].mxu0 %v597_v61  ;;  %5964 = vmatprep.subr.bf16.mxu1 %v5963_v57  ;;  %v1046_v53 = vld [vmem:[#allocation6 + $0x708] sm:$0xff]  ;;  %v1052_v57 = vld [vmem:[#allocation6 + $0x738] sm:$0xff] }
  0x8b   :  { %2088 = vmatmul.mubr.f32.gmra.mrb[16].mxu1 %v597_v61  ;;  %1195 = vmatprep.mubr.f32.mxu0 %v602_v0  ;;  %v5851_v55 = vpack.c.bf16 %v1050_v54, %v1046_v53  ;;  %v5979_v59 = vpack.c.bf16 %v1052_v57, %v1048_v56  ;;  %v1047_v61 = vld [vmem:[#allocation6 + $0x710] sm:$0xff]  ;;  %v1076_v53 = vld [vmem:[#allocation6 + $0x7f8] sm:$0xff]  ;;  %v1069_v54 = vld [vmem:[#allocation6 + $0x7c0] sm:$0xff] }
  0x8c   :  { %2093 = vmatprep.mubr.f32.mxu1 %v602_v0  ;;  %5838 = vmatpush1.bf16.msra.mxu0 %v5837_v1  ;;  %v5981_v0 = vpack.c.bf16 %v1051_v62, %v1047_v61  ;;  %v637_v1 = vld [vmem:[#allocation3 + $0x240] sm:$0xff]  ;;  %v1071_v57 = vld [vmem:[#allocation6 + $0x7d0] sm:$0xff]  ;;  %v690_v62 = vld [vmem:[#allocation3 + $0x3e8] sm:$0xff] }
  0x8d   :  { %5966 = vmatpush1.bf16.msra.mxu1 %v5965_v2  ;;  %5840 = vmatprep.subr.bf16.mxu0 %v5839_v3  ;;  %v642_v2 = vld [vmem:[#allocation3 + $0x268] sm:$0xff]  ;;  %v641_v3 = vld [vmem:[#allocation3 + $0x260] sm:$0xff]  ;;  %v5993_v60 = vpack.c.bf16 %v1075_v58, %v1071_v57 }
  0x8e   :  { %1196 = vmatmul.mubr.f32.gmra.mrb[18].mxu0 %v601_v11  ;;  %5968 = vmatprep.subr.bf16.mxu1 %v5967_v7  ;;  %v649_v7 = vld [vmem:[#allocation3 + $0x2a0] sm:$0xff]  ;;  %v766_v38 = vld [vmem:[#allocation3 + $0x648] sm:$0xff] }
  0x8f   :  { %2094 = vmatmul.mubr.f32.gmra.mrb[18].mxu1 %v601_v11  ;;  %1201 = vmatprep.mubr.f32.mxu0 %v606_v14  ;;  %v5855_v11 = vpack.c.bf16 %v1058_v10, %v1054_v9  ;;  %v1073_v56 = vld [vmem:[#allocation6 + $0x7e0] sm:$0xff]  ;;  %v710_v10 = vld [vmem:[#allocation3 + $0x488] sm:$0xff] }
  0x90   :  { %2099 = vmatprep.mubr.f32.mxu1 %v606_v14  ;;  %5842 = vmatpush1.bf16.msra.mxu0 %v5841_v15  ;;  %v1053_v14 = vld [vmem:[#allocation6 + $0x740] sm:$0xff]  ;;  %v5983_v15 = vpack.c.bf16 %v1060_v13, %v1056_v12  ;;  %v714_v12 = vld [vmem:[#allocation3 + $0x4a8] sm:$0xff] }
  0x91   :  { %5970 = vmatpush1.bf16.msra.mxu1 %v5969_v16  ;;  %5844 = vmatprep.subr.bf16.mxu0 %v5843_v17  ;;  %v1057_v16 = vld [vmem:[#allocation6 + $0x760] sm:$0xff]  ;;  %v1055_v17 = vld [vmem:[#allocation6 + $0x750] sm:$0xff]  ;;  %v806_v58 = vld [vmem:[#allocation3 + $0x788] sm:$0xff] }
  0x92   :  { %1202 = vmatmul.mubr.f32.gmra.mrb[20].mxu0 %v605_v23  ;;  %5972 = vmatprep.subr.bf16.mxu1 %v5971_v20  ;;  %v5857_v19 = vpack.c.bf16 %v1057_v16, %v1053_v14  ;;  %v5985_v20 = vpack.c.bf16 %v1059_v18, %v1055_v17  ;;  %v685_v61 = vld [vmem:[#allocation3 + $0x3c0] sm:$0xff]  ;;  %v718_v14 = vld [vmem:[#allocation3 + $0x4c8] sm:$0xff] }
  0x93   :  { %2100 = vmatmul.mubr.f32.gmra.mrb[20].mxu1 %v605_v23  ;;  %1207 = vmatprep.mubr.f32.mxu0 %v610_v24  ;;  %v657_v23 = vld [vmem:[#allocation3 + $0x2e0] sm:$0xff]  ;;  %v722_v16 = vld [vmem:[#allocation3 + $0x4e8] sm:$0xff] }
  0x94   :  { %2105 = vmatprep.mubr.f32.mxu1 %v610_v24  ;;  %5846 = vmatpush1.bf16.msra.mxu0 %v5845_v25  ;;  %v662_v24 = vld [vmem:[#allocation3 + $0x308] sm:$0xff]  ;;  %v661_v25 = vld [vmem:[#allocation3 + $0x300] sm:$0xff] }
  0x95   :  { %5974 = vmatpush1.bf16.msra.mxu1 %v5973_v26  ;;  %5848 = vmatprep.subr.bf16.mxu0 %v5847_v35  ;;  %v666_v26 = vld [vmem:[#allocation3 + $0x328] sm:$0xff]  ;;  %v705_v9 = vld [vmem:[#allocation3 + $0x460] sm:$0xff] }
  0x96   :  { %1208 = vmatmul.mubr.f32.gmra.mrb[22].mxu0 %v609_v27  ;;  %5976 = vmatprep.subr.bf16.mxu1 %v5975_v39  ;;  %v5861_v39 = vpack.c.bf16 %v1065_v36, %v1061_v34  ;;  %v713_v13 = vld [vmem:[#allocation3 + $0x4a0] sm:$0xff]  ;;  %v726_v18 = vld [vmem:[#allocation3 + $0x508] sm:$0xff] }
  0x97   :  { %2106 = vmatmul.mubr.f32.gmra.mrb[22].mxu1 %v609_v27  ;;  %1213 = vmatprep.mubr.f32.mxu0 %v614_v28  ;;  %v665_v27 = vld [vmem:[#allocation3 + $0x320] sm:$0xff]  ;;  %v758_v34 = vld [vmem:[#allocation3 + $0x608] sm:$0xff] }
  0x98   :  { %2111 = vmatprep.mubr.f32.mxu1 %v614_v28  ;;  %5850 = vmatpush1.bf16.msra.mxu0 %v5849_v43  ;;  %v670_v28 = vld [vmem:[#allocation3 + $0x348] sm:$0xff]  ;;  %v673_v43 = vld [vmem:[#allocation3 + $0x360] sm:$0xff] }
  0x99   :  { %5978 = vmatpush1.bf16.msra.mxu1 %v5977_v44  ;;  %5852 = vmatprep.subr.bf16.mxu0 %v5851_v55  ;;  %v678_v44 = vld [vmem:[#allocation3 + $0x388] sm:$0xff]  ;;  %v721_v17 = vld [vmem:[#allocation3 + $0x4e0] sm:$0xff] }
  0x9a   :  { %1214 = vmatmul.mubr.f32.gmra.mrb[24].mxu0 %v613_v29  ;;  %5980 = vmatprep.subr.bf16.mxu1 %v5979_v59  ;;  %v5865_v59 = vpack.c.bf16 %v1073_v56, %v1069_v54  ;;  %v762_v36 = vld [vmem:[#allocation3 + $0x628] sm:$0xff]  ;;  %v801_v57 = vld [vmem:[#allocation3 + $0x760] sm:$0xff] }
  0x9b   :  { %2112 = vmatmul.mubr.f32.gmra.mrb[24].mxu1 %v613_v29  ;;  %1219 = vmatprep.mubr.f32.mxu0 %v618_v30  ;;  %v1062_v29 = vld [vmem:[#allocation6 + $0x788] sm:$0xff] }
  0x9c   :  { %2117 = vmatprep.mubr.f32.mxu1 %v618_v30  ;;  %5854 = vmatpush1.bf16.msra.mxu0 %v5853_v63  ;;  %v1066_v30 = vld [vmem:[#allocation6 + $0x7a8] sm:$0xff]  ;;  %v689_v63 = vld [vmem:[#allocation3 + $0x3e0] sm:$0xff] }
  0x9d   :  { %5982 = vmatpush1.bf16.msra.mxu1 %v5981_v0  ;;  %5856 = vmatprep.subr.bf16.mxu0 %v5855_v11  ;;  %v694_v0 = vld [vmem:[#allocation3 + $0x408] sm:$0xff]  ;;  %v709_v11 = vld [vmem:[#allocation3 + $0x480] sm:$0xff] }
  0x9e   :  { %1220 = vmatmul.mubr.f32.gmra.mrb[26].mxu0 %v617_v31  ;;  %5984 = vmatprep.subr.bf16.mxu1 %v5983_v15  ;;  %v717_v15 = vld [vmem:[#allocation3 + $0x4c0] sm:$0xff]  ;;  %v798_v54 = vld [vmem:[#allocation3 + $0x748] sm:$0xff] }
  0x9f   :  { %2118 = vmatmul.mubr.f32.gmra.mrb[26].mxu1 %v617_v31  ;;  %1225 = vmatprep.mubr.f32.mxu0 %v622_v32  ;;  %v5859_v31 = vpack.c.bf16 %v1066_v30, %v1062_v29  ;;  %v745_v29 = vld [vmem:[#allocation3 + $0x5a0] sm:$0xff]  ;;  %v750_v30 = vld [vmem:[#allocation3 + $0x5c8] sm:$0xff] }
  0xa0   :  { %2123 = vmatprep.mubr.f32.mxu1 %v622_v32  ;;  %5858 = vmatpush1.bf16.msra.mxu0 %v5857_v19  ;;  %v1064_v32 = vld [vmem:[#allocation6 + $0x798] sm:$0xff]  ;;  %v725_v19 = vld [vmem:[#allocation3 + $0x500] sm:$0xff]  ;;  %v802_v56 = vld [vmem:[#allocation3 + $0x768] sm:$0xff] }
  0xa1   :  { %5986 = vmatpush1.bf16.msra.mxu1 %v5985_v20  ;;  %v5987_v35 = vpack.c.bf16 %v1068_v33, %v1064_v32  ;;  %5860 = vmatprep.subr.bf16.mxu0 %v5859_v31  ;;  %v730_v20 = vld [vmem:[#allocation3 + $0x528] sm:$0xff]  ;;  %v749_v31 = vld [vmem:[#allocation3 + $0x5c0] sm:$0xff] }
  0xa2   :  { %1226 = vmatmul.mubr.f32.gmra.mrb[28].mxu0 %v621_v45  ;;  %v754_v32 = vld [vmem:[#allocation3 + $0x5e8] sm:$0xff]  ;;  %v753_v33 = vld [vmem:[#allocation3 + $0x5e0] sm:$0xff] }
  0xa3   :  { %2124 = vmatmul.mubr.f32.gmra.mrb[28].mxu1 %v621_v45  ;;  %1231 = vmatprep.mubr.f32.mxu0 %v626_v46  ;;  %v677_v45 = vld [vmem:[#allocation3 + $0x380] sm:$0xff] }
  0xa4   :  { %2129 = vmatprep.mubr.f32.mxu1 %v626_v46  ;;  %5988 = vmatprep.subr.bf16.mxu1 %v5987_v35  ;;  %v682_v46 = vld [vmem:[#allocation3 + $0x3a8] sm:$0xff]  ;;  %v757_v35 = vld [vmem:[#allocation3 + $0x600] sm:$0xff] }
  0xa5   :  { %5862 = vmatpush1.bf16.msra.mxu0 %v5861_v39  ;;  %5990 = vmatpush1.bf16.msra.mxu1 %v5989_v40  ;;  %v765_v39 = vld [vmem:[#allocation3 + $0x640] sm:$0xff]  ;;  %v770_v40 = vld [vmem:[#allocation3 + $0x668] sm:$0xff] }
  0xa6   :  { %1232 = vmatmul.mubr.f32.gmra.mrb[30].mxu0 %v625_v47 }
  0xa7   :  { %2130 = vmatmul.mubr.f32.gmra.mrb[30].mxu1 %v625_v47  ;;  %1237 = vmatprep.mubr.f32.mxu0 %v630_v48  ;;  %v681_v47 = vld [vmem:[#allocation3 + $0x3a0] sm:$0xff] }
  0xa8   :  { %2135 = vmatprep.mubr.f32.mxu1 %v630_v48  ;;  %v686_v48 = vld [vmem:[#allocation3 + $0x3c8] sm:$0xff] }
  0xaa   :  { %1238 = vmatmul.mubr.f32.gmra.mrb[32].mxu0 %v629_v49 }
  0xab   :  { %2136 = vmatmul.mubr.f32.gmra.mrb[32].mxu1 %v629_v49  ;;  %1243 = vmatprep.mubr.f32.mxu0 %v634_v50  ;;  %v1070_v49 = vld [vmem:[#allocation6 + $0x7c8] sm:$0xff] }
  0xac   :  { %2141 = vmatprep.mubr.f32.mxu1 %v634_v50  ;;  %v1074_v50 = vld [vmem:[#allocation6 + $0x7e8] sm:$0xff] }
  0xae   :  { %1244 = vmatmul.mubr.f32.gmra.mrb[34].mxu0 %v633_v51 }
  0xaf   :  { %2142 = vmatmul.mubr.f32.gmra.mrb[34].mxu1 %v633_v51  ;;  %1249 = vmatprep.mubr.f32.mxu0 %v638_v52  ;;  %v5863_v51 = vpack.c.bf16 %v1074_v50, %v1070_v49  ;;  %v785_v49 = vld [vmem:[#allocation3 + $0x6e0] sm:$0xff]  ;;  %v790_v50 = vld [vmem:[#allocation3 + $0x708] sm:$0xff] }
  0xb0   :  { %2147 = vmatprep.mubr.f32.mxu1 %v638_v52  ;;  %v1072_v52 = vld [vmem:[#allocation6 + $0x7d8] sm:$0xff] }
  0xb1   :  { %v5991_v55 = vpack.c.bf16 %v1076_v53, %v1072_v52  ;;  %5864 = vmatprep.subr.bf16.mxu0 %v5863_v51  ;;  %v789_v51 = vld [vmem:[#allocation3 + $0x700] sm:$0xff]  ;;  %v794_v52 = vld [vmem:[#allocation3 + $0x728] sm:$0xff] }
  0xb2   :  { %1250 = vmatmul.mubr.f32.gmra.mrb[36].mxu0 %v637_v1  ;;  %v793_v53 = vld [vmem:[#allocation3 + $0x720] sm:$0xff] }
  0xb3   :  { %2148 = vmatmul.mubr.f32.gmra.mrb[36].mxu1 %v637_v1  ;;  %1255 = vmatprep.mubr.f32.mxu0 %v642_v2  ;;  %v693_v1 = vld [vmem:[#allocation3 + $0x400] sm:$0xff] }
  0xb4   :  { %2153 = vmatprep.mubr.f32.mxu1 %v642_v2  ;;  %5992 = vmatprep.subr.bf16.mxu1 %v5991_v55  ;;  %v698_v2 = vld [vmem:[#allocation3 + $0x428] sm:$0xff]  ;;  %v797_v55 = vld [vmem:[#allocation3 + $0x740] sm:$0xff] }
  0xb5   :  { %5866 = vmatpush1.bf16.msra.mxu0 %v5865_v59  ;;  %5994 = vmatpush1.bf16.msra.mxu1 %v5993_v60  ;;  %v805_v59 = vld [vmem:[#allocation3 + $0x780] sm:$0xff]  ;;  %v810_v60 = vld [vmem:[#allocation3 + $0x7a8] sm:$0xff] }
  0xb6   :  { %1256 = vmatmul.mubr.f32.gmra.mrb[38].mxu0 %v641_v3 }
  0xb7   :  { %2154 = vmatmul.mubr.f32.gmra.mrb[38].mxu1 %v641_v3  ;;  %1261 = vmatprep.mubr.f32.mxu0 %v646_v4  ;;  %v697_v3 = vld [vmem:[#allocation3 + $0x420] sm:$0xff] }
  0xb8   :  { %2159 = vmatprep.mubr.f32.mxu1 %v646_v4  ;;  %v3453_v4 = vld [vmem:[%s7653_s4 + $0x8] sm:$0xff] }
  0xb9   :  { %3649 = vmatprep.subr.mxu0 %v3453_v4  ;;  %v3452_v4 = vld [vmem:[%s7653_s4] sm:$0xff] }
  0xba   :  { %1262 = vmatmul.mubr.f32.gmra.mrb[40].mxu0 %v645_v5 }
  0xbb   :  { %2160 = vmatmul.mubr.f32.gmra.mrb[40].mxu1 %v645_v5  ;;  %1267 = vmatprep.mubr.f32.mxu0 %v650_v6  ;;  %v3455_v5 = vld [vmem:[%s7653_s4 + $0x18] sm:$0xff] }
  0xbc   :  { %2165 = vmatprep.mubr.f32.mxu1 %v650_v6  ;;  %v702_v6 = vld [vmem:[#allocation3 + $0x448] sm:$0xff]  ;;  %4098 = vmatprep.subr.mxu1 %v3455_v5  ;;  %v3454_v5 = vld [vmem:[%s7653_s4 + $0x10] sm:$0xff] }
  0xbe   :  { %1268 = vmatmul.mubr.f32.gmra.mrb[42].mxu0 %v649_v7 }
  0xbf   :  { %2166 = vmatmul.mubr.f32.gmra.mrb[42].mxu1 %v649_v7  ;;  %1273 = vmatprep.mubr.f32.mxu0 %v654_v8  ;;  %v701_v7 = vld [vmem:[#allocation3 + $0x440] sm:$0xff] }
  0xc0   :  { %2171 = vmatprep.mubr.f32.mxu1 %v654_v8  ;;  %v706_v8 = vld [vmem:[#allocation3 + $0x468] sm:$0xff] }
  0xc2   :  { %1274 = vmatmul.mubr.f32.gmra.mrb[44].mxu0 %v653_v21 }
  0xc3   :  { %2172 = vmatmul.mubr.f32.gmra.mrb[44].mxu1 %v653_v21  ;;  %1279 = vmatprep.mubr.f32.mxu0 %v658_v22  ;;  %v729_v21 = vld [vmem:[#allocation3 + $0x520] sm:$0xff] }
  0xc4   :  { %2177 = vmatprep.mubr.f32.mxu1 %v658_v22  ;;  %v734_v22 = vld [vmem:[#allocation3 + $0x548] sm:$0xff] }
  0xc6   :  { %1280 = vmatmul.mubr.f32.gmra.mrb[46].mxu0 %v657_v23 }
  0xc7   :  { %2178 = vmatmul.mubr.f32.gmra.mrb[46].mxu1 %v657_v23  ;;  %1285 = vmatprep.mubr.f32.mxu0 %v662_v24  ;;  %v733_v23 = vld [vmem:[#allocation3 + $0x540] sm:$0xff] }
  0xc8   :  { %2183 = vmatprep.mubr.f32.mxu1 %v662_v24  ;;  %v738_v24 = vld [vmem:[#allocation3 + $0x568] sm:$0xff] }
  0xca   :  { %1286 = vmatmul.mubr.f32.gmra.mrb[48].mxu0 %v661_v25 }
  0xcb   :  { %2184 = vmatmul.mubr.f32.gmra.mrb[48].mxu1 %v661_v25  ;;  %1291 = vmatprep.mubr.f32.mxu0 %v666_v26  ;;  %v737_v25 = vld [vmem:[#allocation3 + $0x560] sm:$0xff] }
  0xcc   :  { %2189 = vmatprep.mubr.f32.mxu1 %v666_v26  ;;  %v742_v26 = vld [vmem:[#allocation3 + $0x588] sm:$0xff] }
  0xce   :  { %1292 = vmatmul.mubr.f32.gmra.mrb[50].mxu0 %v665_v27 }
  0xcf   :  { %2190 = vmatmul.mubr.f32.gmra.mrb[50].mxu1 %v665_v27  ;;  %1297 = vmatprep.mubr.f32.mxu0 %v670_v28  ;;  %v741_v27 = vld [vmem:[#allocation3 + $0x580] sm:$0xff] }
  0xd0   :  { %2195 = vmatprep.mubr.f32.mxu1 %v670_v28  ;;  %v746_v28 = vld [vmem:[#allocation3 + $0x5a8] sm:$0xff] }
  0xd2   :  { %1298 = vmatmul.mubr.f32.gmra.mrb[52].mxu0 %v669_v41 }
  0xd3   :  { %2196 = vmatmul.mubr.f32.gmra.mrb[52].mxu1 %v669_v41  ;;  %1303 = vmatprep.mubr.f32.mxu0 %v674_v42  ;;  %v769_v41 = vld [vmem:[#allocation3 + $0x660] sm:$0xff] }
  0xd4   :  { %2201 = vmatprep.mubr.f32.mxu1 %v674_v42  ;;  %v774_v42 = vld [vmem:[#allocation3 + $0x688] sm:$0xff] }
  0xd6   :  { %1304 = vmatmul.mubr.f32.gmra.mrb[54].mxu0 %v673_v43 }
  0xd7   :  { %2202 = vmatmul.mubr.f32.gmra.mrb[54].mxu1 %v673_v43  ;;  %1309 = vmatprep.mubr.f32.mxu0 %v678_v44  ;;  %v773_v43 = vld [vmem:[#allocation3 + $0x680] sm:$0xff] }
  0xd8   :  { %2207 = vmatprep.mubr.f32.mxu1 %v678_v44  ;;  %v778_v44 = vld [vmem:[#allocation3 + $0x6a8] sm:$0xff] }
  0xda   :  { %1310 = vmatmul.mubr.f32.gmra.mrb[56].mxu0 %v677_v45 }
  0xdb   :  { %2208 = vmatmul.mubr.f32.gmra.mrb[56].mxu1 %v677_v45  ;;  %1315 = vmatprep.mubr.f32.mxu0 %v682_v46  ;;  %v777_v45 = vld [vmem:[#allocation3 + $0x6a0] sm:$0xff] }
  0xdc   :  { %2213 = vmatprep.mubr.f32.mxu1 %v682_v46  ;;  %v782_v46 = vld [vmem:[#allocation3 + $0x6c8] sm:$0xff] }
  0xde   :  { %1316 = vmatmul.mubr.f32.gmra.mrb[58].mxu0 %v681_v47 }
  0xdf   :  { %2214 = vmatmul.mubr.f32.gmra.mrb[58].mxu1 %v681_v47  ;;  %1321 = vmatprep.mubr.f32.mxu0 %v686_v48  ;;  %v781_v47 = vld [vmem:[#allocation3 + $0x6c0] sm:$0xff] }
  0xe0   :  { %2219 = vmatprep.mubr.f32.mxu1 %v686_v48  ;;  %v786_v48 = vld [vmem:[#allocation3 + $0x6e8] sm:$0xff] }
  0xe2   :  { %1322 = vmatmul.mubr.f32.gmra.mrb[60].mxu0 %v685_v61 }
  0xe3   :  { %2220 = vmatmul.mubr.f32.gmra.mrb[60].mxu1 %v685_v61  ;;  %1327 = vmatprep.mubr.f32.mxu0 %v690_v62  ;;  %v809_v61 = vld [vmem:[#allocation3 + $0x7a0] sm:$0xff] }
  0xe4   :  { %2225 = vmatprep.mubr.f32.mxu1 %v690_v62  ;;  %v814_v62 = vld [vmem:[#allocation3 + $0x7c8] sm:$0xff] }
  0xe6   :  { %1328 = vmatmul.mubr.f32.gmra.mrb[62].mxu0 %v689_v63 }
  0xe7   :  { %2226 = vmatmul.mubr.f32.gmra.mrb[62].mxu1 %v689_v63  ;;  %1333 = vmatprep.mubr.f32.mxu0 %v694_v0  ;;  %v813_v63 = vld [vmem:[#allocation3 + $0x7c0] sm:$0xff] }
  0xe8   :  { %2231 = vmatprep.mubr.f32.mxu1 %v694_v0  ;;  %v818_v0 = vld [vmem:[#allocation3 + $0x7e8] sm:$0xff] }
  0xea   :  { %1334 = vmatmul.mubr.f32.gmra.mrb[64].mxu0 %v693_v1 }
  0xeb   :  { %2232 = vmatmul.mubr.f32.gmra.mrb[64].mxu1 %v693_v1  ;;  %1339 = vmatprep.mubr.f32.mxu0 %v698_v2  ;;  %v817_v1 = vld [vmem:[#allocation3 + $0x7e0] sm:$0xff] }
  0xec   :  { %2237 = vmatprep.mubr.f32.mxu1 %v698_v2  ;;  %v568_v2 = vld [vmem:[#allocation3 + $0x18] sm:$0xff] }
  0xee   :  { %1340 = vmatmul.mubr.f32.gmra.mrb[66].mxu0 %v697_v3 }
  0xef   :  { %2238 = vmatmul.mubr.f32.gmra.mrb[66].mxu1 %v697_v3  ;;  %1345 = vmatprep.mubr.f32.mxu0 %v702_v6  ;;  %v567_v3 = vld [vmem:[#allocation3 + $0x10] sm:$0xff] }
  0xf0   :  { %2243 = vmatprep.mubr.f32.mxu1 %v702_v6  ;;  %v572_v6 = vld [vmem:[#allocation3 + $0x38] sm:$0xff] }
  0xf2   :  { %1346 = vmatmul.mubr.f32.gmra.mrb[68].mxu0 %v701_v7 }
  0xf3   :  { %2244 = vmatmul.mubr.f32.gmra.mrb[68].mxu1 %v701_v7  ;;  %1351 = vmatprep.mubr.f32.mxu0 %v706_v8  ;;  %v571_v7 = vld [vmem:[#allocation3 + $0x30] sm:$0xff] }
  0xf4   :  { %2249 = vmatprep.mubr.f32.mxu1 %v706_v8  ;;  %v576_v8 = vld [vmem:[#allocation3 + $0x58] sm:$0xff] }
  0xf6   :  { %1352 = vmatmul.mubr.f32.gmra.mrb[70].mxu0 %v705_v9 }
  0xf7   :  { %2250 = vmatmul.mubr.f32.gmra.mrb[70].mxu1 %v705_v9  ;;  %1357 = vmatprep.mubr.f32.mxu0 %v710_v10  ;;  %v575_v9 = vld [vmem:[#allocation3 + $0x50] sm:$0xff] }
  0xf8   :  { %2255 = vmatprep.mubr.f32.mxu1 %v710_v10  ;;  %v580_v10 = vld [vmem:[#allocation3 + $0x78] sm:$0xff] }
  0xfa   :  { %1358 = vmatmul.mubr.f32.gmra.mrb[72].mxu0 %v709_v11 }
  0xfb   :  { %2256 = vmatmul.mubr.f32.gmra.mrb[72].mxu1 %v709_v11  ;;  %1363 = vmatprep.mubr.f32.mxu0 %v714_v12  ;;  %v579_v11 = vld [vmem:[#allocation3 + $0x70] sm:$0xff] }
  0xfc   :  { %2261 = vmatprep.mubr.f32.mxu1 %v714_v12  ;;  %v584_v12 = vld [vmem:[#allocation3 + $0x98] sm:$0xff] }
  0xfe   :  { %1364 = vmatmul.mubr.f32.gmra.mrb[74].mxu0 %v713_v13 }
  0xff   :  { %2262 = vmatmul.mubr.f32.gmra.mrb[74].mxu1 %v713_v13  ;;  %1369 = vmatprep.mubr.f32.mxu0 %v718_v14  ;;  %v583_v13 = vld [vmem:[#allocation3 + $0x90] sm:$0xff] }
 0x100   :  { %2267 = vmatprep.mubr.f32.mxu1 %v718_v14  ;;  %v588_v14 = vld [vmem:[#allocation3 + $0xb8] sm:$0xff] }
 0x102   :  { %1370 = vmatmul.mubr.f32.gmra.mrb[76].mxu0 %v717_v15 }
 0x103   :  { %2268 = vmatmul.mubr.f32.gmra.mrb[76].mxu1 %v717_v15  ;;  %1375 = vmatprep.mubr.f32.mxu0 %v722_v16  ;;  %v587_v15 = vld [vmem:[#allocation3 + $0xb0] sm:$0xff] }
 0x104   :  { %2273 = vmatprep.mubr.f32.mxu1 %v722_v16  ;;  %v592_v16 = vld [vmem:[#allocation3 + $0xd8] sm:$0xff] }
 0x106   :  { %1376 = vmatmul.mubr.f32.gmra.mrb[78].mxu0 %v721_v17 }
 0x107   :  { %2274 = vmatmul.mubr.f32.gmra.mrb[78].mxu1 %v721_v17  ;;  %1381 = vmatprep.mubr.f32.mxu0 %v726_v18  ;;  %v591_v17 = vld [vmem:[#allocation3 + $0xd0] sm:$0xff] }
 0x108   :  { %2279 = vmatprep.mubr.f32.mxu1 %v726_v18  ;;  %v596_v18 = vld [vmem:[#allocation3 + $0xf8] sm:$0xff] }
 0x10a   :  { %1382 = vmatmul.mubr.f32.gmra.mrb[80].mxu0 %v725_v19 }
 0x10b   :  { %2280 = vmatmul.mubr.f32.gmra.mrb[80].mxu1 %v725_v19  ;;  %1387 = vmatprep.mubr.f32.mxu0 %v730_v20  ;;  %v595_v19 = vld [vmem:[#allocation3 + $0xf0] sm:$0xff] }
 0x10c   :  { %2285 = vmatprep.mubr.f32.mxu1 %v730_v20  ;;  %v600_v20 = vld [vmem:[#allocation3 + $0x118] sm:$0xff] }
 0x10e   :  { %1388 = vmatmul.mubr.f32.gmra.mrb[82].mxu0 %v729_v21 }
 0x10f   :  { %2286 = vmatmul.mubr.f32.gmra.mrb[82].mxu1 %v729_v21  ;;  %1393 = vmatprep.mubr.f32.mxu0 %v734_v22  ;;  %v599_v21 = vld [vmem:[#allocation3 + $0x110] sm:$0xff] }
 0x110   :  { %2291 = vmatprep.mubr.f32.mxu1 %v734_v22  ;;  %v604_v22 = vld [vmem:[#allocation3 + $0x138] sm:$0xff] }
 0x112   :  { %1394 = vmatmul.mubr.f32.gmra.mrb[84].mxu0 %v733_v23 }
 0x113   :  { %2292 = vmatmul.mubr.f32.gmra.mrb[84].mxu1 %v733_v23  ;;  %1399 = vmatprep.mubr.f32.mxu0 %v738_v24  ;;  %v603_v23 = vld [vmem:[#allocation3 + $0x130] sm:$0xff] }
 0x114   :  { %2297 = vmatprep.mubr.f32.mxu1 %v738_v24  ;;  %v608_v24 = vld [vmem:[#allocation3 + $0x158] sm:$0xff] }
 0x116   :  { %1400 = vmatmul.mubr.f32.gmra.mrb[86].mxu0 %v737_v25 }
 0x117   :  { %2298 = vmatmul.mubr.f32.gmra.mrb[86].mxu1 %v737_v25  ;;  %1405 = vmatprep.mubr.f32.mxu0 %v742_v26  ;;  %v607_v25 = vld [vmem:[#allocation3 + $0x150] sm:$0xff] }
 0x118   :  { %2303 = vmatprep.mubr.f32.mxu1 %v742_v26  ;;  %v612_v26 = vld [vmem:[#allocation3 + $0x178] sm:$0xff] }
 0x11a   :  { %1406 = vmatmul.mubr.f32.gmra.mrb[88].mxu0 %v741_v27 }
 0x11b   :  { %2304 = vmatmul.mubr.f32.gmra.mrb[88].mxu1 %v741_v27  ;;  %1411 = vmatprep.mubr.f32.mxu0 %v746_v28  ;;  %v611_v27 = vld [vmem:[#allocation3 + $0x170] sm:$0xff] }
 0x11c   :  { %2309 = vmatprep.mubr.f32.mxu1 %v746_v28  ;;  %v616_v28 = vld [vmem:[#allocation3 + $0x198] sm:$0xff] }
 0x11e   :  { %1412 = vmatmul.mubr.f32.gmra.mrb[90].mxu0 %v745_v29 }
 0x11f   :  { %2310 = vmatmul.mubr.f32.gmra.mrb[90].mxu1 %v745_v29  ;;  %1417 = vmatprep.mubr.f32.mxu0 %v750_v30  ;;  %v615_v29 = vld [vmem:[#allocation3 + $0x190] sm:$0xff] }
 0x120   :  { %2315 = vmatprep.mubr.f32.mxu1 %v750_v30  ;;  %v620_v30 = vld [vmem:[#allocation3 + $0x1b8] sm:$0xff] }
 0x122   :  { %1418 = vmatmul.mubr.f32.gmra.mrb[92].mxu0 %v749_v31 }
 0x123   :  { %2316 = vmatmul.mubr.f32.gmra.mrb[92].mxu1 %v749_v31  ;;  %1423 = vmatprep.mubr.f32.mxu0 %v754_v32  ;;  %v619_v31 = vld [vmem:[#allocation3 + $0x1b0] sm:$0xff] }
 0x124   :  { %2321 = vmatprep.mubr.f32.mxu1 %v754_v32  ;;  %v624_v32 = vld [vmem:[#allocation3 + $0x1d8] sm:$0xff] }
 0x126   :  { %1424 = vmatmul.mubr.f32.gmra.mrb[94].mxu0 %v753_v33 }
 0x127   :  { %2322 = vmatmul.mubr.f32.gmra.mrb[94].mxu1 %v753_v33  ;;  %1429 = vmatprep.mubr.f32.mxu0 %v758_v34  ;;  %v623_v33 = vld [vmem:[#allocation3 + $0x1d0] sm:$0xff] }
 0x128   :  { %2327 = vmatprep.mubr.f32.mxu1 %v758_v34  ;;  %v628_v34 = vld [vmem:[#allocation3 + $0x1f8] sm:$0xff] }
 0x12a   :  { %1430 = vmatmul.mubr.f32.gmra.mrb[96].mxu0 %v757_v35 }
 0x12b   :  { %2328 = vmatmul.mubr.f32.gmra.mrb[96].mxu1 %v757_v35  ;;  %1435 = vmatprep.mubr.f32.mxu0 %v762_v36  ;;  %v627_v35 = vld [vmem:[#allocation3 + $0x1f0] sm:$0xff] }
 0x12c   :  { %2333 = vmatprep.mubr.f32.mxu1 %v762_v36  ;;  %v632_v36 = vld [vmem:[#allocation3 + $0x218] sm:$0xff] }
 0x12e   :  { %1436 = vmatmul.mubr.f32.gmra.mrb[98].mxu0 %v761_v37 }
 0x12f   :  { %2334 = vmatmul.mubr.f32.gmra.mrb[98].mxu1 %v761_v37  ;;  %1441 = vmatprep.mubr.f32.mxu0 %v766_v38  ;;  %v631_v37 = vld [vmem:[#allocation3 + $0x210] sm:$0xff] }
 0x130   :  { %2339 = vmatprep.mubr.f32.mxu1 %v766_v38  ;;  %v636_v38 = vld [vmem:[#allocation3 + $0x238] sm:$0xff] }
 0x132   :  { %1442 = vmatmul.mubr.f32.gmra.mrb[100].mxu0 %v765_v39 }
 0x133   :  { %2340 = vmatmul.mubr.f32.gmra.mrb[100].mxu1 %v765_v39  ;;  %1447 = vmatprep.mubr.f32.mxu0 %v770_v40  ;;  %v635_v39 = vld [vmem:[#allocation3 + $0x230] sm:$0xff] }
 0x134   :  { %2345 = vmatprep.mubr.f32.mxu1 %v770_v40  ;;  %v640_v40 = vld [vmem:[#allocation3 + $0x258] sm:$0xff] }
 0x136   :  { %1448 = vmatmul.mubr.f32.gmra.mrb[102].mxu0 %v769_v41 }
 0x137   :  { %2346 = vmatmul.mubr.f32.gmra.mrb[102].mxu1 %v769_v41  ;;  %1453 = vmatprep.mubr.f32.mxu0 %v774_v42  ;;  %v639_v41 = vld [vmem:[#allocation3 + $0x250] sm:$0xff] }
 0x138   :  { %2351 = vmatprep.mubr.f32.mxu1 %v774_v42  ;;  %v644_v42 = vld [vmem:[#allocation3 + $0x278] sm:$0xff] }
 0x13a   :  { %1454 = vmatmul.mubr.f32.gmra.mrb[104].mxu0 %v773_v43 }
 0x13b   :  { %2352 = vmatmul.mubr.f32.gmra.mrb[104].mxu1 %v773_v43  ;;  %1459 = vmatprep.mubr.f32.mxu0 %v778_v44  ;;  %v643_v43 = vld [vmem:[#allocation3 + $0x270] sm:$0xff] }
 0x13c   :  { %2357 = vmatprep.mubr.f32.mxu1 %v778_v44  ;;  %v648_v44 = vld [vmem:[#allocation3 + $0x298] sm:$0xff] }
 0x13e   :  { %1460 = vmatmul.mubr.f32.gmra.mrb[106].mxu0 %v777_v45 }
 0x13f   :  { %2358 = vmatmul.mubr.f32.gmra.mrb[106].mxu1 %v777_v45  ;;  %1465 = vmatprep.mubr.f32.mxu0 %v782_v46  ;;  %v647_v45 = vld [vmem:[#allocation3 + $0x290] sm:$0xff] }
 0x140   :  { %2363 = vmatprep.mubr.f32.mxu1 %v782_v46  ;;  %v652_v46 = vld [vmem:[#allocation3 + $0x2b8] sm:$0xff] }
 0x142   :  { %1466 = vmatmul.mubr.f32.gmra.mrb[108].mxu0 %v781_v47 }
 0x143   :  { %2364 = vmatmul.mubr.f32.gmra.mrb[108].mxu1 %v781_v47  ;;  %1471 = vmatprep.mubr.f32.mxu0 %v786_v48  ;;  %v651_v47 = vld [vmem:[#allocation3 + $0x2b0] sm:$0xff] }
 0x144   :  { %2369 = vmatprep.mubr.f32.mxu1 %v786_v48  ;;  %v656_v48 = vld [vmem:[#allocation3 + $0x2d8] sm:$0xff] }
 0x146   :  { %1472 = vmatmul.mubr.f32.gmra.mrb[110].mxu0 %v785_v49 }
 0x147   :  { %2370 = vmatmul.mubr.f32.gmra.mrb[110].mxu1 %v785_v49  ;;  %1477 = vmatprep.mubr.f32.mxu0 %v790_v50  ;;  %v655_v49 = vld [vmem:[#allocation3 + $0x2d0] sm:$0xff] }
 0x148   :  { %2375 = vmatprep.mubr.f32.mxu1 %v790_v50  ;;  %v660_v50 = vld [vmem:[#allocation3 + $0x2f8] sm:$0xff] }
 0x14a   :  { %1478 = vmatmul.mubr.f32.gmra.mrb[112].mxu0 %v789_v51 }
 0x14b   :  { %2376 = vmatmul.mubr.f32.gmra.mrb[112].mxu1 %v789_v51  ;;  %1483 = vmatprep.mubr.f32.mxu0 %v794_v52  ;;  %v659_v51 = vld [vmem:[#allocation3 + $0x2f0] sm:$0xff] }
 0x14c   :  { %2381 = vmatprep.mubr.f32.mxu1 %v794_v52  ;;  %v664_v52 = vld [vmem:[#allocation3 + $0x318] sm:$0xff] }
 0x14e   :  { %1484 = vmatmul.mubr.f32.gmra.mrb[114].mxu0 %v793_v53 }
 0x14f   :  { %2382 = vmatmul.mubr.f32.gmra.mrb[114].mxu1 %v793_v53  ;;  %1489 = vmatprep.mubr.f32.mxu0 %v798_v54  ;;  %v663_v53 = vld [vmem:[#allocation3 + $0x310] sm:$0xff] }
 0x150   :  { %2387 = vmatprep.mubr.f32.mxu1 %v798_v54  ;;  %v668_v54 = vld [vmem:[#allocation3 + $0x338] sm:$0xff] }
 0x152   :  { %1490 = vmatmul.mubr.f32.gmra.mrb[116].mxu0 %v797_v55 }
 0x153   :  { %2388 = vmatmul.mubr.f32.gmra.mrb[116].mxu1 %v797_v55  ;;  %1495 = vmatprep.mubr.f32.mxu0 %v802_v56  ;;  %v667_v55 = vld [vmem:[#allocation3 + $0x330] sm:$0xff] }
 0x154   :  { %2393 = vmatprep.mubr.f32.mxu1 %v802_v56  ;;  %v672_v56 = vld [vmem:[#allocation3 + $0x358] sm:$0xff] }
 0x156   :  { %1496 = vmatmul.mubr.f32.gmra.mrb[118].mxu0 %v801_v57 }
 0x157   :  { %2394 = vmatmul.mubr.f32.gmra.mrb[118].mxu1 %v801_v57  ;;  %1501 = vmatprep.mubr.f32.mxu0 %v806_v58  ;;  %v671_v57 = vld [vmem:[#allocation3 + $0x350] sm:$0xff] }
 0x158   :  { %2399 = vmatprep.mubr.f32.mxu1 %v806_v58  ;;  %v676_v58 = vld [vmem:[#allocation3 + $0x378] sm:$0xff] }
 0x15a   :  { %1502 = vmatmul.mubr.f32.gmra.mrb[120].mxu0 %v805_v59 }
 0x15b   :  { %2400 = vmatmul.mubr.f32.gmra.mrb[120].mxu1 %v805_v59  ;;  %1507 = vmatprep.mubr.f32.mxu0 %v810_v60  ;;  %v675_v59 = vld [vmem:[#allocation3 + $0x370] sm:$0xff] }
 0x15c   :  { %2405 = vmatprep.mubr.f32.mxu1 %v810_v60  ;;  %v680_v60 = vld [vmem:[#allocation3 + $0x398] sm:$0xff] }
 0x15e   :  { %1508 = vmatmul.mubr.f32.gmra.mrb[122].mxu0 %v809_v61 }
 0x15f   :  { %2406 = vmatmul.mubr.f32.gmra.mrb[122].mxu1 %v809_v61  ;;  %1513 = vmatprep.mubr.f32.mxu0 %v814_v62  ;;  %v679_v61 = vld [vmem:[#allocation3 + $0x390] sm:$0xff] }
 0x160   :  { %2411 = vmatprep.mubr.f32.mxu1 %v814_v62  ;;  %v684_v62 = vld [vmem:[#allocation3 + $0x3b8] sm:$0xff] }
 0x162   :  { %1514 = vmatmul.mubr.f32.gmra.mrb[124].mxu0 %v813_v63 }
 0x163   :  { %2412 = vmatmul.mubr.f32.gmra.mrb[124].mxu1 %v813_v63  ;;  %1519 = vmatprep.mubr.f32.mxu0 %v818_v0  ;;  %v683_v63 = vld [vmem:[#allocation3 + $0x3b0] sm:$0xff] }
 0x164   :  { %2417 = vmatprep.mubr.f32.mxu1 %v818_v0  ;;  %v688_v0 = vld [vmem:[#allocation3 + $0x3d8] sm:$0xff] }
 0x166   :  { %1520 = vmatmul.mubr.f32.gmra.mrb[126].mxu0 %v817_v1 }
 0x167   :  { %2418 = vmatmul.mubr.f32.gmra.mrb[126].mxu1 %v817_v1  ;;  %1590 = vmatprep.mubr.f32.mxu0 %v568_v2  ;;  %v687_v1 = vld [vmem:[#allocation3 + $0x3d0] sm:$0xff] }
 0x168   :  { %2488 = vmatprep.mubr.f32.mxu1 %v568_v2  ;;  %v692_v2 = vld [vmem:[#allocation3 + $0x3f8] sm:$0xff] }
 0x16a   :  { %1591 = vmatmul.mubr.f32.vlgmr.msra.gmra.mrb[0].mxu0 %v567_v3 }
 0x16b   :  { %2489 = vmatmul.mubr.f32.vlgmr.msra.gmra.mrb[0].mxu1 %v567_v3  ;;  %3650 = vmatpush1.msra.mxu0 %v3452_v4  ;;  %v691_v3 = vld [vmem:[#allocation3 + $0x3f0] sm:$0xff]  ;;  %v696_v4 = vld [vmem:[#allocation3 + $0x418] sm:$0xff] }
 0x16c   :  { %4099 = vmatpush1.msra.mxu1 %v3454_v5  ;;  %1596 = vmatprep.mubr.f32.mxu0 %v572_v6  ;;  %v695_v5 = vld [vmem:[#allocation3 + $0x410] sm:$0xff] }
 0x16d   :  { %2494 = vmatprep.mubr.f32.mxu1 %v572_v6  ;;  %v700_v6 = vld [vmem:[#allocation3 + $0x438] sm:$0xff] }
 0x16e   :  { %1597 = vmatmul.mubr.f32.gmra.mrb[2].mxu0 %v571_v7 }
 0x16f   :  { %2495 = vmatmul.mubr.f32.gmra.mrb[2].mxu1 %v571_v7  ;;  %1602 = vmatprep.mubr.f32.mxu0 %v576_v8  ;;  %v699_v7 = vld [vmem:[#allocation3 + $0x430] sm:$0xff] }
 0x170   :  { %2500 = vmatprep.mubr.f32.mxu1 %v576_v8  ;;  %v704_v8 = vld [vmem:[#allocation3 + $0x458] sm:$0xff] }
 0x172   :  { %1603 = vmatmul.mubr.f32.gmra.mrb[4].mxu0 %v575_v9 }
 0x173   :  { %2501 = vmatmul.mubr.f32.gmra.mrb[4].mxu1 %v575_v9  ;;  %1608 = vmatprep.mubr.f32.mxu0 %v580_v10  ;;  %v703_v9 = vld [vmem:[#allocation3 + $0x450] sm:$0xff] }
 0x174   :  { %2506 = vmatprep.mubr.f32.mxu1 %v580_v10  ;;  %v708_v10 = vld [vmem:[#allocation3 + $0x478] sm:$0xff] }
 0x176   :  { %1609 = vmatmul.mubr.f32.gmra.mrb[6].mxu0 %v579_v11 }
 0x177   :  { %2507 = vmatmul.mubr.f32.gmra.mrb[6].mxu1 %v579_v11  ;;  %1614 = vmatprep.mubr.f32.mxu0 %v584_v12  ;;  %v707_v11 = vld [vmem:[#allocation3 + $0x470] sm:$0xff] }
 0x178   :  { %2512 = vmatprep.mubr.f32.mxu1 %v584_v12  ;;  %v712_v12 = vld [vmem:[#allocation3 + $0x498] sm:$0xff] }
 0x17a   :  { %1615 = vmatmul.mubr.f32.gmra.mrb[8].mxu0 %v583_v13 }
 0x17b   :  { %2513 = vmatmul.mubr.f32.gmra.mrb[8].mxu1 %v583_v13  ;;  %1620 = vmatprep.mubr.f32.mxu0 %v588_v14  ;;  %v711_v13 = vld [vmem:[#allocation3 + $0x490] sm:$0xff] }
 0x17c   :  { %2518 = vmatprep.mubr.f32.mxu1 %v588_v14  ;;  %v716_v14 = vld [vmem:[#allocation3 + $0x4b8] sm:$0xff] }
 0x17e   :  { %1621 = vmatmul.mubr.f32.gmra.mrb[10].mxu0 %v587_v15 }
 0x17f   :  { %2519 = vmatmul.mubr.f32.gmra.mrb[10].mxu1 %v587_v15  ;;  %1626 = vmatprep.mubr.f32.mxu0 %v592_v16  ;;  %v715_v15 = vld [vmem:[#allocation3 + $0x4b0] sm:$0xff] }
 0x180   :  { %2524 = vmatprep.mubr.f32.mxu1 %v592_v16  ;;  %v720_v16 = vld [vmem:[#allocation3 + $0x4d8] sm:$0xff] }
 0x182   :  { %1627 = vmatmul.mubr.f32.gmra.mrb[12].mxu0 %v591_v17 }
 0x183   :  { %2525 = vmatmul.mubr.f32.gmra.mrb[12].mxu1 %v591_v17  ;;  %1632 = vmatprep.mubr.f32.mxu0 %v596_v18  ;;  %v719_v17 = vld [vmem:[#allocation3 + $0x4d0] sm:$0xff] }
 0x184   :  { %2530 = vmatprep.mubr.f32.mxu1 %v596_v18  ;;  %v724_v18 = vld [vmem:[#allocation3 + $0x4f8] sm:$0xff] }
 0x186   :  { %1633 = vmatmul.mubr.f32.gmra.mrb[14].mxu0 %v595_v19 }
 0x187   :  { %2531 = vmatmul.mubr.f32.gmra.mrb[14].mxu1 %v595_v19  ;;  %1638 = vmatprep.mubr.f32.mxu0 %v600_v20  ;;  %v723_v19 = vld [vmem:[#allocation3 + $0x4f0] sm:$0xff] }
 0x188   :  { %2536 = vmatprep.mubr.f32.mxu1 %v600_v20  ;;  %v728_v20 = vld [vmem:[#allocation3 + $0x518] sm:$0xff] }
 0x18a   :  { %1639 = vmatmul.mubr.f32.gmra.mrb[16].mxu0 %v599_v21 }
 0x18b   :  { %2537 = vmatmul.mubr.f32.gmra.mrb[16].mxu1 %v599_v21  ;;  %1644 = vmatprep.mubr.f32.mxu0 %v604_v22  ;;  %v727_v21 = vld [vmem:[#allocation3 + $0x510] sm:$0xff] }
 0x18c   :  { %2542 = vmatprep.mubr.f32.mxu1 %v604_v22  ;;  %v732_v22 = vld [vmem:[#allocation3 + $0x538] sm:$0xff] }
 0x18e   :  { %1645 = vmatmul.mubr.f32.gmra.mrb[18].mxu0 %v603_v23 }
 0x18f   :  { %2543 = vmatmul.mubr.f32.gmra.mrb[18].mxu1 %v603_v23  ;;  %1650 = vmatprep.mubr.f32.mxu0 %v608_v24  ;;  %v731_v23 = vld [vmem:[#allocation3 + $0x530] sm:$0xff] }
 0x190   :  { %2548 = vmatprep.mubr.f32.mxu1 %v608_v24  ;;  %v736_v24 = vld [vmem:[#allocation3 + $0x558] sm:$0xff] }
 0x192   :  { %1651 = vmatmul.mubr.f32.gmra.mrb[20].mxu0 %v607_v25 }
 0x193   :  { %2549 = vmatmul.mubr.f32.gmra.mrb[20].mxu1 %v607_v25  ;;  %1656 = vmatprep.mubr.f32.mxu0 %v612_v26  ;;  %v735_v25 = vld [vmem:[#allocation3 + $0x550] sm:$0xff] }
 0x194   :  { %2554 = vmatprep.mubr.f32.mxu1 %v612_v26  ;;  %v740_v26 = vld [vmem:[#allocation3 + $0x578] sm:$0xff] }
 0x196   :  { %1657 = vmatmul.mubr.f32.gmra.mrb[22].mxu0 %v611_v27 }
 0x197   :  { %2555 = vmatmul.mubr.f32.gmra.mrb[22].mxu1 %v611_v27  ;;  %1662 = vmatprep.mubr.f32.mxu0 %v616_v28  ;;  %v739_v27 = vld [vmem:[#allocation3 + $0x570] sm:$0xff] }
 0x198   :  { %2560 = vmatprep.mubr.f32.mxu1 %v616_v28  ;;  %v744_v28 = vld [vmem:[#allocation3 + $0x598] sm:$0xff] }
 0x19a   :  { %1663 = vmatmul.mubr.f32.gmra.mrb[24].mxu0 %v615_v29 }
 0x19b   :  { %2561 = vmatmul.mubr.f32.gmra.mrb[24].mxu1 %v615_v29  ;;  %1668 = vmatprep.mubr.f32.mxu0 %v620_v30  ;;  %v743_v29 = vld [vmem:[#allocation3 + $0x590] sm:$0xff] }
 0x19c   :  { %2566 = vmatprep.mubr.f32.mxu1 %v620_v30  ;;  %v748_v30 = vld [vmem:[#allocation3 + $0x5b8] sm:$0xff] }
 0x19e   :  { %1669 = vmatmul.mubr.f32.gmra.mrb[26].mxu0 %v619_v31 }
 0x19f   :  { %2567 = vmatmul.mubr.f32.gmra.mrb[26].mxu1 %v619_v31  ;;  %1674 = vmatprep.mubr.f32.mxu0 %v624_v32  ;;  %v747_v31 = vld [vmem:[#allocation3 + $0x5b0] sm:$0xff] }
 0x1a0   :  { %2572 = vmatprep.mubr.f32.mxu1 %v624_v32  ;;  %v752_v32 = vld [vmem:[#allocation3 + $0x5d8] sm:$0xff] }
 0x1a2   :  { %1675 = vmatmul.mubr.f32.gmra.mrb[28].mxu0 %v623_v33 }
 0x1a3   :  { %2573 = vmatmul.mubr.f32.gmra.mrb[28].mxu1 %v623_v33  ;;  %1680 = vmatprep.mubr.f32.mxu0 %v628_v34  ;;  %v751_v33 = vld [vmem:[#allocation3 + $0x5d0] sm:$0xff] }
 0x1a4   :  { %2578 = vmatprep.mubr.f32.mxu1 %v628_v34  ;;  %v756_v34 = vld [vmem:[#allocation3 + $0x5f8] sm:$0xff] }
 0x1a6   :  { %1681 = vmatmul.mubr.f32.gmra.mrb[30].mxu0 %v627_v35 }
 0x1a7   :  { %2579 = vmatmul.mubr.f32.gmra.mrb[30].mxu1 %v627_v35  ;;  %1686 = vmatprep.mubr.f32.mxu0 %v632_v36  ;;  %v755_v35 = vld [vmem:[#allocation3 + $0x5f0] sm:$0xff] }
 0x1a8   :  { %2584 = vmatprep.mubr.f32.mxu1 %v632_v36  ;;  %v760_v36 = vld [vmem:[#allocation3 + $0x618] sm:$0xff] }
 0x1aa   :  { %1687 = vmatmul.mubr.f32.gmra.mrb[32].mxu0 %v631_v37 }
 0x1ab   :  { %2585 = vmatmul.mubr.f32.gmra.mrb[32].mxu1 %v631_v37  ;;  %1692 = vmatprep.mubr.f32.mxu0 %v636_v38  ;;  %v759_v37 = vld [vmem:[#allocation3 + $0x610] sm:$0xff] }
 0x1ac   :  { %2590 = vmatprep.mubr.f32.mxu1 %v636_v38  ;;  %v764_v38 = vld [vmem:[#allocation3 + $0x638] sm:$0xff] }
 0x1ae   :  { %1693 = vmatmul.mubr.f32.gmra.mrb[34].mxu0 %v635_v39 }
 0x1af   :  { %2591 = vmatmul.mubr.f32.gmra.mrb[34].mxu1 %v635_v39  ;;  %1698 = vmatprep.mubr.f32.mxu0 %v640_v40  ;;  %v763_v39 = vld [vmem:[#allocation3 + $0x630] sm:$0xff] }
 0x1b0   :  { %2596 = vmatprep.mubr.f32.mxu1 %v640_v40  ;;  %v768_v40 = vld [vmem:[#allocation3 + $0x658] sm:$0xff] }
 0x1b2   :  { %1699 = vmatmul.mubr.f32.gmra.mrb[36].mxu0 %v639_v41 }
 0x1b3   :  { %2597 = vmatmul.mubr.f32.gmra.mrb[36].mxu1 %v639_v41  ;;  %1704 = vmatprep.mubr.f32.mxu0 %v644_v42  ;;  %v767_v41 = vld [vmem:[#allocation3 + $0x650] sm:$0xff] }
 0x1b4   :  { %2602 = vmatprep.mubr.f32.mxu1 %v644_v42  ;;  %v772_v42 = vld [vmem:[#allocation3 + $0x678] sm:$0xff] }
 0x1b6   :  { %1705 = vmatmul.mubr.f32.gmra.mrb[38].mxu0 %v643_v43 }
 0x1b7   :  { %2603 = vmatmul.mubr.f32.gmra.mrb[38].mxu1 %v643_v43  ;;  %1710 = vmatprep.mubr.f32.mxu0 %v648_v44  ;;  %v771_v43 = vld [vmem:[#allocation3 + $0x670] sm:$0xff] }
 0x1b8   :  { %2608 = vmatprep.mubr.f32.mxu1 %v648_v44  ;;  %v776_v44 = vld [vmem:[#allocation3 + $0x698] sm:$0xff] }
 0x1ba   :  { %1711 = vmatmul.mubr.f32.gmra.mrb[40].mxu0 %v647_v45 }
 0x1bb   :  { %2609 = vmatmul.mubr.f32.gmra.mrb[40].mxu1 %v647_v45  ;;  %1716 = vmatprep.mubr.f32.mxu0 %v652_v46  ;;  %v775_v45 = vld [vmem:[#allocation3 + $0x690] sm:$0xff] }
 0x1bc   :  { %2614 = vmatprep.mubr.f32.mxu1 %v652_v46  ;;  %v780_v46 = vld [vmem:[#allocation3 + $0x6b8] sm:$0xff] }
 0x1be   :  { %1717 = vmatmul.mubr.f32.gmra.mrb[42].mxu0 %v651_v47 }
 0x1bf   :  { %2615 = vmatmul.mubr.f32.gmra.mrb[42].mxu1 %v651_v47  ;;  %1722 = vmatprep.mubr.f32.mxu0 %v656_v48  ;;  %v779_v47 = vld [vmem:[#allocation3 + $0x6b0] sm:$0xff] }
 0x1c0   :  { %2620 = vmatprep.mubr.f32.mxu1 %v656_v48  ;;  %v784_v48 = vld [vmem:[#allocation3 + $0x6d8] sm:$0xff] }
 0x1c2   :  { %1723 = vmatmul.mubr.f32.gmra.mrb[44].mxu0 %v655_v49 }
 0x1c3   :  { %2621 = vmatmul.mubr.f32.gmra.mrb[44].mxu1 %v655_v49  ;;  %1728 = vmatprep.mubr.f32.mxu0 %v660_v50  ;;  %v783_v49 = vld [vmem:[#allocation3 + $0x6d0] sm:$0xff] }
 0x1c4   :  { %2626 = vmatprep.mubr.f32.mxu1 %v660_v50  ;;  %v788_v50 = vld [vmem:[#allocation3 + $0x6f8] sm:$0xff] }
 0x1c6   :  { %1729 = vmatmul.mubr.f32.gmra.mrb[46].mxu0 %v659_v51 }
 0x1c7   :  { %2627 = vmatmul.mubr.f32.gmra.mrb[46].mxu1 %v659_v51  ;;  %1734 = vmatprep.mubr.f32.mxu0 %v664_v52  ;;  %v787_v51 = vld [vmem:[#allocation3 + $0x6f0] sm:$0xff] }
 0x1c8   :  { %2632 = vmatprep.mubr.f32.mxu1 %v664_v52  ;;  %v792_v52 = vld [vmem:[#allocation3 + $0x718] sm:$0xff] }
 0x1ca   :  { %1735 = vmatmul.mubr.f32.gmra.mrb[48].mxu0 %v663_v53 }
 0x1cb   :  { %2633 = vmatmul.mubr.f32.gmra.mrb[48].mxu1 %v663_v53  ;;  %1740 = vmatprep.mubr.f32.mxu0 %v668_v54  ;;  %v791_v53 = vld [vmem:[#allocation3 + $0x710] sm:$0xff] }
 0x1cc   :  { %2638 = vmatprep.mubr.f32.mxu1 %v668_v54  ;;  %v796_v54 = vld [vmem:[#allocation3 + $0x738] sm:$0xff] }
 0x1ce   :  { %1741 = vmatmul.mubr.f32.gmra.mrb[50].mxu0 %v667_v55 }
 0x1cf   :  { %2639 = vmatmul.mubr.f32.gmra.mrb[50].mxu1 %v667_v55  ;;  %1746 = vmatprep.mubr.f32.mxu0 %v672_v56  ;;  %v795_v55 = vld [vmem:[#allocation3 + $0x730] sm:$0xff] }
 0x1d0   :  { %2644 = vmatprep.mubr.f32.mxu1 %v672_v56  ;;  %v800_v56 = vld [vmem:[#allocation3 + $0x758] sm:$0xff] }
 0x1d2   :  { %1747 = vmatmul.mubr.f32.gmra.mrb[52].mxu0 %v671_v57 }
 0x1d3   :  { %2645 = vmatmul.mubr.f32.gmra.mrb[52].mxu1 %v671_v57  ;;  %1752 = vmatprep.mubr.f32.mxu0 %v676_v58  ;;  %v799_v57 = vld [vmem:[#allocation3 + $0x750] sm:$0xff] }
 0x1d4   :  { %2650 = vmatprep.mubr.f32.mxu1 %v676_v58  ;;  %v804_v58 = vld [vmem:[#allocation3 + $0x778] sm:$0xff] }
 0x1d6   :  { %1753 = vmatmul.mubr.f32.gmra.mrb[54].mxu0 %v675_v59 }
 0x1d7   :  { %2651 = vmatmul.mubr.f32.gmra.mrb[54].mxu1 %v675_v59  ;;  %1758 = vmatprep.mubr.f32.mxu0 %v680_v60  ;;  %v803_v59 = vld [vmem:[#allocation3 + $0x770] sm:$0xff] }
 0x1d8   :  { %2656 = vmatprep.mubr.f32.mxu1 %v680_v60  ;;  %v808_v60 = vld [vmem:[#allocation3 + $0x798] sm:$0xff] }
 0x1da   :  { %1759 = vmatmul.mubr.f32.gmra.mrb[56].mxu0 %v679_v61 }
 0x1db   :  { %2657 = vmatmul.mubr.f32.gmra.mrb[56].mxu1 %v679_v61  ;;  %1764 = vmatprep.mubr.f32.mxu0 %v684_v62  ;;  %v807_v61 = vld [vmem:[#allocation3 + $0x790] sm:$0xff] }
 0x1dc   :  { %2662 = vmatprep.mubr.f32.mxu1 %v684_v62  ;;  %v812_v62 = vld [vmem:[#allocation3 + $0x7b8] sm:$0xff] }
 0x1de   :  { %1765 = vmatmul.mubr.f32.gmra.mrb[58].mxu0 %v683_v63 }
 0x1df   :  { %2663 = vmatmul.mubr.f32.gmra.mrb[58].mxu1 %v683_v63  ;;  %1770 = vmatprep.mubr.f32.mxu0 %v688_v0  ;;  %v811_v63 = vld [vmem:[#allocation3 + $0x7b0] sm:$0xff] }
 0x1e0   :  { %2668 = vmatprep.mubr.f32.mxu1 %v688_v0  ;;  %v816_v0 = vld [vmem:[#allocation3 + $0x7d8] sm:$0xff] }
 0x1e2   :  { %1771 = vmatmul.mubr.f32.gmra.mrb[60].mxu0 %v687_v1 }
 0x1e3   :  { %2669 = vmatmul.mubr.f32.gmra.mrb[60].mxu1 %v687_v1  ;;  %1776 = vmatprep.mubr.f32.mxu0 %v692_v2  ;;  %v815_v1 = vld [vmem:[#allocation3 + $0x7d0] sm:$0xff] }
 0x1e4   :  { %2674 = vmatprep.mubr.f32.mxu1 %v692_v2  ;;  %v820_v2 = vld [vmem:[#allocation3 + $0x7f8] sm:$0xff] }
 0x1e6   :  { %1777 = vmatmul.mubr.f32.gmra.mrb[62].mxu0 %v691_v3 }
 0x1e7   :  { %2675 = vmatmul.mubr.f32.gmra.mrb[62].mxu1 %v691_v3  ;;  %1782 = vmatprep.mubr.f32.mxu0 %v696_v4  ;;  %v819_v3 = vld [vmem:[#allocation3 + $0x7f0] sm:$0xff] }
 0x1e8   :  { %2680 = vmatprep.mubr.f32.mxu1 %v696_v4  ;;  %v6845_v4 = vmov 0.0  }
 0x1ea   :  { %1783 = vmatmul.mubr.f32.gmra.mrb[64].mxu0 %v695_v5 }
 0x1eb   :  { %2681 = vmatmul.mubr.f32.gmra.mrb[64].mxu1 %v695_v5  ;;  %1788 = vmatprep.mubr.f32.mxu0 %v700_v6  ;;  %v3388_v5 = vld [vmem:[%s7652_s3] sm:$0xff] }
 0x1ec   :  { %2686 = vmatprep.mubr.f32.mxu1 %v700_v6  ;;  %v3389_v6 = vld [vmem:[%s7652_s3 + $0x8] sm:$0xff] }
 0x1ee   :  { %1789 = vmatmul.mubr.f32.gmra.mrb[66].mxu0 %v699_v7 }
 0x1ef   :  { %2687 = vmatmul.mubr.f32.gmra.mrb[66].mxu1 %v699_v7  ;;  %1794 = vmatprep.mubr.f32.mxu0 %v704_v8  ;;  %v3390_v7 = vld [vmem:[%s7652_s3 + $0x10] sm:$0xff] }
 0x1f0   :  { %2692 = vmatprep.mubr.f32.mxu1 %v704_v8  ;;  %v3391_v8 = vld [vmem:[%s7652_s3 + $0x18] sm:$0xff] }
 0x1f2   :  { %1795 = vmatmul.mubr.f32.gmra.mrb[68].mxu0 %v703_v9 }
 0x1f3   :  { %2693 = vmatmul.mubr.f32.gmra.mrb[68].mxu1 %v703_v9  ;;  %1800 = vmatprep.mubr.f32.mxu0 %v708_v10  ;;  %v3392_v9 = vld [vmem:[%s7652_s3 + $0x20] sm:$0xff] }
 0x1f4   :  { %2698 = vmatprep.mubr.f32.mxu1 %v708_v10  ;;  %v3393_v10 = vld [vmem:[%s7652_s3 + $0x28] sm:$0xff] }
 0x1f6   :  { %1801 = vmatmul.mubr.f32.gmra.mrb[70].mxu0 %v707_v11 }
 0x1f7   :  { %2699 = vmatmul.mubr.f32.gmra.mrb[70].mxu1 %v707_v11  ;;  %1806 = vmatprep.mubr.f32.mxu0 %v712_v12  ;;  %v3394_v11 = vld [vmem:[%s7652_s3 + $0x30] sm:$0xff] }
 0x1f8   :  { %2704 = vmatprep.mubr.f32.mxu1 %v712_v12  ;;  %v3395_v12 = vld [vmem:[%s7652_s3 + $0x38] sm:$0xff] }
 0x1fa   :  { %1807 = vmatmul.mubr.f32.gmra.mrb[72].mxu0 %v711_v13 }
 0x1fb   :  { %2705 = vmatmul.mubr.f32.gmra.mrb[72].mxu1 %v711_v13  ;;  %1812 = vmatprep.mubr.f32.mxu0 %v716_v14  ;;  %v3396_v13 = vld [vmem:[%s7652_s3 + $0x40] sm:$0xff] }
 0x1fc   :  { %2710 = vmatprep.mubr.f32.mxu1 %v716_v14  ;;  %v3397_v14 = vld [vmem:[%s7652_s3 + $0x48] sm:$0xff] }
 0x1fe   :  { %1813 = vmatmul.mubr.f32.gmra.mrb[74].mxu0 %v715_v15 }
 0x1ff   :  { %2711 = vmatmul.mubr.f32.gmra.mrb[74].mxu1 %v715_v15  ;;  %1818 = vmatprep.mubr.f32.mxu0 %v720_v16  ;;  %v3398_v15 = vld [vmem:[%s7652_s3 + $0x50] sm:$0xff] }
 0x200   :  { %2716 = vmatprep.mubr.f32.mxu1 %v720_v16  ;;  %v3399_v16 = vld [vmem:[%s7652_s3 + $0x58] sm:$0xff] }
 0x202   :  { %1819 = vmatmul.mubr.f32.gmra.mrb[76].mxu0 %v719_v17 }
 0x203   :  { %2717 = vmatmul.mubr.f32.gmra.mrb[76].mxu1 %v719_v17  ;;  %1824 = vmatprep.mubr.f32.mxu0 %v724_v18  ;;  %v3400_v17 = vld [vmem:[%s7652_s3 + $0x60] sm:$0xff] }
 0x204   :  { %2722 = vmatprep.mubr.f32.mxu1 %v724_v18  ;;  %v3401_v18 = vld [vmem:[%s7652_s3 + $0x68] sm:$0xff] }
 0x206   :  { %1825 = vmatmul.mubr.f32.gmra.mrb[78].mxu0 %v723_v19 }
 0x207   :  { %2723 = vmatmul.mubr.f32.gmra.mrb[78].mxu1 %v723_v19  ;;  %1830 = vmatprep.mubr.f32.mxu0 %v728_v20  ;;  %v3402_v19 = vld [vmem:[%s7652_s3 + $0x70] sm:$0xff] }
 0x208   :  { %2728 = vmatprep.mubr.f32.mxu1 %v728_v20  ;;  %v3403_v20 = vld [vmem:[%s7652_s3 + $0x78] sm:$0xff] }
 0x20a   :  { %1831 = vmatmul.mubr.f32.gmra.mrb[80].mxu0 %v727_v21 }
 0x20b   :  { %2729 = vmatmul.mubr.f32.gmra.mrb[80].mxu1 %v727_v21  ;;  %1836 = vmatprep.mubr.f32.mxu0 %v732_v22  ;;  %v3404_v21 = vld [vmem:[%s7652_s3 + $0x80] sm:$0xff] }
 0x20c   :  { %2734 = vmatprep.mubr.f32.mxu1 %v732_v22  ;;  %v3405_v22 = vld [vmem:[%s7652_s3 + $0x88] sm:$0xff] }
 0x20e   :  { %1837 = vmatmul.mubr.f32.gmra.mrb[82].mxu0 %v731_v23 }
 0x20f   :  { %2735 = vmatmul.mubr.f32.gmra.mrb[82].mxu1 %v731_v23  ;;  %1842 = vmatprep.mubr.f32.mxu0 %v736_v24  ;;  %v3406_v23 = vld [vmem:[%s7652_s3 + $0x90] sm:$0xff] }
 0x210   :  { %2740 = vmatprep.mubr.f32.mxu1 %v736_v24  ;;  %v3407_v24 = vld [vmem:[%s7652_s3 + $0x98] sm:$0xff] }
 0x212   :  { %1843 = vmatmul.mubr.f32.gmra.mrb[84].mxu0 %v735_v25 }
 0x213   :  { %2741 = vmatmul.mubr.f32.gmra.mrb[84].mxu1 %v735_v25  ;;  %1848 = vmatprep.mubr.f32.mxu0 %v740_v26  ;;  %v3408_v25 = vld [vmem:[%s7652_s3 + $0xa0] sm:$0xff] }
 0x214   :  { %2746 = vmatprep.mubr.f32.mxu1 %v740_v26  ;;  %v3409_v26 = vld [vmem:[%s7652_s3 + $0xa8] sm:$0xff] }
 0x216   :  { %1849 = vmatmul.mubr.f32.gmra.mrb[86].mxu0 %v739_v27 }
 0x217   :  { %2747 = vmatmul.mubr.f32.gmra.mrb[86].mxu1 %v739_v27  ;;  %1854 = vmatprep.mubr.f32.mxu0 %v744_v28  ;;  %v3410_v27 = vld [vmem:[%s7652_s3 + $0xb0] sm:$0xff] }
 0x218   :  { %2752 = vmatprep.mubr.f32.mxu1 %v744_v28  ;;  %v3411_v28 = vld [vmem:[%s7652_s3 + $0xb8] sm:$0xff] }
 0x21a   :  { %1855 = vmatmul.mubr.f32.gmra.mrb[88].mxu0 %v743_v29 }
 0x21b   :  { %2753 = vmatmul.mubr.f32.gmra.mrb[88].mxu1 %v743_v29  ;;  %1860 = vmatprep.mubr.f32.mxu0 %v748_v30  ;;  %v3412_v29 = vld [vmem:[%s7652_s3 + $0xc0] sm:$0xff] }
 0x21c   :  { %2758 = vmatprep.mubr.f32.mxu1 %v748_v30  ;;  %v3413_v30 = vld [vmem:[%s7652_s3 + $0xc8] sm:$0xff] }
 0x21e   :  { %1861 = vmatmul.mubr.f32.gmra.mrb[90].mxu0 %v747_v31 }
 0x21f   :  { %2759 = vmatmul.mubr.f32.gmra.mrb[90].mxu1 %v747_v31  ;;  %1866 = vmatprep.mubr.f32.mxu0 %v752_v32  ;;  %v3414_v31 = vld [vmem:[%s7652_s3 + $0xd0] sm:$0xff] }
 0x220   :  { %2764 = vmatprep.mubr.f32.mxu1 %v752_v32  ;;  %v3415_v32 = vld [vmem:[%s7652_s3 + $0xd8] sm:$0xff] }
 0x222   :  { %1867 = vmatmul.mubr.f32.gmra.mrb[92].mxu0 %v751_v33 }
 0x223   :  { %2765 = vmatmul.mubr.f32.gmra.mrb[92].mxu1 %v751_v33  ;;  %1872 = vmatprep.mubr.f32.mxu0 %v756_v34  ;;  %v3416_v33 = vld [vmem:[%s7652_s3 + $0xe0] sm:$0xff] }
 0x224   :  { %2770 = vmatprep.mubr.f32.mxu1 %v756_v34  ;;  %v3417_v34 = vld [vmem:[%s7652_s3 + $0xe8] sm:$0xff] }
 0x226   :  { %1873 = vmatmul.mubr.f32.gmra.mrb[94].mxu0 %v755_v35 }
 0x227   :  { %2771 = vmatmul.mubr.f32.gmra.mrb[94].mxu1 %v755_v35  ;;  %1878 = vmatprep.mubr.f32.mxu0 %v760_v36  ;;  %v3418_v35 = vld [vmem:[%s7652_s3 + $0xf0] sm:$0xff] }
 0x228   :  { %2776 = vmatprep.mubr.f32.mxu1 %v760_v36  ;;  %v3419_v36 = vld [vmem:[%s7652_s3 + $0xf8] sm:$0xff] }
 0x22a   :  { %1879 = vmatmul.mubr.f32.gmra.mrb[96].mxu0 %v759_v37 }
 0x22b   :  { %2777 = vmatmul.mubr.f32.gmra.mrb[96].mxu1 %v759_v37  ;;  %1884 = vmatprep.mubr.f32.mxu0 %v764_v38  ;;  %v3420_v37 = vld [vmem:[%s7652_s3 + $0x100] sm:$0xff] }
 0x22c   :  { %2782 = vmatprep.mubr.f32.mxu1 %v764_v38  ;;  %v3421_v38 = vld [vmem:[%s7652_s3 + $0x108] sm:$0xff] }
 0x22e   :  { %1885 = vmatmul.mubr.f32.gmra.mrb[98].mxu0 %v763_v39 }
 0x22f   :  { %2783 = vmatmul.mubr.f32.gmra.mrb[98].mxu1 %v763_v39  ;;  %1890 = vmatprep.mubr.f32.mxu0 %v768_v40  ;;  %v3422_v39 = vld [vmem:[%s7652_s3 + $0x110] sm:$0xff] }
 0x230   :  { %2788 = vmatprep.mubr.f32.mxu1 %v768_v40  ;;  %v3423_v40 = vld [vmem:[%s7652_s3 + $0x118] sm:$0xff] }
 0x232   :  { %1891 = vmatmul.mubr.f32.gmra.mrb[100].mxu0 %v767_v41 }
 0x233   :  { %2789 = vmatmul.mubr.f32.gmra.mrb[100].mxu1 %v767_v41  ;;  %1896 = vmatprep.mubr.f32.mxu0 %v772_v42  ;;  %v3424_v41 = vld [vmem:[%s7652_s3 + $0x120] sm:$0xff] }
 0x234   :  { %2794 = vmatprep.mubr.f32.mxu1 %v772_v42  ;;  %v3425_v42 = vld [vmem:[%s7652_s3 + $0x128] sm:$0xff] }
 0x236   :  { %1897 = vmatmul.mubr.f32.gmra.mrb[102].mxu0 %v771_v43 }
 0x237   :  { %2795 = vmatmul.mubr.f32.gmra.mrb[102].mxu1 %v771_v43  ;;  %1902 = vmatprep.mubr.f32.mxu0 %v776_v44  ;;  %v3426_v43 = vld [vmem:[%s7652_s3 + $0x130] sm:$0xff] }
 0x238   :  { %2800 = vmatprep.mubr.f32.mxu1 %v776_v44  ;;  %v3427_v44 = vld [vmem:[%s7652_s3 + $0x138] sm:$0xff] }
 0x23a   :  { %1903 = vmatmul.mubr.f32.gmra.mrb[104].mxu0 %v775_v45 }
 0x23b   :  { %2801 = vmatmul.mubr.f32.gmra.mrb[104].mxu1 %v775_v45  ;;  %1908 = vmatprep.mubr.f32.mxu0 %v780_v46  ;;  %v3428_v45 = vld [vmem:[%s7652_s3 + $0x140] sm:$0xff] }
 0x23c   :  { %2806 = vmatprep.mubr.f32.mxu1 %v780_v46  ;;  %v3429_v46 = vld [vmem:[%s7652_s3 + $0x148] sm:$0xff] }
 0x23e   :  { %1909 = vmatmul.mubr.f32.gmra.mrb[106].mxu0 %v779_v47 }
 0x23f   :  { %2807 = vmatmul.mubr.f32.gmra.mrb[106].mxu1 %v779_v47  ;;  %1914 = vmatprep.mubr.f32.mxu0 %v784_v48  ;;  %v3430_v47 = vld [vmem:[%s7652_s3 + $0x150] sm:$0xff] }
 0x240   :  { %2812 = vmatprep.mubr.f32.mxu1 %v784_v48  ;;  %v3431_v48 = vld [vmem:[%s7652_s3 + $0x158] sm:$0xff] }
 0x242   :  { %1915 = vmatmul.mubr.f32.gmra.mrb[108].mxu0 %v783_v49 }
 0x243   :  { %2813 = vmatmul.mubr.f32.gmra.mrb[108].mxu1 %v783_v49  ;;  %1920 = vmatprep.mubr.f32.mxu0 %v788_v50  ;;  %v3432_v49 = vld [vmem:[%s7652_s3 + $0x160] sm:$0xff] }
 0x244   :  { %2818 = vmatprep.mubr.f32.mxu1 %v788_v50  ;;  %v3433_v50 = vld [vmem:[%s7652_s3 + $0x168] sm:$0xff] }
 0x246   :  { %1921 = vmatmul.mubr.f32.gmra.mrb[110].mxu0 %v787_v51 }
 0x247   :  { %2819 = vmatmul.mubr.f32.gmra.mrb[110].mxu1 %v787_v51  ;;  %1926 = vmatprep.mubr.f32.mxu0 %v792_v52  ;;  %v3434_v51 = vld [vmem:[%s7652_s3 + $0x170] sm:$0xff] }
 0x248   :  { %2824 = vmatprep.mubr.f32.mxu1 %v792_v52  ;;  %v3435_v52 = vld [vmem:[%s7652_s3 + $0x178] sm:$0xff] }
 0x24a   :  { %1927 = vmatmul.mubr.f32.gmra.mrb[112].mxu0 %v791_v53 }
 0x24b   :  { %2825 = vmatmul.mubr.f32.gmra.mrb[112].mxu1 %v791_v53  ;;  %1932 = vmatprep.mubr.f32.mxu0 %v796_v54  ;;  %v3436_v53 = vld [vmem:[%s7652_s3 + $0x180] sm:$0xff] }
 0x24c   :  { %2830 = vmatprep.mubr.f32.mxu1 %v796_v54  ;;  %v3437_v54 = vld [vmem:[%s7652_s3 + $0x188] sm:$0xff] }
 0x24e   :  { %1933 = vmatmul.mubr.f32.gmra.mrb[114].mxu0 %v795_v55 }
 0x24f   :  { %2831 = vmatmul.mubr.f32.gmra.mrb[114].mxu1 %v795_v55  ;;  %1938 = vmatprep.mubr.f32.mxu0 %v800_v56  ;;  %v4805_v55 = vlaneseq }
 0x250   :  { %2836 = vmatprep.mubr.f32.mxu1 %v800_v56  ;;  %v3438_v56 = vld [vmem:[%s7652_s3 + $0x190] sm:$0xff] }
 0x252   :  { %1939 = vmatmul.mubr.f32.gmra.mrb[116].mxu0 %v799_v57 }
 0x253   :  { %2837 = vmatmul.mubr.f32.gmra.mrb[116].mxu1 %v799_v57  ;;  %1944 = vmatprep.mubr.f32.mxu0 %v804_v58  ;;  %v4806_v57 = vshrl.u32 %v4805_v55, 7 }
 0x254   :  { %2842 = vmatprep.mubr.f32.mxu1 %v804_v58  ;;  %v3439_v58 = vld [vmem:[%s7652_s3 + $0x198] sm:$0xff] }
 0x256   :  { %1945 = vmatmul.mubr.f32.gmra.mrb[118].mxu0 %v803_v59 }
 0x257   :  { %2843 = vmatmul.mubr.f32.gmra.mrb[118].mxu1 %v803_v59  ;;  %1950 = vmatprep.mubr.f32.mxu0 %v808_v60  ;;  %v4807_v59 = vsub.s32 0, %v4806_v57 }
 0x258   :  { %2848 = vmatprep.mubr.f32.mxu1 %v808_v60  ;;  %v3440_v60 = vld [vmem:[%s7652_s3 + $0x1a0] sm:$0xff] }
 0x25a   :  { %1951 = vmatmul.mubr.f32.gmra.mrb[120].mxu0 %v807_v61 }
 0x25b   :  { %2849 = vmatmul.mubr.f32.gmra.mrb[120].mxu1 %v807_v61  ;;  %1956 = vmatprep.mubr.f32.mxu0 %v812_v62  ;;  %v4803_v61 = vld [vmem:[%s7651_s2] sm:$0xf] }
 0x25c   :  { %2854 = vmatprep.mubr.f32.mxu1 %v812_v62  ;;  %v4815_v62 = vsub.s32 2, %v4806_v57 }
 0x25e   :  { %1957 = vmatmul.mubr.f32.gmra.mrb[122].mxu0 %v811_v63 }
 0x25f   :  { %2855 = vmatmul.mubr.f32.gmra.mrb[122].mxu1 %v811_v63  ;;  %1962 = vmatprep.mubr.f32.mxu0 %v816_v0  ;;  %v4811_v63 = vsub.s32 1, %v4806_v57 }
 0x260   :  { %2860 = vmatprep.mubr.f32.mxu1 %v816_v0  ;;  %v4819_v0 = vsub.s32 3, %v4806_v57 }
 0x262   :  { %1963 = vmatmul.mubr.f32.gmra.mrb[124].mxu0 %v815_v1 }
 0x263   :  { %2861 = vmatmul.mubr.f32.gmra.mrb[124].mxu1 %v815_v1  ;;  %1968 = vmatprep.mubr.f32.mxu0 %v820_v2  ;;  %v7292_v1 = vrot.slane %v4803_v61, %v4807_v59  ;;  %v3447_v59 = vld [vmem:[%s7652_s3 + $0x1d8] sm:$0xff] }
 0x264   :  { %2866 = vmatprep.mubr.f32.mxu1 %v820_v2  ;;  %v7296_v2 = vrot.slane %v4803_v61, %v4815_v62 }
 0x266   :  { %1969 = vmatmul.mubr.f32.gmra.mrb[126].mxu0 %v819_v3 }
 0x267   :  { %2867 = vmatmul.mubr.f32.gmra.mrb[126].mxu1 %v819_v3  ;;  %3713 = vmatprep.mubr.f32.mxu0 %v6845_v4  ;;  %v7298_v3 = vrot.slane %v4803_v61, %v4811_v63 }
 0x268   :  { %4162 = vmatprep.mubr.f32.mxu1 %v6845_v4 }
 0x26a   :  { %5611 = vmatmul.mubr.msk.f32.vlgmr.msra.gmra.mrb[0].mxu0 %vm3456_vm0, %v3388_v5 }
 0x26b   :  { %5675 = vmatmul.mubr.msk.f32.vlgmr.msra.gmra.mrb[0].mxu1 %vm3456_vm0, %v3388_v5  ;;  %3719 = vmatprep.mubr.f32.mxu0 %v6845_v4  ;;  %v3441_v5 = vld [vmem:[%s7652_s3 + $0x1a8] sm:$0xff] }
 0x26c   :  { %4168 = vmatprep.mubr.f32.mxu1 %v6845_v4 }
 0x26e   :  { %5612 = vmatmul.mubr.msk.f32.gmra.mrb[2].mxu0 %vm3456_vm0, %v3389_v6 }
 0x26f   :  { %5676 = vmatmul.mubr.msk.f32.gmra.mrb[2].mxu1 %vm3456_vm0, %v3389_v6  ;;  %3725 = vmatprep.mubr.f32.mxu0 %v6845_v4  ;;  %v7304_v6 = vrot.slane %v4803_v61, %v4819_v0 }
 0x270   :  { %4174 = vmatprep.mubr.f32.mxu1 %v6845_v4 }
 0x272   :  { %5613 = vmatmul.mubr.msk.f32.gmra.mrb[4].mxu0 %vm3456_vm0, %v3390_v7 }
 0x273   :  { %5677 = vmatmul.mubr.msk.f32.gmra.mrb[4].mxu1 %vm3456_vm0, %v3390_v7  ;;  %3731 = vmatprep.mubr.f32.mxu0 %v6845_v4 }
 0x274   :  { %4180 = vmatprep.mubr.f32.mxu1 %v6845_v4 }
 0x276   :  { %5614 = vmatmul.mubr.msk.f32.gmra.mrb[6].mxu0 %vm3456_vm0, %v3391_v8 }
 0x277   :  { %5678 = vmatmul.mubr.msk.f32.gmra.mrb[6].mxu1 %vm3456_vm0, %v3391_v8  ;;  %3737 = vmatprep.mubr.f32.mxu0 %v6845_v4 }
 0x278   :  { %4186 = vmatprep.mubr.f32.mxu1 %v6845_v4 }
 0x27a   :  { %5615 = vmatmul.mubr.msk.f32.gmra.mrb[8].mxu0 %vm3456_vm0, %v3392_v9 }
 0x27b   :  { %5679 = vmatmul.mubr.msk.f32.gmra.mrb[8].mxu1 %vm3456_vm0, %v3392_v9  ;;  %3743 = vmatprep.mubr.f32.mxu0 %v6845_v4 }
 0x27c   :  { %4192 = vmatprep.mubr.f32.mxu1 %v6845_v4 }
 0x27e   :  { %5616 = vmatmul.mubr.msk.f32.gmra.mrb[10].mxu0 %vm3456_vm0, %v3393_v10 }
 0x27f   :  { %5680 = vmatmul.mubr.msk.f32.gmra.mrb[10].mxu1 %vm3456_vm0, %v3393_v10  ;;  %3749 = vmatprep.mubr.f32.mxu0 %v6845_v4 }
 0x280   :  { %4198 = vmatprep.mubr.f32.mxu1 %v6845_v4 }
 0x282   :  { %5617 = vmatmul.mubr.msk.f32.gmra.mrb[12].mxu0 %vm3456_vm0, %v3394_v11 }
 0x283   :  { %5681 = vmatmul.mubr.msk.f32.gmra.mrb[12].mxu1 %vm3456_vm0, %v3394_v11  ;;  %3755 = vmatprep.mubr.f32.mxu0 %v6845_v4 }
 0x284   :  { %4204 = vmatprep.mubr.f32.mxu1 %v6845_v4 }
 0x286   :  { %5618 = vmatmul.mubr.msk.f32.gmra.mrb[14].mxu0 %vm3456_vm0, %v3395_v12 }
 0x287   :  { %5682 = vmatmul.mubr.msk.f32.gmra.mrb[14].mxu1 %vm3456_vm0, %v3395_v12  ;;  %3761 = vmatprep.mubr.f32.mxu0 %v6845_v4 }
 0x288   :  { %4210 = vmatprep.mubr.f32.mxu1 %v6845_v4 }
 0x28a   :  { %5619 = vmatmul.mubr.msk.f32.gmra.mrb[16].mxu0 %vm3456_vm0, %v3396_v13 }
 0x28b   :  { %5683 = vmatmul.mubr.msk.f32.gmra.mrb[16].mxu1 %vm3456_vm0, %v3396_v13  ;;  %3767 = vmatprep.mubr.f32.mxu0 %v6845_v4 }
 0x28c   :  { %4216 = vmatprep.mubr.f32.mxu1 %v6845_v4 }
 0x28e   :  { %5620 = vmatmul.mubr.msk.f32.gmra.mrb[18].mxu0 %vm3456_vm0, %v3397_v14 }
 0x28f   :  { %5684 = vmatmul.mubr.msk.f32.gmra.mrb[18].mxu1 %vm3456_vm0, %v3397_v14  ;;  %3773 = vmatprep.mubr.f32.mxu0 %v6845_v4  ;;  %v3442_v14 = vld [vmem:[%s7652_s3 + $0x1b0] sm:$0xff] }
 0x290   :  { %4222 = vmatprep.mubr.f32.mxu1 %v6845_v4 }
 0x292   :  { %5621 = vmatmul.mubr.msk.f32.gmra.mrb[20].mxu0 %vm3456_vm0, %v3398_v15 }
 0x293   :  { %5685 = vmatmul.mubr.msk.f32.gmra.mrb[20].mxu1 %vm3456_vm0, %v3398_v15  ;;  %3779 = vmatprep.mubr.f32.mxu0 %v6845_v4 }
 0x294   :  { %4228 = vmatprep.mubr.f32.mxu1 %v6845_v4 }
 0x296   :  { %5622 = vmatmul.mubr.msk.f32.gmra.mrb[22].mxu0 %vm3456_vm0, %v3399_v16 }
 0x297   :  { %5686 = vmatmul.mubr.msk.f32.gmra.mrb[22].mxu1 %vm3456_vm0, %v3399_v16  ;;  %3785 = vmatprep.mubr.f32.mxu0 %v6845_v4 }
 0x298   :  { %4234 = vmatprep.mubr.f32.mxu1 %v6845_v4 }
 0x29a   :  { %5623 = vmatmul.mubr.msk.f32.gmra.mrb[24].mxu0 %vm3456_vm0, %v3400_v17 }
 0x29b   :  { %5687 = vmatmul.mubr.msk.f32.gmra.mrb[24].mxu1 %vm3456_vm0, %v3400_v17  ;;  %3791 = vmatprep.mubr.f32.mxu0 %v6845_v4 }
 0x29c   :  { %4240 = vmatprep.mubr.f32.mxu1 %v6845_v4 }
 0x29e   :  { %5624 = vmatmul.mubr.msk.f32.gmra.mrb[26].mxu0 %vm3456_vm0, %v3401_v18 }
 0x29f   :  { %5688 = vmatmul.mubr.msk.f32.gmra.mrb[26].mxu1 %vm3456_vm0, %v3401_v18  ;;  %3797 = vmatprep.mubr.f32.mxu0 %v6845_v4 }
 0x2a0   :  { %4246 = vmatprep.mubr.f32.mxu1 %v6845_v4 }
 0x2a2   :  { %5625 = vmatmul.mubr.msk.f32.gmra.mrb[28].mxu0 %vm3456_vm0, %v3402_v19 }
 0x2a3   :  { %5689 = vmatmul.mubr.msk.f32.gmra.mrb[28].mxu1 %vm3456_vm0, %v3402_v19  ;;  %3803 = vmatprep.mubr.f32.mxu0 %v6845_v4 }
 0x2a4   :  { %4252 = vmatprep.mubr.f32.mxu1 %v6845_v4 }
 0x2a6   :  { %5626 = vmatmul.mubr.msk.f32.gmra.mrb[30].mxu0 %vm3456_vm0, %v3403_v20 }
 0x2a7   :  { %5690 = vmatmul.mubr.msk.f32.gmra.mrb[30].mxu1 %vm3456_vm0, %v3403_v20  ;;  %3809 = vmatprep.mubr.f32.mxu0 %v6845_v4 }
 0x2a8   :  { %4258 = vmatprep.mubr.f32.mxu1 %v6845_v4 }
 0x2aa   :  { %5627 = vmatmul.mubr.msk.f32.gmra.mrb[32].mxu0 %vm3456_vm0, %v3404_v21 }
 0x2ab   :  { %5691 = vmatmul.mubr.msk.f32.gmra.mrb[32].mxu1 %vm3456_vm0, %v3404_v21  ;;  %3815 = vmatprep.mubr.f32.mxu0 %v6845_v4 }
 0x2ac   :  { %4264 = vmatprep.mubr.f32.mxu1 %v6845_v4 }
 0x2ae   :  { %5628 = vmatmul.mubr.msk.f32.gmra.mrb[34].mxu0 %vm3456_vm0, %v3405_v22 }
 0x2af   :  { %5692 = vmatmul.mubr.msk.f32.gmra.mrb[34].mxu1 %vm3456_vm0, %v3405_v22  ;;  %3821 = vmatprep.mubr.f32.mxu0 %v6845_v4 }
 0x2b0   :  { %4270 = vmatprep.mubr.f32.mxu1 %v6845_v4 }
 0x2b2   :  { %5629 = vmatmul.mubr.msk.f32.gmra.mrb[36].mxu0 %vm3456_vm0, %v3406_v23 }
 0x2b3   :  { %5693 = vmatmul.mubr.msk.f32.gmra.mrb[36].mxu1 %vm3456_vm0, %v3406_v23  ;;  %3827 = vmatprep.mubr.f32.mxu0 %v6845_v4  ;;  %v3443_v23 = vld [vmem:[%s7652_s3 + $0x1b8] sm:$0xff] }
 0x2b4   :  { %4276 = vmatprep.mubr.f32.mxu1 %v6845_v4 }
 0x2b6   :  { %5630 = vmatmul.mubr.msk.f32.gmra.mrb[38].mxu0 %vm3456_vm0, %v3407_v24 }
 0x2b7   :  { %5694 = vmatmul.mubr.msk.f32.gmra.mrb[38].mxu1 %vm3456_vm0, %v3407_v24  ;;  %3833 = vmatprep.mubr.f32.mxu0 %v6845_v4 }
 0x2b8   :  { %4282 = vmatprep.mubr.f32.mxu1 %v6845_v4 }
 0x2ba   :  { %5631 = vmatmul.mubr.msk.f32.gmra.mrb[40].mxu0 %vm3456_vm0, %v3408_v25 }
 0x2bb   :  { %5695 = vmatmul.mubr.msk.f32.gmra.mrb[40].mxu1 %vm3456_vm0, %v3408_v25  ;;  %3839 = vmatprep.mubr.f32.mxu0 %v6845_v4 }
 0x2bc   :  { %4288 = vmatprep.mubr.f32.mxu1 %v6845_v4 }
 0x2be   :  { %5632 = vmatmul.mubr.msk.f32.gmra.mrb[42].mxu0 %vm3456_vm0, %v3409_v26 }
 0x2bf   :  { %5696 = vmatmul.mubr.msk.f32.gmra.mrb[42].mxu1 %vm3456_vm0, %v3409_v26  ;;  %3845 = vmatprep.mubr.f32.mxu0 %v6845_v4 }
 0x2c0   :  { %4294 = vmatprep.mubr.f32.mxu1 %v6845_v4 }
 0x2c2   :  { %5633 = vmatmul.mubr.msk.f32.gmra.mrb[44].mxu0 %vm3456_vm0, %v3410_v27 }
 0x2c3   :  { %5697 = vmatmul.mubr.msk.f32.gmra.mrb[44].mxu1 %vm3456_vm0, %v3410_v27  ;;  %3851 = vmatprep.mubr.f32.mxu0 %v6845_v4 }
 0x2c4   :  { %4300 = vmatprep.mubr.f32.mxu1 %v6845_v4 }
 0x2c6   :  { %5634 = vmatmul.mubr.msk.f32.gmra.mrb[46].mxu0 %vm3456_vm0, %v3411_v28 }
 0x2c7   :  { %5698 = vmatmul.mubr.msk.f32.gmra.mrb[46].mxu1 %vm3456_vm0, %v3411_v28  ;;  %3857 = vmatprep.mubr.f32.mxu0 %v6845_v4 }
 0x2c8   :  { %4306 = vmatprep.mubr.f32.mxu1 %v6845_v4 }
 0x2ca   :  { %5635 = vmatmul.mubr.msk.f32.gmra.mrb[48].mxu0 %vm3456_vm0, %v3412_v29 }
 0x2cb   :  { %5699 = vmatmul.mubr.msk.f32.gmra.mrb[48].mxu1 %vm3456_vm0, %v3412_v29  ;;  %3863 = vmatprep.mubr.f32.mxu0 %v6845_v4 }
 0x2cc   :  { %4312 = vmatprep.mubr.f32.mxu1 %v6845_v4 }
 0x2ce   :  { %5636 = vmatmul.mubr.msk.f32.gmra.mrb[50].mxu0 %vm3456_vm0, %v3413_v30 }
 0x2cf   :  { %5700 = vmatmul.mubr.msk.f32.gmra.mrb[50].mxu1 %vm3456_vm0, %v3413_v30  ;;  %3869 = vmatprep.mubr.f32.mxu0 %v6845_v4 }
 0x2d0   :  { %4318 = vmatprep.mubr.f32.mxu1 %v6845_v4 }
 0x2d2   :  { %5637 = vmatmul.mubr.msk.f32.gmra.mrb[52].mxu0 %vm3456_vm0, %v3414_v31 }
 0x2d3   :  { %5701 = vmatmul.mubr.msk.f32.gmra.mrb[52].mxu1 %vm3456_vm0, %v3414_v31  ;;  %3875 = vmatprep.mubr.f32.mxu0 %v6845_v4 }
 0x2d4   :  { %4324 = vmatprep.mubr.f32.mxu1 %v6845_v4 }
 0x2d6   :  { %5638 = vmatmul.mubr.msk.f32.gmra.mrb[54].mxu0 %vm3456_vm0, %v3415_v32 }
 0x2d7   :  { %5702 = vmatmul.mubr.msk.f32.gmra.mrb[54].mxu1 %vm3456_vm0, %v3415_v32  ;;  %3881 = vmatprep.mubr.f32.mxu0 %v6845_v4  ;;  %v3444_v32 = vld [vmem:[%s7652_s3 + $0x1c0] sm:$0xff] }
 0x2d8   :  { %4330 = vmatprep.mubr.f32.mxu1 %v6845_v4 }
 0x2da   :  { %5639 = vmatmul.mubr.msk.f32.gmra.mrb[56].mxu0 %vm3456_vm0, %v3416_v33 }
 0x2db   :  { %5703 = vmatmul.mubr.msk.f32.gmra.mrb[56].mxu1 %vm3456_vm0, %v3416_v33  ;;  %3887 = vmatprep.mubr.f32.mxu0 %v6845_v4 }
 0x2dc   :  { %4336 = vmatprep.mubr.f32.mxu1 %v6845_v4 }
 0x2de   :  { %5640 = vmatmul.mubr.msk.f32.gmra.mrb[58].mxu0 %vm3456_vm0, %v3417_v34 }
 0x2df   :  { %5704 = vmatmul.mubr.msk.f32.gmra.mrb[58].mxu1 %vm3456_vm0, %v3417_v34  ;;  %3893 = vmatprep.mubr.f32.mxu0 %v6845_v4 }
 0x2e0   :  { %4342 = vmatprep.mubr.f32.mxu1 %v6845_v4 }
 0x2e2   :  { %5641 = vmatmul.mubr.msk.f32.gmra.mrb[60].mxu0 %vm3456_vm0, %v3418_v35 }
 0x2e3   :  { %5705 = vmatmul.mubr.msk.f32.gmra.mrb[60].mxu1 %vm3456_vm0, %v3418_v35  ;;  %3899 = vmatprep.mubr.f32.mxu0 %v6845_v4 }
 0x2e4   :  { %4348 = vmatprep.mubr.f32.mxu1 %v6845_v4 }
 0x2e6   :  { %5642 = vmatmul.mubr.msk.f32.gmra.mrb[62].mxu0 %vm3456_vm0, %v3419_v36 }
 0x2e7   :  { %5706 = vmatmul.mubr.msk.f32.gmra.mrb[62].mxu1 %vm3456_vm0, %v3419_v36  ;;  %3905 = vmatprep.mubr.f32.mxu0 %v6845_v4 }
 0x2e8   :  { %4354 = vmatprep.mubr.f32.mxu1 %v6845_v4 }
 0x2ea   :  { %5643 = vmatmul.mubr.msk.f32.gmra.mrb[64].mxu0 %vm3456_vm0, %v3420_v37 }
 0x2eb   :  { %5707 = vmatmul.mubr.msk.f32.gmra.mrb[64].mxu1 %vm3456_vm0, %v3420_v37  ;;  %3911 = vmatprep.mubr.f32.mxu0 %v6845_v4 }
 0x2ec   :  { %4360 = vmatprep.mubr.f32.mxu1 %v6845_v4 }
 0x2ee   :  { %5644 = vmatmul.mubr.msk.f32.gmra.mrb[66].mxu0 %vm3456_vm0, %v3421_v38 }
 0x2ef   :  { %5708 = vmatmul.mubr.msk.f32.gmra.mrb[66].mxu1 %vm3456_vm0, %v3421_v38  ;;  %3917 = vmatprep.mubr.f32.mxu0 %v6845_v4 }
 0x2f0   :  { %4366 = vmatprep.mubr.f32.mxu1 %v6845_v4 }
 0x2f2   :  { %5645 = vmatmul.mubr.msk.f32.gmra.mrb[68].mxu0 %vm3456_vm0, %v3422_v39 }
 0x2f3   :  { %5709 = vmatmul.mubr.msk.f32.gmra.mrb[68].mxu1 %vm3456_vm0, %v3422_v39  ;;  %3923 = vmatprep.mubr.f32.mxu0 %v6845_v4 }
 0x2f4   :  { %4372 = vmatprep.mubr.f32.mxu1 %v6845_v4 }
 0x2f6   :  { %5646 = vmatmul.mubr.msk.f32.gmra.mrb[70].mxu0 %vm3456_vm0, %v3423_v40 }
 0x2f7   :  { %5710 = vmatmul.mubr.msk.f32.gmra.mrb[70].mxu1 %vm3456_vm0, %v3423_v40  ;;  %3929 = vmatprep.mubr.f32.mxu0 %v6845_v4 }
 0x2f8   :  { %4378 = vmatprep.mubr.f32.mxu1 %v6845_v4 }
 0x2fa   :  { %5647 = vmatmul.mubr.msk.f32.gmra.mrb[72].mxu0 %vm3456_vm0, %v3424_v41 }
 0x2fb   :  { %5711 = vmatmul.mubr.msk.f32.gmra.mrb[72].mxu1 %vm3456_vm0, %v3424_v41  ;;  %3935 = vmatprep.mubr.f32.mxu0 %v6845_v4  ;;  %v3445_v41 = vld [vmem:[%s7652_s3 + $0x1c8] sm:$0xff] }
 0x2fc   :  { %4384 = vmatprep.mubr.f32.mxu1 %v6845_v4 }
 0x2fe   :  { %5648 = vmatmul.mubr.msk.f32.gmra.mrb[74].mxu0 %vm3456_vm0, %v3425_v42 }
 0x2ff   :  { %5712 = vmatmul.mubr.msk.f32.gmra.mrb[74].mxu1 %vm3456_vm0, %v3425_v42  ;;  %3941 = vmatprep.mubr.f32.mxu0 %v6845_v4 }
 0x300   :  { %4390 = vmatprep.mubr.f32.mxu1 %v6845_v4 }
 0x302   :  { %5649 = vmatmul.mubr.msk.f32.gmra.mrb[76].mxu0 %vm3456_vm0, %v3426_v43 }
 0x303   :  { %5713 = vmatmul.mubr.msk.f32.gmra.mrb[76].mxu1 %vm3456_vm0, %v3426_v43  ;;  %3947 = vmatprep.mubr.f32.mxu0 %v6845_v4 }
 0x304   :  { %4396 = vmatprep.mubr.f32.mxu1 %v6845_v4 }
 0x306   :  { %5650 = vmatmul.mubr.msk.f32.gmra.mrb[78].mxu0 %vm3456_vm0, %v3427_v44 }
 0x307   :  { %5714 = vmatmul.mubr.msk.f32.gmra.mrb[78].mxu1 %vm3456_vm0, %v3427_v44  ;;  %3953 = vmatprep.mubr.f32.mxu0 %v6845_v4 }
 0x308   :  { %4402 = vmatprep.mubr.f32.mxu1 %v6845_v4 }
 0x30a   :  { %5651 = vmatmul.mubr.msk.f32.gmra.mrb[80].mxu0 %vm3456_vm0, %v3428_v45 }
 0x30b   :  { %5715 = vmatmul.mubr.msk.f32.gmra.mrb[80].mxu1 %vm3456_vm0, %v3428_v45  ;;  %3959 = vmatprep.mubr.f32.mxu0 %v6845_v4 }
 0x30c   :  { %4408 = vmatprep.mubr.f32.mxu1 %v6845_v4 }
 0x30e   :  { %5652 = vmatmul.mubr.msk.f32.gmra.mrb[82].mxu0 %vm3456_vm0, %v3429_v46 }
 0x30f   :  { %5716 = vmatmul.mubr.msk.f32.gmra.mrb[82].mxu1 %vm3456_vm0, %v3429_v46  ;;  %3965 = vmatprep.mubr.f32.mxu0 %v6845_v4 }
 0x310   :  { %4414 = vmatprep.mubr.f32.mxu1 %v6845_v4 }
 0x312   :  { %5653 = vmatmul.mubr.msk.f32.gmra.mrb[84].mxu0 %vm3456_vm0, %v3430_v47 }
 0x313   :  { %5717 = vmatmul.mubr.msk.f32.gmra.mrb[84].mxu1 %vm3456_vm0, %v3430_v47  ;;  %3971 = vmatprep.mubr.f32.mxu0 %v6845_v4 }
 0x314   :  { %4420 = vmatprep.mubr.f32.mxu1 %v6845_v4 }
 0x316   :  { %5654 = vmatmul.mubr.msk.f32.gmra.mrb[86].mxu0 %vm3456_vm0, %v3431_v48 }
 0x317   :  { %5718 = vmatmul.mubr.msk.f32.gmra.mrb[86].mxu1 %vm3456_vm0, %v3431_v48  ;;  %3977 = vmatprep.mubr.f32.mxu0 %v6845_v4 }
 0x318   :  { %4426 = vmatprep.mubr.f32.mxu1 %v6845_v4 }
 0x31a   :  { %5655 = vmatmul.mubr.msk.f32.gmra.mrb[88].mxu0 %vm3456_vm0, %v3432_v49 }
 0x31b   :  { %5719 = vmatmul.mubr.msk.f32.gmra.mrb[88].mxu1 %vm3456_vm0, %v3432_v49  ;;  %3983 = vmatprep.mubr.f32.mxu0 %v6845_v4 }
 0x31c   :  { %4432 = vmatprep.mubr.f32.mxu1 %v6845_v4 }
 0x31e   :  { %5656 = vmatmul.mubr.msk.f32.gmra.mrb[90].mxu0 %vm3456_vm0, %v3433_v50 }
 0x31f   :  { %5720 = vmatmul.mubr.msk.f32.gmra.mrb[90].mxu1 %vm3456_vm0, %v3433_v50  ;;  %3989 = vmatprep.mubr.f32.mxu0 %v6845_v4  ;;  %v3446_v50 = vld [vmem:[%s7652_s3 + $0x1d0] sm:$0xff] }
 0x320   :  { %4438 = vmatprep.mubr.f32.mxu1 %v6845_v4 }
 0x322   :  { %5657 = vmatmul.mubr.msk.f32.gmra.mrb[92].mxu0 %vm3456_vm0, %v3434_v51 }
 0x323   :  { %5721 = vmatmul.mubr.msk.f32.gmra.mrb[92].mxu1 %vm3456_vm0, %v3434_v51  ;;  %3995 = vmatprep.mubr.f32.mxu0 %v6845_v4 }
 0x324   :  { %4444 = vmatprep.mubr.f32.mxu1 %v6845_v4 }
 0x326   :  { %5658 = vmatmul.mubr.msk.f32.gmra.mrb[94].mxu0 %vm3456_vm0, %v3435_v52 }
 0x327   :  { %5722 = vmatmul.mubr.msk.f32.gmra.mrb[94].mxu1 %vm3456_vm0, %v3435_v52  ;;  %4001 = vmatprep.mubr.f32.mxu0 %v6845_v4 }
 0x328   :  { %4450 = vmatprep.mubr.f32.mxu1 %v6845_v4 }
 0x32a   :  { %5659 = vmatmul.mubr.msk.f32.gmra.mrb[96].mxu0 %vm3456_vm0, %v3436_v53 }
 0x32b   :  { %5723 = vmatmul.mubr.msk.f32.gmra.mrb[96].mxu1 %vm3456_vm0, %v3436_v53  ;;  %4007 = vmatprep.mubr.f32.mxu0 %v6845_v4 }
 0x32c   :  { %4456 = vmatprep.mubr.f32.mxu1 %v6845_v4 }
 0x32e   :  { %5660 = vmatmul.mubr.msk.f32.gmra.mrb[98].mxu0 %vm3456_vm0, %v3437_v54 }
 0x32f   :  { %5724 = vmatmul.mubr.msk.f32.gmra.mrb[98].mxu1 %vm3456_vm0, %v3437_v54  ;;  %4013 = vmatprep.mubr.f32.mxu0 %v6845_v4 }
 0x330   :  { %4462 = vmatprep.mubr.f32.mxu1 %v6845_v4 }
 0x332   :  { %5661 = vmatmul.mubr.msk.f32.gmra.mrb[100].mxu0 %vm3456_vm0, %v3438_v56 }
 0x333   :  { %5725 = vmatmul.mubr.msk.f32.gmra.mrb[100].mxu1 %vm3456_vm0, %v3438_v56  ;;  %4019 = vmatprep.mubr.f32.mxu0 %v6845_v4 }
 0x334   :  { %4468 = vmatprep.mubr.f32.mxu1 %v6845_v4 }
 0x336   :  { %5662 = vmatmul.mubr.msk.f32.gmra.mrb[102].mxu0 %vm3456_vm0, %v3439_v58 }
 0x337   :  { %5726 = vmatmul.mubr.msk.f32.gmra.mrb[102].mxu1 %vm3456_vm0, %v3439_v58  ;;  %4025 = vmatprep.mubr.f32.mxu0 %v6845_v4 }
 0x338   :  { %4474 = vmatprep.mubr.f32.mxu1 %v6845_v4 }
 0x33a   :  { %5663 = vmatmul.mubr.msk.f32.gmra.mrb[104].mxu0 %vm3456_vm0, %v3440_v60 }
 0x33b   :  { %5727 = vmatmul.mubr.msk.f32.gmra.mrb[104].mxu1 %vm3456_vm0, %v3440_v60  ;;  %4031 = vmatprep.mubr.f32.mxu0 %v6845_v4 }
 0x33c   :  { %4480 = vmatprep.mubr.f32.mxu1 %v6845_v4 }
 0x33d   :  { %v3715_v7 = vpop.f32.mrb[0].mxu0 }
 0x33e   :  { %v5995_v8 = vadd.f32 %v7292_v1, %v3715_v7  ;;  %v4164_v9 = vpop.f32.mrb[0].mxu1  ;;  %v3717_v10 = vpop.f32.mrb[1].mxu0  ;;  %5664 = vmatmul.mubr.msk.f32.gmra.mrb[106].mxu0 %vm3456_vm0, %v3441_v5 }
 0x33f   :  { %v6123_v11 = vadd.f32 %v7296_v2, %v4164_v9  ;;  %v5996_v12 = vadd.f32 %v7298_v3, %v3717_v10  ;;  %v4166_v13 = vpop.f32.mrb[1].mxu1  ;;  %5728 = vmatmul.mubr.msk.f32.gmra.mrb[106].mxu1 %vm3456_vm0, %v3441_v5  ;;  %4037 = vmatprep.mubr.f32.mxu0 %v6845_v4  ;;  %v3448_v9 = vld [vmem:[%s7652_s3 + $0x1e0] sm:$0xff] }
 0x340   :  { %5337 = vst [vmem:[#allocation8] sm:$0xff] %v5995_v8  ;;  %v6124_v15 = vadd.f32 %v7304_v6, %v4166_v13  ;;  %4486 = vmatprep.mubr.f32.mxu1 %v6845_v4 }
 0x341   :  { %5339 = vst [vmem:[#allocation8 + $0x10] sm:$0xff] %v6123_v11  ;;  %5338 = vst [vmem:[#allocation8 + $0x8] sm:$0xff] %v5996_v12  ;;  %v3721_v16 = vpop.f32.mrb[2].mxu0 }
 0x342   :  { %5340 = vst [vmem:[#allocation8 + $0x18] sm:$0xff] %v6124_v15  ;;  %v5997_v17 = vadd.f32 %v7292_v1, %v3721_v16  ;;  %v4170_v18 = vpop.f32.mrb[2].mxu1  ;;  %v3723_v19 = vpop.f32.mrb[3].mxu0  ;;  %5665 = vmatmul.mubr.msk.f32.gmra.mrb[108].mxu0 %vm3456_vm0, %v3442_v14 }
 0x343   :  { %v6125_v20 = vadd.f32 %v7296_v2, %v4170_v18  ;;  %v5998_v21 = vadd.f32 %v7298_v3, %v3723_v19  ;;  %v4172_v22 = vpop.f32.mrb[3].mxu1  ;;  %5729 = vmatmul.mubr.msk.f32.gmra.mrb[108].mxu1 %vm3456_vm0, %v3442_v14  ;;  %4043 = vmatprep.mubr.f32.mxu0 %v6845_v4  ;;  %v3449_v18 = vld [vmem:[%s7652_s3 + $0x1e8] sm:$0xff] }
 0x344   :  { %5341 = vst [vmem:[#allocation8 + $0x20] sm:$0xff] %v5997_v17  ;;  %v6126_v24 = vadd.f32 %v7304_v6, %v4172_v22  ;;  %4492 = vmatprep.mubr.f32.mxu1 %v6845_v4 }
 0x345   :  { %5343 = vst [vmem:[#allocation8 + $0x30] sm:$0xff] %v6125_v20  ;;  %5342 = vst [vmem:[#allocation8 + $0x28] sm:$0xff] %v5998_v21  ;;  %v3727_v25 = vpop.f32.mrb[4].mxu0 }
 0x346   :  { %5344 = vst [vmem:[#allocation8 + $0x38] sm:$0xff] %v6126_v24  ;;  %v5999_v26 = vadd.f32 %v7292_v1, %v3727_v25  ;;  %v4176_v27 = vpop.f32.mrb[4].mxu1  ;;  %v3729_v28 = vpop.f32.mrb[5].mxu0  ;;  %5666 = vmatmul.mubr.msk.f32.gmra.mrb[110].mxu0 %vm3456_vm0, %v3443_v23 }
 0x347   :  { %v6127_v29 = vadd.f32 %v7296_v2, %v4176_v27  ;;  %v6000_v30 = vadd.f32 %v7298_v3, %v3729_v28  ;;  %v4178_v31 = vpop.f32.mrb[5].mxu1  ;;  %5730 = vmatmul.mubr.msk.f32.gmra.mrb[110].mxu1 %vm3456_vm0, %v3443_v23  ;;  %4049 = vmatprep.mubr.f32.mxu0 %v6845_v4  ;;  %v3450_v27 = vld [vmem:[%s7652_s3 + $0x1f0] sm:$0xff] }
 0x348   :  { %5345 = vst [vmem:[#allocation8 + $0x40] sm:$0xff] %v5999_v26  ;;  %v6128_v33 = vadd.f32 %v7304_v6, %v4178_v31  ;;  %4498 = vmatprep.mubr.f32.mxu1 %v6845_v4 }
 0x349   :  { %5347 = vst [vmem:[#allocation8 + $0x50] sm:$0xff] %v6127_v29  ;;  %5346 = vst [vmem:[#allocation8 + $0x48] sm:$0xff] %v6000_v30  ;;  %v3733_v34 = vpop.f32.mrb[6].mxu0 }
 0x34a   :  { %5348 = vst [vmem:[#allocation8 + $0x58] sm:$0xff] %v6128_v33  ;;  %v6001_v35 = vadd.f32 %v7292_v1, %v3733_v34  ;;  %v4182_v36 = vpop.f32.mrb[6].mxu1  ;;  %v3735_v37 = vpop.f32.mrb[7].mxu0  ;;  %5667 = vmatmul.mubr.msk.f32.gmra.mrb[112].mxu0 %vm3456_vm0, %v3444_v32 }
 0x34b   :  { %v6129_v38 = vadd.f32 %v7296_v2, %v4182_v36  ;;  %v6002_v39 = vadd.f32 %v7298_v3, %v3735_v37  ;;  %v4184_v40 = vpop.f32.mrb[7].mxu1  ;;  %5731 = vmatmul.mubr.msk.f32.gmra.mrb[112].mxu1 %vm3456_vm0, %v3444_v32  ;;  %4055 = vmatprep.mubr.f32.mxu0 %v6845_v4  ;;  %v3451_v36 = vld [vmem:[%s7652_s3 + $0x1f8] sm:$0xff]  ;;  %s6846_s3 = smov [#allocation8]  }
 0x34c   :  { %5349 = vst [vmem:[#allocation8 + $0x60] sm:$0xff] %v6001_v35  ;;  %v6130_v42 = vadd.f32 %v7304_v6, %v4184_v40  ;;  %4504 = vmatprep.mubr.f32.mxu1 %v6845_v4  ;;  %s5598_s24 = sshll.u32 %s6846_s3, 4  ;;  %s5599_s24 = int_to_ptr.vmem [resolvable:$true] %s5598_s24 }
 0x34d   :  { %5351 = vst [vmem:[#allocation8 + $0x70] sm:$0xff] %v6129_v38  ;;  %5350 = vst [vmem:[#allocation8 + $0x68] sm:$0xff] %v6002_v39  ;;  %v3739_v43 = vpop.f32.mrb[8].mxu0  ;;  %s6813_s4 = scalar_lea.vmem %s5599_s24, 32768  ;;  %p6818_p3 = scmp.lt.s32.totalorder %s5599_s24, %s5599_s24 }
 0x34e   :  { %5352 = vst [vmem:[#allocation8 + $0x78] sm:$0xff] %v6130_v42  ;;  %v6003_v44 = vadd.f32 %v7292_v1, %v3739_v43  ;;  %v4188_v45 = vpop.f32.mrb[8].mxu1  ;;  %v3741_v46 = vpop.f32.mrb[9].mxu0  ;;  %5668 = vmatmul.mubr.msk.f32.gmra.mrb[114].mxu0 %vm3456_vm0, %v3445_v41  ;;  %p6814_p2 = scmp.ne.s32.totalorder %s5599_s24, %s6813_s4  ;;  %p6819_p4 = scmp.lt.s32.totalorder %s6813_s4, %s6813_s4 }
 0x34f   :  { %v6131_v47 = vadd.f32 %v7296_v2, %v4188_v45  ;;  %v6004_v48 = vadd.f32 %v7298_v3, %v3741_v46  ;;  %v4190_v49 = vpop.f32.mrb[9].mxu1  ;;  %5732 = vmatmul.mubr.msk.f32.gmra.mrb[114].mxu1 %vm3456_vm0, %v3445_v41  ;;  %4061 = vmatprep.mubr.f32.mxu0 %v6845_v4 }
 0x350   :  { %5353 = vst [vmem:[#allocation8 + $0x80] sm:$0xff] %v6003_v44  ;;  %v6132_v51 = vadd.f32 %v7304_v6, %v4190_v49  ;;  %4510 = vmatprep.mubr.f32.mxu1 %v6845_v4  ;;  %p6820_p5 = por %p6819_p4, %p6818_p3 }
 0x351   :  { %5355 = vst [vmem:[#allocation8 + $0x90] sm:$0xff] %v6131_v47  ;;  %5354 = vst [vmem:[#allocation8 + $0x88] sm:$0xff] %v6004_v48  ;;  %v3745_v52 = vpop.f32.mrb[10].mxu0 }
 0x352   :  { %5356 = vst [vmem:[#allocation8 + $0x98] sm:$0xff] %v6132_v51  ;;  %v6005_v53 = vadd.f32 %v7292_v1, %v3745_v52  ;;  %v4194_v54 = vpop.f32.mrb[10].mxu1  ;;  %v3747_v55 = vpop.f32.mrb[11].mxu0  ;;  %5669 = vmatmul.mubr.msk.f32.gmra.mrb[116].mxu0 %vm3456_vm0, %v3446_v50  ;;  %p6821_p6 = pnand %p6820_p5, %p6814_p2 }
 0x353   :  { %v6133_v56 = vadd.f32 %v7296_v2, %v4194_v54  ;;  %v6006_v57 = vadd.f32 %v7298_v3, %v3747_v55  ;;  %v4196_v58 = vpop.f32.mrb[11].mxu1  ;;  %5733 = vmatmul.mubr.msk.f32.gmra.mrb[116].mxu1 %vm3456_vm0, %v3446_v50  ;;  %4067 = vmatprep.mubr.f32.mxu0 %v6845_v4 }
 0x354   :  { %5357 = vst [vmem:[#allocation8 + $0xa0] sm:$0xff] %v6005_v53  ;;  %v6134_v60 = vadd.f32 %v7304_v6, %v4196_v58  ;;  %4516 = vmatprep.mubr.f32.mxu1 %v6845_v4 }
 0x355   :  { %5359 = vst [vmem:[#allocation8 + $0xb0] sm:$0xff] %v6133_v56  ;;  %5358 = vst [vmem:[#allocation8 + $0xa8] sm:$0xff] %v6006_v57  ;;  %v3751_v61 = vpop.f32.mrb[12].mxu0 }
 0x356   :  { %5360 = vst [vmem:[#allocation8 + $0xb8] sm:$0xff] %v6134_v60  ;;  %v6007_v62 = vadd.f32 %v7292_v1, %v3751_v61  ;;  %v4200_v63 = vpop.f32.mrb[12].mxu1  ;;  %v3753_v0 = vpop.f32.mrb[13].mxu0  ;;  %5670 = vmatmul.mubr.msk.f32.gmra.mrb[118].mxu0 %vm3456_vm0, %v3447_v59 }
 0x357   :  { %v6135_v5 = vadd.f32 %v7296_v2, %v4200_v63  ;;  %v6008_v7 = vadd.f32 %v7298_v3, %v3753_v0  ;;  %v4202_v8 = vpop.f32.mrb[13].mxu1  ;;  %5734 = vmatmul.mubr.msk.f32.gmra.mrb[118].mxu1 %vm3456_vm0, %v3447_v59  ;;  %4073 = vmatprep.mubr.f32.mxu0 %v6845_v4 }
 0x358   :  { %5361 = vst [vmem:[#allocation8 + $0xc0] sm:$0xff] %v6007_v62  ;;  %v6136_v10 = vadd.f32 %v7304_v6, %v4202_v8  ;;  %4522 = vmatprep.mubr.f32.mxu1 %v6845_v4 }
 0x359   :  { %5363 = vst [vmem:[#allocation8 + $0xd0] sm:$0xff] %v6135_v5  ;;  %5362 = vst [vmem:[#allocation8 + $0xc8] sm:$0xff] %v6008_v7  ;;  %v3757_v11 = vpop.f32.mrb[14].mxu0 }
 0x35a   :  { %5364 = vst [vmem:[#allocation8 + $0xd8] sm:$0xff] %v6136_v10  ;;  %v6009_v12 = vadd.f32 %v7292_v1, %v3757_v11  ;;  %v4206_v13 = vpop.f32.mrb[14].mxu1  ;;  %v3759_v14 = vpop.f32.mrb[15].mxu0  ;;  %5671 = vmatmul.mubr.msk.f32.gmra.mrb[120].mxu0 %vm3456_vm0, %v3448_v9 }
 0x35b   :  { %v6137_v15 = vadd.f32 %v7296_v2, %v4206_v13  ;;  %v6010_v16 = vadd.f32 %v7298_v3, %v3759_v14  ;;  %v4208_v17 = vpop.f32.mrb[15].mxu1  ;;  %5735 = vmatmul.mubr.msk.f32.gmra.mrb[120].mxu1 %vm3456_vm0, %v3448_v9  ;;  %4079 = vmatprep.mubr.f32.mxu0 %v6845_v4 }
 0x35c   :  { %5365 = vst [vmem:[#allocation8 + $0xe0] sm:$0xff] %v6009_v12  ;;  %v6138_v19 = vadd.f32 %v7304_v6, %v4208_v17  ;;  %4528 = vmatprep.mubr.f32.mxu1 %v6845_v4 }
 0x35d   :  { %5367 = vst [vmem:[#allocation8 + $0xf0] sm:$0xff] %v6137_v15  ;;  %5366 = vst [vmem:[#allocation8 + $0xe8] sm:$0xff] %v6010_v16  ;;  %v3763_v20 = vpop.f32.mrb[16].mxu0 }
 0x35e   :  { %5368 = vst [vmem:[#allocation8 + $0xf8] sm:$0xff] %v6138_v19  ;;  %v6011_v21 = vadd.f32 %v7292_v1, %v3763_v20  ;;  %v4212_v22 = vpop.f32.mrb[16].mxu1  ;;  %v3765_v23 = vpop.f32.mrb[17].mxu0  ;;  %5672 = vmatmul.mubr.msk.f32.gmra.mrb[122].mxu0 %vm3456_vm0, %v3449_v18 }
 0x35f   :  { %v6139_v24 = vadd.f32 %v7296_v2, %v4212_v22  ;;  %v6012_v25 = vadd.f32 %v7298_v3, %v3765_v23  ;;  %v4214_v26 = vpop.f32.mrb[17].mxu1  ;;  %5736 = vmatmul.mubr.msk.f32.gmra.mrb[122].mxu1 %vm3456_vm0, %v3449_v18  ;;  %4085 = vmatprep.mubr.f32.mxu0 %v6845_v4 }
 0x360   :  { %5369 = vst [vmem:[#allocation8 + $0x100] sm:$0xff] %v6011_v21  ;;  %v6140_v28 = vadd.f32 %v7304_v6, %v4214_v26  ;;  %4534 = vmatprep.mubr.f32.mxu1 %v6845_v4 }
 0x361   :  { %5371 = vst [vmem:[#allocation8 + $0x110] sm:$0xff] %v6139_v24  ;;  %5370 = vst [vmem:[#allocation8 + $0x108] sm:$0xff] %v6012_v25  ;;  %v3769_v29 = vpop.f32.mrb[18].mxu0 }
 0x362   :  { %5372 = vst [vmem:[#allocation8 + $0x118] sm:$0xff] %v6140_v28  ;;  %v6013_v30 = vadd.f32 %v7292_v1, %v3769_v29  ;;  %v4218_v31 = vpop.f32.mrb[18].mxu1  ;;  %v3771_v32 = vpop.f32.mrb[19].mxu0  ;;  %5673 = vmatmul.mubr.msk.f32.gmra.mrb[124].mxu0 %vm3456_vm0, %v3450_v27 }
 0x363   :  { %v6141_v33 = vadd.f32 %v7296_v2, %v4218_v31  ;;  %v6014_v34 = vadd.f32 %v7298_v3, %v3771_v32  ;;  %v4220_v35 = vpop.f32.mrb[19].mxu1  ;;  %5737 = vmatmul.mubr.msk.f32.gmra.mrb[124].mxu1 %vm3456_vm0, %v3450_v27  ;;  %4091 = vmatprep.mubr.f32.mxu0 %v6845_v4 }
 0x364   :  { %5373 = vst [vmem:[#allocation8 + $0x120] sm:$0xff] %v6013_v30  ;;  %v6142_v37 = vadd.f32 %v7304_v6, %v4220_v35  ;;  %4540 = vmatprep.mubr.f32.mxu1 %v6845_v4 }
 0x365   :  { %5375 = vst [vmem:[#allocation8 + $0x130] sm:$0xff] %v6141_v33  ;;  %5374 = vst [vmem:[#allocation8 + $0x128] sm:$0xff] %v6014_v34  ;;  %v3775_v38 = vpop.f32.mrb[20].mxu0 }
 0x366   :  { %5376 = vst [vmem:[#allocation8 + $0x138] sm:$0xff] %v6142_v37  ;;  %v6015_v39 = vadd.f32 %v7292_v1, %v3775_v38  ;;  %v4224_v40 = vpop.f32.mrb[20].mxu1  ;;  %v3777_v41 = vpop.f32.mrb[21].mxu0  ;;  %5674 = vmatmul.mubr.msk.f32.gmra.mrb[126].mxu0 %vm3456_vm0, %v3451_v36 }
 0x367   :  { %v6143_v42 = vadd.f32 %v7296_v2, %v4224_v40  ;;  %v6016_v43 = vadd.f32 %v7298_v3, %v3777_v41  ;;  %v4226_v44 = vpop.f32.mrb[21].mxu1  ;;  %5738 = vmatmul.mubr.msk.f32.gmra.mrb[126].mxu1 %vm3456_vm0, %v3451_v36 }
 0x368   :  { %5377 = vst [vmem:[#allocation8 + $0x140] sm:$0xff] %v6015_v39  ;;  %v6144_v4 = vadd.f32 %v7304_v6, %v4226_v44 }
 0x369   :  { %5379 = vst [vmem:[#allocation8 + $0x150] sm:$0xff] %v6143_v42  ;;  %5378 = vst [vmem:[#allocation8 + $0x148] sm:$0xff] %v6016_v43  ;;  %v3781_v45 = vpop.f32.mrb[22].mxu0 }
 0x36a   :  { %5380 = vst [vmem:[#allocation8 + $0x158] sm:$0xff] %v6144_v4  ;;  %v6017_v46 = vadd.f32 %v7292_v1, %v3781_v45  ;;  %v4230_v47 = vpop.f32.mrb[22].mxu1  ;;  %v3783_v48 = vpop.f32.mrb[23].mxu0 }
 0x36b   :  { %v6145_v49 = vadd.f32 %v7296_v2, %v4230_v47  ;;  %v6018_v50 = vadd.f32 %v7298_v3, %v3783_v48  ;;  %v4232_v51 = vpop.f32.mrb[23].mxu1 }
 0x36c   :  { %5381 = vst [vmem:[#allocation8 + $0x160] sm:$0xff] %v6017_v46  ;;  %v6146_v52 = vadd.f32 %v7304_v6, %v4232_v51 }
 0x36d   :  { %5383 = vst [vmem:[#allocation8 + $0x170] sm:$0xff] %v6145_v49  ;;  %5382 = vst [vmem:[#allocation8 + $0x168] sm:$0xff] %v6018_v50  ;;  %v3787_v53 = vpop.f32.mrb[24].mxu0 }
 0x36e   :  { %5384 = vst [vmem:[#allocation8 + $0x178] sm:$0xff] %v6146_v52  ;;  %v6019_v54 = vadd.f32 %v7292_v1, %v3787_v53  ;;  %v4236_v55 = vpop.f32.mrb[24].mxu1  ;;  %v3789_v56 = vpop.f32.mrb[25].mxu0 }
 0x36f   :  { %v6147_v57 = vadd.f32 %v7296_v2, %v4236_v55  ;;  %v6020_v58 = vadd.f32 %v7298_v3, %v3789_v56  ;;  %v4238_v59 = vpop.f32.mrb[25].mxu1 }
 0x370   :  { %5385 = vst [vmem:[#allocation8 + $0x180] sm:$0xff] %v6019_v54  ;;  %v6148_v60 = vadd.f32 %v7304_v6, %v4238_v59 }
 0x371   :  { %5387 = vst [vmem:[#allocation8 + $0x190] sm:$0xff] %v6147_v57  ;;  %5386 = vst [vmem:[#allocation8 + $0x188] sm:$0xff] %v6020_v58  ;;  %v3793_v61 = vpop.f32.mrb[26].mxu0 }
 0x372   :  { %5388 = vst [vmem:[#allocation8 + $0x198] sm:$0xff] %v6148_v60  ;;  %v6021_v62 = vadd.f32 %v7292_v1, %v3793_v61  ;;  %v4242_v63 = vpop.f32.mrb[26].mxu1  ;;  %v3795_v0 = vpop.f32.mrb[27].mxu0 }
 0x373   :  { %v6149_v5 = vadd.f32 %v7296_v2, %v4242_v63  ;;  %v6022_v7 = vadd.f32 %v7298_v3, %v3795_v0  ;;  %v4244_v8 = vpop.f32.mrb[27].mxu1 }
 0x374   :  { %5389 = vst [vmem:[#allocation8 + $0x1a0] sm:$0xff] %v6021_v62  ;;  %v6150_v9 = vadd.f32 %v7304_v6, %v4244_v8 }
 0x375   :  { %5391 = vst [vmem:[#allocation8 + $0x1b0] sm:$0xff] %v6149_v5  ;;  %5390 = vst [vmem:[#allocation8 + $0x1a8] sm:$0xff] %v6022_v7  ;;  %v3799_v10 = vpop.f32.mrb[28].mxu0 }
 0x376   :  { %5392 = vst [vmem:[#allocation8 + $0x1b8] sm:$0xff] %v6150_v9  ;;  %v6023_v11 = vadd.f32 %v7292_v1, %v3799_v10  ;;  %v4248_v12 = vpop.f32.mrb[28].mxu1  ;;  %v3801_v13 = vpop.f32.mrb[29].mxu0 }
 0x377   :  { %v6151_v14 = vadd.f32 %v7296_v2, %v4248_v12  ;;  %v6024_v15 = vadd.f32 %v7298_v3, %v3801_v13  ;;  %v4250_v16 = vpop.f32.mrb[29].mxu1 }
 0x378   :  { %5393 = vst [vmem:[#allocation8 + $0x1c0] sm:$0xff] %v6023_v11  ;;  %v6152_v17 = vadd.f32 %v7304_v6, %v4250_v16 }
 0x379   :  { %5395 = vst [vmem:[#allocation8 + $0x1d0] sm:$0xff] %v6151_v14  ;;  %5394 = vst [vmem:[#allocation8 + $0x1c8] sm:$0xff] %v6024_v15  ;;  %v3805_v18 = vpop.f32.mrb[30].mxu0 }
 0x37a   :  { %5396 = vst [vmem:[#allocation8 + $0x1d8] sm:$0xff] %v6152_v17  ;;  %v6025_v19 = vadd.f32 %v7292_v1, %v3805_v18  ;;  %v4254_v20 = vpop.f32.mrb[30].mxu1  ;;  %v3807_v21 = vpop.f32.mrb[31].mxu0 }
 0x37b   :  { %v6153_v22 = vadd.f32 %v7296_v2, %v4254_v20  ;;  %v6026_v23 = vadd.f32 %v7298_v3, %v3807_v21  ;;  %v4256_v24 = vpop.f32.mrb[31].mxu1 }
 0x37c   :  { %5397 = vst [vmem:[#allocation8 + $0x1e0] sm:$0xff] %v6025_v19  ;;  %v6154_v25 = vadd.f32 %v7304_v6, %v4256_v24 }
 0x37d   :  { %5399 = vst [vmem:[#allocation8 + $0x1f0] sm:$0xff] %v6153_v22  ;;  %5398 = vst [vmem:[#allocation8 + $0x1e8] sm:$0xff] %v6026_v23  ;;  %v3811_v26 = vpop.f32.mrb[32].mxu0 }
 0x37e   :  { %5400 = vst [vmem:[#allocation8 + $0x1f8] sm:$0xff] %v6154_v25  ;;  %v6027_v27 = vadd.f32 %v7292_v1, %v3811_v26  ;;  %v4260_v28 = vpop.f32.mrb[32].mxu1  ;;  %v3813_v29 = vpop.f32.mrb[33].mxu0 }
 0x37f   :  { %v6155_v30 = vadd.f32 %v7296_v2, %v4260_v28  ;;  %v6028_v31 = vadd.f32 %v7298_v3, %v3813_v29  ;;  %v4262_v32 = vpop.f32.mrb[33].mxu1 }
 0x380   :  { %5401 = vst [vmem:[#allocation8 + $0x200] sm:$0xff] %v6027_v27  ;;  %v6156_v33 = vadd.f32 %v7304_v6, %v4262_v32 }
 0x381   :  { %5403 = vst [vmem:[#allocation8 + $0x210] sm:$0xff] %v6155_v30  ;;  %5402 = vst [vmem:[#allocation8 + $0x208] sm:$0xff] %v6028_v31  ;;  %v3817_v34 = vpop.f32.mrb[34].mxu0 }
 0x382   :  { %5404 = vst [vmem:[#allocation8 + $0x218] sm:$0xff] %v6156_v33  ;;  %v6029_v35 = vadd.f32 %v7292_v1, %v3817_v34  ;;  %v4266_v36 = vpop.f32.mrb[34].mxu1  ;;  %v3819_v37 = vpop.f32.mrb[35].mxu0 }
 0x383   :  { %v6157_v38 = vadd.f32 %v7296_v2, %v4266_v36  ;;  %v6030_v39 = vadd.f32 %v7298_v3, %v3819_v37  ;;  %v4268_v40 = vpop.f32.mrb[35].mxu1 }
 0x384   :  { %5405 = vst [vmem:[#allocation8 + $0x220] sm:$0xff] %v6029_v35  ;;  %v6158_v41 = vadd.f32 %v7304_v6, %v4268_v40 }
 0x385   :  { %5407 = vst [vmem:[#allocation8 + $0x230] sm:$0xff] %v6157_v38  ;;  %5406 = vst [vmem:[#allocation8 + $0x228] sm:$0xff] %v6030_v39  ;;  %v3823_v42 = vpop.f32.mrb[36].mxu0 }
 0x386   :  { %5408 = vst [vmem:[#allocation8 + $0x238] sm:$0xff] %v6158_v41  ;;  %v6031_v43 = vadd.f32 %v7292_v1, %v3823_v42  ;;  %v4272_v44 = vpop.f32.mrb[36].mxu1  ;;  %v3825_v4 = vpop.f32.mrb[37].mxu0 }
 0x387   :  { %v6159_v45 = vadd.f32 %v7296_v2, %v4272_v44  ;;  %v6032_v46 = vadd.f32 %v7298_v3, %v3825_v4  ;;  %v4274_v47 = vpop.f32.mrb[37].mxu1 }
 0x388   :  { %5409 = vst [vmem:[#allocation8 + $0x240] sm:$0xff] %v6031_v43  ;;  %v6160_v48 = vadd.f32 %v7304_v6, %v4274_v47 }
 0x389   :  { %5411 = vst [vmem:[#allocation8 + $0x250] sm:$0xff] %v6159_v45  ;;  %5410 = vst [vmem:[#allocation8 + $0x248] sm:$0xff] %v6032_v46  ;;  %v3829_v49 = vpop.f32.mrb[38].mxu0 }
 0x38a   :  { %5412 = vst [vmem:[#allocation8 + $0x258] sm:$0xff] %v6160_v48  ;;  %v6033_v50 = vadd.f32 %v7292_v1, %v3829_v49  ;;  %v4278_v51 = vpop.f32.mrb[38].mxu1  ;;  %v3831_v52 = vpop.f32.mrb[39].mxu0 }
 0x38b   :  { %v6161_v53 = vadd.f32 %v7296_v2, %v4278_v51  ;;  %v6034_v54 = vadd.f32 %v7298_v3, %v3831_v52  ;;  %v4280_v55 = vpop.f32.mrb[39].mxu1 }
 0x38c   :  { %5413 = vst [vmem:[#allocation8 + $0x260] sm:$0xff] %v6033_v50  ;;  %v6162_v56 = vadd.f32 %v7304_v6, %v4280_v55 }
 0x38d   :  { %5415 = vst [vmem:[#allocation8 + $0x270] sm:$0xff] %v6161_v53  ;;  %5414 = vst [vmem:[#allocation8 + $0x268] sm:$0xff] %v6034_v54  ;;  %v3835_v57 = vpop.f32.mrb[40].mxu0 }
 0x38e   :  { %5416 = vst [vmem:[#allocation8 + $0x278] sm:$0xff] %v6162_v56  ;;  %v6035_v58 = vadd.f32 %v7292_v1, %v3835_v57  ;;  %v4284_v59 = vpop.f32.mrb[40].mxu1  ;;  %v3837_v60 = vpop.f32.mrb[41].mxu0 }
 0x38f   :  { %v6163_v61 = vadd.f32 %v7296_v2, %v4284_v59  ;;  %v6036_v62 = vadd.f32 %v7298_v3, %v3837_v60  ;;  %v4286_v63 = vpop.f32.mrb[41].mxu1 }
 0x390   :  { %5417 = vst [vmem:[#allocation8 + $0x280] sm:$0xff] %v6035_v58  ;;  %v6164_v0 = vadd.f32 %v7304_v6, %v4286_v63 }
 0x391   :  { %5419 = vst [vmem:[#allocation8 + $0x290] sm:$0xff] %v6163_v61  ;;  %5418 = vst [vmem:[#allocation8 + $0x288] sm:$0xff] %v6036_v62  ;;  %v3841_v5 = vpop.f32.mrb[42].mxu0 }
 0x392   :  { %5420 = vst [vmem:[#allocation8 + $0x298] sm:$0xff] %v6164_v0  ;;  %v6037_v7 = vadd.f32 %v7292_v1, %v3841_v5  ;;  %v4290_v8 = vpop.f32.mrb[42].mxu1  ;;  %v3843_v9 = vpop.f32.mrb[43].mxu0 }
 0x393   :  { %v6165_v10 = vadd.f32 %v7296_v2, %v4290_v8  ;;  %v6038_v11 = vadd.f32 %v7298_v3, %v3843_v9  ;;  %v4292_v12 = vpop.f32.mrb[43].mxu1 }
 0x394   :  { %5421 = vst [vmem:[#allocation8 + $0x2a0] sm:$0xff] %v6037_v7  ;;  %v6166_v13 = vadd.f32 %v7304_v6, %v4292_v12 }
 0x395   :  { %5423 = vst [vmem:[#allocation8 + $0x2b0] sm:$0xff] %v6165_v10  ;;  %5422 = vst [vmem:[#allocation8 + $0x2a8] sm:$0xff] %v6038_v11  ;;  %v3847_v14 = vpop.f32.mrb[44].mxu0 }
 0x396   :  { %5424 = vst [vmem:[#allocation8 + $0x2b8] sm:$0xff] %v6166_v13  ;;  %v6039_v15 = vadd.f32 %v7292_v1, %v3847_v14  ;;  %v4296_v16 = vpop.f32.mrb[44].mxu1  ;;  %v3849_v17 = vpop.f32.mrb[45].mxu0 }
 0x397   :  { %v6167_v18 = vadd.f32 %v7296_v2, %v4296_v16  ;;  %v6040_v19 = vadd.f32 %v7298_v3, %v3849_v17  ;;  %v4298_v20 = vpop.f32.mrb[45].mxu1 }
 0x398   :  { %5425 = vst [vmem:[#allocation8 + $0x2c0] sm:$0xff] %v6039_v15  ;;  %v6168_v21 = vadd.f32 %v7304_v6, %v4298_v20 }
 0x399   :  { %5427 = vst [vmem:[#allocation8 + $0x2d0] sm:$0xff] %v6167_v18  ;;  %5426 = vst [vmem:[#allocation8 + $0x2c8] sm:$0xff] %v6040_v19  ;;  %v3853_v22 = vpop.f32.mrb[46].mxu0 }
 0x39a   :  { %5428 = vst [vmem:[#allocation8 + $0x2d8] sm:$0xff] %v6168_v21  ;;  %v6041_v23 = vadd.f32 %v7292_v1, %v3853_v22  ;;  %v4302_v24 = vpop.f32.mrb[46].mxu1  ;;  %v3855_v25 = vpop.f32.mrb[47].mxu0 }
 0x39b   :  { %v6169_v26 = vadd.f32 %v7296_v2, %v4302_v24  ;;  %v6042_v27 = vadd.f32 %v7298_v3, %v3855_v25  ;;  %v4304_v28 = vpop.f32.mrb[47].mxu1 }
 0x39c   :  { %5429 = vst [vmem:[#allocation8 + $0x2e0] sm:$0xff] %v6041_v23  ;;  %v6170_v29 = vadd.f32 %v7304_v6, %v4304_v28 }
 0x39d   :  { %5431 = vst [vmem:[#allocation8 + $0x2f0] sm:$0xff] %v6169_v26  ;;  %5430 = vst [vmem:[#allocation8 + $0x2e8] sm:$0xff] %v6042_v27  ;;  %v3859_v30 = vpop.f32.mrb[48].mxu0 }
 0x39e   :  { %5432 = vst [vmem:[#allocation8 + $0x2f8] sm:$0xff] %v6170_v29  ;;  %v6043_v31 = vadd.f32 %v7292_v1, %v3859_v30  ;;  %v4308_v32 = vpop.f32.mrb[48].mxu1  ;;  %v3861_v33 = vpop.f32.mrb[49].mxu0 }
 0x39f   :  { %v6171_v34 = vadd.f32 %v7296_v2, %v4308_v32  ;;  %v6044_v35 = vadd.f32 %v7298_v3, %v3861_v33  ;;  %v4310_v36 = vpop.f32.mrb[49].mxu1 }
 0x3a0   :  { %5433 = vst [vmem:[#allocation8 + $0x300] sm:$0xff] %v6043_v31  ;;  %v6172_v37 = vadd.f32 %v7304_v6, %v4310_v36 }
 0x3a1   :  { %5435 = vst [vmem:[#allocation8 + $0x310] sm:$0xff] %v6171_v34  ;;  %5434 = vst [vmem:[#allocation8 + $0x308] sm:$0xff] %v6044_v35  ;;  %v3865_v38 = vpop.f32.mrb[50].mxu0 }
 0x3a2   :  { %5436 = vst [vmem:[#allocation8 + $0x318] sm:$0xff] %v6172_v37  ;;  %v6045_v39 = vadd.f32 %v7292_v1, %v3865_v38  ;;  %v4314_v40 = vpop.f32.mrb[50].mxu1  ;;  %v3867_v41 = vpop.f32.mrb[51].mxu0 }
 0x3a3   :  { %v6173_v42 = vadd.f32 %v7296_v2, %v4314_v40  ;;  %v6046_v43 = vadd.f32 %v7298_v3, %v3867_v41  ;;  %v4316_v44 = vpop.f32.mrb[51].mxu1 }
 0x3a4   :  { %5437 = vst [vmem:[#allocation8 + $0x320] sm:$0xff] %v6045_v39  ;;  %v6174_v4 = vadd.f32 %v7304_v6, %v4316_v44 }
 0x3a5   :  { %5439 = vst [vmem:[#allocation8 + $0x330] sm:$0xff] %v6173_v42  ;;  %5438 = vst [vmem:[#allocation8 + $0x328] sm:$0xff] %v6046_v43  ;;  %v3871_v45 = vpop.f32.mrb[52].mxu0 }
 0x3a6   :  { %5440 = vst [vmem:[#allocation8 + $0x338] sm:$0xff] %v6174_v4  ;;  %v6047_v46 = vadd.f32 %v7292_v1, %v3871_v45  ;;  %v4320_v47 = vpop.f32.mrb[52].mxu1  ;;  %v3873_v48 = vpop.f32.mrb[53].mxu0 }
 0x3a7   :  { %v6175_v49 = vadd.f32 %v7296_v2, %v4320_v47  ;;  %v6048_v50 = vadd.f32 %v7298_v3, %v3873_v48  ;;  %v4322_v51 = vpop.f32.mrb[53].mxu1 }
 0x3a8   :  { %5441 = vst [vmem:[#allocation8 + $0x340] sm:$0xff] %v6047_v46  ;;  %v6176_v52 = vadd.f32 %v7304_v6, %v4322_v51 }
 0x3a9   :  { %5443 = vst [vmem:[#allocation8 + $0x350] sm:$0xff] %v6175_v49  ;;  %5442 = vst [vmem:[#allocation8 + $0x348] sm:$0xff] %v6048_v50  ;;  %v3877_v53 = vpop.f32.mrb[54].mxu0 }
 0x3aa   :  { %5444 = vst [vmem:[#allocation8 + $0x358] sm:$0xff] %v6176_v52  ;;  %v6049_v54 = vadd.f32 %v7292_v1, %v3877_v53  ;;  %v4326_v55 = vpop.f32.mrb[54].mxu1  ;;  %v3879_v56 = vpop.f32.mrb[55].mxu0 }
 0x3ab   :  { %v6177_v57 = vadd.f32 %v7296_v2, %v4326_v55  ;;  %v6050_v58 = vadd.f32 %v7298_v3, %v3879_v56  ;;  %v4328_v59 = vpop.f32.mrb[55].mxu1 }
 0x3ac   :  { %5445 = vst [vmem:[#allocation8 + $0x360] sm:$0xff] %v6049_v54  ;;  %v6178_v60 = vadd.f32 %v7304_v6, %v4328_v59 }
 0x3ad   :  { %5447 = vst [vmem:[#allocation8 + $0x370] sm:$0xff] %v6177_v57  ;;  %5446 = vst [vmem:[#allocation8 + $0x368] sm:$0xff] %v6050_v58  ;;  %v3883_v61 = vpop.f32.mrb[56].mxu0 }
 0x3ae   :  { %5448 = vst [vmem:[#allocation8 + $0x378] sm:$0xff] %v6178_v60  ;;  %v6051_v62 = vadd.f32 %v7292_v1, %v3883_v61  ;;  %v4332_v63 = vpop.f32.mrb[56].mxu1  ;;  %v3885_v0 = vpop.f32.mrb[57].mxu0 }
 0x3af   :  { %v6179_v5 = vadd.f32 %v7296_v2, %v4332_v63  ;;  %v6052_v7 = vadd.f32 %v7298_v3, %v3885_v0  ;;  %v4334_v8 = vpop.f32.mrb[57].mxu1 }
 0x3b0   :  { %5449 = vst [vmem:[#allocation8 + $0x380] sm:$0xff] %v6051_v62  ;;  %v6180_v9 = vadd.f32 %v7304_v6, %v4334_v8 }
 0x3b1   :  { %5451 = vst [vmem:[#allocation8 + $0x390] sm:$0xff] %v6179_v5  ;;  %5450 = vst [vmem:[#allocation8 + $0x388] sm:$0xff] %v6052_v7  ;;  %v3889_v10 = vpop.f32.mrb[58].mxu0 }
 0x3b2   :  { %5452 = vst [vmem:[#allocation8 + $0x398] sm:$0xff] %v6180_v9  ;;  %v6053_v11 = vadd.f32 %v7292_v1, %v3889_v10  ;;  %v4338_v12 = vpop.f32.mrb[58].mxu1  ;;  %v3891_v13 = vpop.f32.mrb[59].mxu0 }
 0x3b3   :  { %v6181_v14 = vadd.f32 %v7296_v2, %v4338_v12  ;;  %v6054_v15 = vadd.f32 %v7298_v3, %v3891_v13  ;;  %v4340_v16 = vpop.f32.mrb[59].mxu1 }
 0x3b4   :  { %5453 = vst [vmem:[#allocation8 + $0x3a0] sm:$0xff] %v6053_v11  ;;  %v6182_v17 = vadd.f32 %v7304_v6, %v4340_v16 }
 0x3b5   :  { %5455 = vst [vmem:[#allocation8 + $0x3b0] sm:$0xff] %v6181_v14  ;;  %5454 = vst [vmem:[#allocation8 + $0x3a8] sm:$0xff] %v6054_v15  ;;  %v3895_v18 = vpop.f32.mrb[60].mxu0 }
 0x3b6   :  { %5456 = vst [vmem:[#allocation8 + $0x3b8] sm:$0xff] %v6182_v17  ;;  %v6055_v19 = vadd.f32 %v7292_v1, %v3895_v18  ;;  %v4344_v20 = vpop.f32.mrb[60].mxu1  ;;  %v3897_v21 = vpop.f32.mrb[61].mxu0 }
 0x3b7   :  { %v6183_v22 = vadd.f32 %v7296_v2, %v4344_v20  ;;  %v6056_v23 = vadd.f32 %v7298_v3, %v3897_v21  ;;  %v4346_v24 = vpop.f32.mrb[61].mxu1 }
 0x3b8   :  { %5457 = vst [vmem:[#allocation8 + $0x3c0] sm:$0xff] %v6055_v19  ;;  %v6184_v25 = vadd.f32 %v7304_v6, %v4346_v24 }
 0x3b9   :  { %5459 = vst [vmem:[#allocation8 + $0x3d0] sm:$0xff] %v6183_v22  ;;  %5458 = vst [vmem:[#allocation8 + $0x3c8] sm:$0xff] %v6056_v23  ;;  %v3901_v26 = vpop.f32.mrb[62].mxu0 }
 0x3ba   :  { %5460 = vst [vmem:[#allocation8 + $0x3d8] sm:$0xff] %v6184_v25  ;;  %v6057_v27 = vadd.f32 %v7292_v1, %v3901_v26  ;;  %v4350_v28 = vpop.f32.mrb[62].mxu1  ;;  %v3903_v29 = vpop.f32.mrb[63].mxu0 }
 0x3bb   :  { %v6185_v30 = vadd.f32 %v7296_v2, %v4350_v28  ;;  %v6058_v31 = vadd.f32 %v7298_v3, %v3903_v29  ;;  %v4352_v32 = vpop.f32.mrb[63].mxu1 }
 0x3bc   :  { %5461 = vst [vmem:[#allocation8 + $0x3e0] sm:$0xff] %v6057_v27  ;;  %v6186_v33 = vadd.f32 %v7304_v6, %v4352_v32 }
 0x3bd   :  { %5463 = vst [vmem:[#allocation8 + $0x3f0] sm:$0xff] %v6185_v30  ;;  %5462 = vst [vmem:[#allocation8 + $0x3e8] sm:$0xff] %v6058_v31  ;;  %v3907_v34 = vpop.f32.mrb[64].mxu0 }
 0x3be   :  { %5464 = vst [vmem:[#allocation8 + $0x3f8] sm:$0xff] %v6186_v33  ;;  %v6059_v35 = vadd.f32 %v7292_v1, %v3907_v34  ;;  %v4356_v36 = vpop.f32.mrb[64].mxu1  ;;  %v3909_v37 = vpop.f32.mrb[65].mxu0 }
 0x3bf   :  { %v6187_v38 = vadd.f32 %v7296_v2, %v4356_v36  ;;  %v6060_v39 = vadd.f32 %v7298_v3, %v3909_v37  ;;  %v4358_v40 = vpop.f32.mrb[65].mxu1 }
 0x3c0   :  { %5465 = vst [vmem:[#allocation8 + $0x400] sm:$0xff] %v6059_v35  ;;  %v6188_v41 = vadd.f32 %v7304_v6, %v4358_v40 }
 0x3c1   :  { %5467 = vst [vmem:[#allocation8 + $0x410] sm:$0xff] %v6187_v38  ;;  %5466 = vst [vmem:[#allocation8 + $0x408] sm:$0xff] %v6060_v39  ;;  %v3913_v42 = vpop.f32.mrb[66].mxu0 }
 0x3c2   :  { %5468 = vst [vmem:[#allocation8 + $0x418] sm:$0xff] %v6188_v41  ;;  %v6061_v43 = vadd.f32 %v7292_v1, %v3913_v42  ;;  %v4362_v44 = vpop.f32.mrb[66].mxu1  ;;  %v3915_v4 = vpop.f32.mrb[67].mxu0 }
 0x3c3   :  { %v6189_v45 = vadd.f32 %v7296_v2, %v4362_v44  ;;  %v6062_v46 = vadd.f32 %v7298_v3, %v3915_v4  ;;  %v4364_v47 = vpop.f32.mrb[67].mxu1 }
 0x3c4   :  { %5469 = vst [vmem:[#allocation8 + $0x420] sm:$0xff] %v6061_v43  ;;  %v6190_v48 = vadd.f32 %v7304_v6, %v4364_v47 }
 0x3c5   :  { %5471 = vst [vmem:[#allocation8 + $0x430] sm:$0xff] %v6189_v45  ;;  %5470 = vst [vmem:[#allocation8 + $0x428] sm:$0xff] %v6062_v46  ;;  %v3919_v49 = vpop.f32.mrb[68].mxu0 }
 0x3c6   :  { %5472 = vst [vmem:[#allocation8 + $0x438] sm:$0xff] %v6190_v48  ;;  %v6063_v50 = vadd.f32 %v7292_v1, %v3919_v49  ;;  %v4368_v51 = vpop.f32.mrb[68].mxu1  ;;  %v3921_v52 = vpop.f32.mrb[69].mxu0 }
 0x3c7   :  { %v6191_v53 = vadd.f32 %v7296_v2, %v4368_v51  ;;  %v6064_v54 = vadd.f32 %v7298_v3, %v3921_v52  ;;  %v4370_v55 = vpop.f32.mrb[69].mxu1 }
 0x3c8   :  { %5473 = vst [vmem:[#allocation8 + $0x440] sm:$0xff] %v6063_v50  ;;  %v6192_v56 = vadd.f32 %v7304_v6, %v4370_v55 }
 0x3c9   :  { %5475 = vst [vmem:[#allocation8 + $0x450] sm:$0xff] %v6191_v53  ;;  %5474 = vst [vmem:[#allocation8 + $0x448] sm:$0xff] %v6064_v54  ;;  %v3925_v57 = vpop.f32.mrb[70].mxu0 }
 0x3ca   :  { %5476 = vst [vmem:[#allocation8 + $0x458] sm:$0xff] %v6192_v56  ;;  %v6065_v58 = vadd.f32 %v7292_v1, %v3925_v57  ;;  %v4374_v59 = vpop.f32.mrb[70].mxu1  ;;  %v3927_v60 = vpop.f32.mrb[71].mxu0 }
 0x3cb   :  { %v6193_v61 = vadd.f32 %v7296_v2, %v4374_v59  ;;  %v6066_v62 = vadd.f32 %v7298_v3, %v3927_v60  ;;  %v4376_v63 = vpop.f32.mrb[71].mxu1 }
 0x3cc   :  { %5477 = vst [vmem:[#allocation8 + $0x460] sm:$0xff] %v6065_v58  ;;  %v6194_v0 = vadd.f32 %v7304_v6, %v4376_v63 }
 0x3cd   :  { %5479 = vst [vmem:[#allocation8 + $0x470] sm:$0xff] %v6193_v61  ;;  %5478 = vst [vmem:[#allocation8 + $0x468] sm:$0xff] %v6066_v62  ;;  %v3931_v5 = vpop.f32.mrb[72].mxu0 }
 0x3ce   :  { %5480 = vst [vmem:[#allocation8 + $0x478] sm:$0xff] %v6194_v0  ;;  %v6067_v7 = vadd.f32 %v7292_v1, %v3931_v5  ;;  %v4380_v8 = vpop.f32.mrb[72].mxu1  ;;  %v3933_v9 = vpop.f32.mrb[73].mxu0 }
 0x3cf   :  { %v6195_v10 = vadd.f32 %v7296_v2, %v4380_v8  ;;  %v6068_v11 = vadd.f32 %v7298_v3, %v3933_v9  ;;  %v4382_v12 = vpop.f32.mrb[73].mxu1 }
 0x3d0   :  { %5481 = vst [vmem:[#allocation8 + $0x480] sm:$0xff] %v6067_v7  ;;  %v6196_v13 = vadd.f32 %v7304_v6, %v4382_v12 }
 0x3d1   :  { %5483 = vst [vmem:[#allocation8 + $0x490] sm:$0xff] %v6195_v10  ;;  %5482 = vst [vmem:[#allocation8 + $0x488] sm:$0xff] %v6068_v11  ;;  %v3937_v14 = vpop.f32.mrb[74].mxu0 }
 0x3d2   :  { %5484 = vst [vmem:[#allocation8 + $0x498] sm:$0xff] %v6196_v13  ;;  %v6069_v15 = vadd.f32 %v7292_v1, %v3937_v14  ;;  %v4386_v16 = vpop.f32.mrb[74].mxu1  ;;  %v3939_v17 = vpop.f32.mrb[75].mxu0 }
 0x3d3   :  { %v6197_v18 = vadd.f32 %v7296_v2, %v4386_v16  ;;  %v6070_v19 = vadd.f32 %v7298_v3, %v3939_v17  ;;  %v4388_v20 = vpop.f32.mrb[75].mxu1 }
 0x3d4   :  { %5485 = vst [vmem:[#allocation8 + $0x4a0] sm:$0xff] %v6069_v15  ;;  %v6198_v21 = vadd.f32 %v7304_v6, %v4388_v20 }
 0x3d5   :  { %5487 = vst [vmem:[#allocation8 + $0x4b0] sm:$0xff] %v6197_v18  ;;  %5486 = vst [vmem:[#allocation8 + $0x4a8] sm:$0xff] %v6070_v19  ;;  %v3943_v22 = vpop.f32.mrb[76].mxu0 }
 0x3d6   :  { %5488 = vst [vmem:[#allocation8 + $0x4b8] sm:$0xff] %v6198_v21  ;;  %v6071_v23 = vadd.f32 %v7292_v1, %v3943_v22  ;;  %v4392_v24 = vpop.f32.mrb[76].mxu1  ;;  %v3945_v25 = vpop.f32.mrb[77].mxu0 }
 0x3d7   :  { %v6199_v26 = vadd.f32 %v7296_v2, %v4392_v24  ;;  %v6072_v27 = vadd.f32 %v7298_v3, %v3945_v25  ;;  %v4394_v28 = vpop.f32.mrb[77].mxu1 }
 0x3d8   :  { %5489 = vst [vmem:[#allocation8 + $0x4c0] sm:$0xff] %v6071_v23  ;;  %v6200_v29 = vadd.f32 %v7304_v6, %v4394_v28 }
 0x3d9   :  { %5491 = vst [vmem:[#allocation8 + $0x4d0] sm:$0xff] %v6199_v26  ;;  %5490 = vst [vmem:[#allocation8 + $0x4c8] sm:$0xff] %v6072_v27  ;;  %v3949_v30 = vpop.f32.mrb[78].mxu0 }
 0x3da   :  { %5492 = vst [vmem:[#allocation8 + $0x4d8] sm:$0xff] %v6200_v29  ;;  %v6073_v31 = vadd.f32 %v7292_v1, %v3949_v30  ;;  %v4398_v32 = vpop.f32.mrb[78].mxu1  ;;  %v3951_v33 = vpop.f32.mrb[79].mxu0 }
 0x3db   :  { %v6201_v34 = vadd.f32 %v7296_v2, %v4398_v32  ;;  %v6074_v35 = vadd.f32 %v7298_v3, %v3951_v33  ;;  %v4400_v36 = vpop.f32.mrb[79].mxu1 }
 0x3dc   :  { %5493 = vst [vmem:[#allocation8 + $0x4e0] sm:$0xff] %v6073_v31  ;;  %v6202_v37 = vadd.f32 %v7304_v6, %v4400_v36 }
 0x3dd   :  { %5495 = vst [vmem:[#allocation8 + $0x4f0] sm:$0xff] %v6201_v34  ;;  %5494 = vst [vmem:[#allocation8 + $0x4e8] sm:$0xff] %v6074_v35  ;;  %v3955_v38 = vpop.f32.mrb[80].mxu0 }
 0x3de   :  { %5496 = vst [vmem:[#allocation8 + $0x4f8] sm:$0xff] %v6202_v37  ;;  %v6075_v39 = vadd.f32 %v7292_v1, %v3955_v38  ;;  %v4404_v40 = vpop.f32.mrb[80].mxu1  ;;  %v3957_v41 = vpop.f32.mrb[81].mxu0 }
 0x3df   :  { %v6203_v42 = vadd.f32 %v7296_v2, %v4404_v40  ;;  %v6076_v43 = vadd.f32 %v7298_v3, %v3957_v41  ;;  %v4406_v44 = vpop.f32.mrb[81].mxu1 }
 0x3e0   :  { %5497 = vst [vmem:[#allocation8 + $0x500] sm:$0xff] %v6075_v39  ;;  %v6204_v4 = vadd.f32 %v7304_v6, %v4406_v44 }
 0x3e1   :  { %5499 = vst [vmem:[#allocation8 + $0x510] sm:$0xff] %v6203_v42  ;;  %5498 = vst [vmem:[#allocation8 + $0x508] sm:$0xff] %v6076_v43  ;;  %v3961_v45 = vpop.f32.mrb[82].mxu0 }
 0x3e2   :  { %5500 = vst [vmem:[#allocation8 + $0x518] sm:$0xff] %v6204_v4  ;;  %v6077_v46 = vadd.f32 %v7292_v1, %v3961_v45  ;;  %v4410_v47 = vpop.f32.mrb[82].mxu1  ;;  %v3963_v48 = vpop.f32.mrb[83].mxu0 }
 0x3e3   :  { %v6205_v49 = vadd.f32 %v7296_v2, %v4410_v47  ;;  %v6078_v50 = vadd.f32 %v7298_v3, %v3963_v48  ;;  %v4412_v51 = vpop.f32.mrb[83].mxu1 }
 0x3e4   :  { %5501 = vst [vmem:[#allocation8 + $0x520] sm:$0xff] %v6077_v46  ;;  %v6206_v52 = vadd.f32 %v7304_v6, %v4412_v51 }
 0x3e5   :  { %5503 = vst [vmem:[#allocation8 + $0x530] sm:$0xff] %v6205_v49  ;;  %5502 = vst [vmem:[#allocation8 + $0x528] sm:$0xff] %v6078_v50  ;;  %v3967_v53 = vpop.f32.mrb[84].mxu0 }
 0x3e6   :  { %5504 = vst [vmem:[#allocation8 + $0x538] sm:$0xff] %v6206_v52  ;;  %v6079_v54 = vadd.f32 %v7292_v1, %v3967_v53  ;;  %v4416_v55 = vpop.f32.mrb[84].mxu1  ;;  %v3969_v56 = vpop.f32.mrb[85].mxu0 }
 0x3e7   :  { %v6207_v57 = vadd.f32 %v7296_v2, %v4416_v55  ;;  %v6080_v58 = vadd.f32 %v7298_v3, %v3969_v56  ;;  %v4418_v59 = vpop.f32.mrb[85].mxu1 }
 0x3e8   :  { %5505 = vst [vmem:[#allocation8 + $0x540] sm:$0xff] %v6079_v54  ;;  %v6208_v60 = vadd.f32 %v7304_v6, %v4418_v59 }
 0x3e9   :  { %5507 = vst [vmem:[#allocation8 + $0x550] sm:$0xff] %v6207_v57  ;;  %5506 = vst [vmem:[#allocation8 + $0x548] sm:$0xff] %v6080_v58  ;;  %v3973_v61 = vpop.f32.mrb[86].mxu0 }
 0x3ea   :  { %5508 = vst [vmem:[#allocation8 + $0x558] sm:$0xff] %v6208_v60  ;;  %v6081_v62 = vadd.f32 %v7292_v1, %v3973_v61  ;;  %v4422_v63 = vpop.f32.mrb[86].mxu1  ;;  %v3975_v0 = vpop.f32.mrb[87].mxu0 }
 0x3eb   :  { %v6209_v5 = vadd.f32 %v7296_v2, %v4422_v63  ;;  %v6082_v7 = vadd.f32 %v7298_v3, %v3975_v0  ;;  %v4424_v8 = vpop.f32.mrb[87].mxu1 }
 0x3ec   :  { %5509 = vst [vmem:[#allocation8 + $0x560] sm:$0xff] %v6081_v62  ;;  %v6210_v9 = vadd.f32 %v7304_v6, %v4424_v8 }
 0x3ed   :  { %5511 = vst [vmem:[#allocation8 + $0x570] sm:$0xff] %v6209_v5  ;;  %5510 = vst [vmem:[#allocation8 + $0x568] sm:$0xff] %v6082_v7  ;;  %v3979_v10 = vpop.f32.mrb[88].mxu0 }
 0x3ee   :  { %5512 = vst [vmem:[#allocation8 + $0x578] sm:$0xff] %v6210_v9  ;;  %v6083_v11 = vadd.f32 %v7292_v1, %v3979_v10  ;;  %v4428_v12 = vpop.f32.mrb[88].mxu1  ;;  %v3981_v13 = vpop.f32.mrb[89].mxu0 }
 0x3ef   :  { %v6211_v14 = vadd.f32 %v7296_v2, %v4428_v12  ;;  %v6084_v15 = vadd.f32 %v7298_v3, %v3981_v13  ;;  %v4430_v16 = vpop.f32.mrb[89].mxu1 }
 0x3f0   :  { %5513 = vst [vmem:[#allocation8 + $0x580] sm:$0xff] %v6083_v11  ;;  %v6212_v17 = vadd.f32 %v7304_v6, %v4430_v16 }
 0x3f1   :  { %5515 = vst [vmem:[#allocation8 + $0x590] sm:$0xff] %v6211_v14  ;;  %5514 = vst [vmem:[#allocation8 + $0x588] sm:$0xff] %v6084_v15  ;;  %v3985_v18 = vpop.f32.mrb[90].mxu0 }
 0x3f2   :  { %5516 = vst [vmem:[#allocation8 + $0x598] sm:$0xff] %v6212_v17  ;;  %v6085_v19 = vadd.f32 %v7292_v1, %v3985_v18  ;;  %v4434_v20 = vpop.f32.mrb[90].mxu1  ;;  %v3987_v21 = vpop.f32.mrb[91].mxu0 }
 0x3f3   :  { %v6213_v22 = vadd.f32 %v7296_v2, %v4434_v20  ;;  %v6086_v23 = vadd.f32 %v7298_v3, %v3987_v21  ;;  %v4436_v24 = vpop.f32.mrb[91].mxu1 }
 0x3f4   :  { %5517 = vst [vmem:[#allocation8 + $0x5a0] sm:$0xff] %v6085_v19  ;;  %v6214_v25 = vadd.f32 %v7304_v6, %v4436_v24 }
 0x3f5   :  { %5519 = vst [vmem:[#allocation8 + $0x5b0] sm:$0xff] %v6213_v22  ;;  %5518 = vst [vmem:[#allocation8 + $0x5a8] sm:$0xff] %v6086_v23  ;;  %v3991_v26 = vpop.f32.mrb[92].mxu0 }
 0x3f6   :  { %5520 = vst [vmem:[#allocation8 + $0x5b8] sm:$0xff] %v6214_v25  ;;  %v6087_v27 = vadd.f32 %v7292_v1, %v3991_v26  ;;  %v4440_v28 = vpop.f32.mrb[92].mxu1  ;;  %v3993_v29 = vpop.f32.mrb[93].mxu0 }
 0x3f7   :  { %v6215_v30 = vadd.f32 %v7296_v2, %v4440_v28  ;;  %v6088_v31 = vadd.f32 %v7298_v3, %v3993_v29  ;;  %v4442_v32 = vpop.f32.mrb[93].mxu1 }
 0x3f8   :  { %5521 = vst [vmem:[#allocation8 + $0x5c0] sm:$0xff] %v6087_v27  ;;  %v6216_v33 = vadd.f32 %v7304_v6, %v4442_v32 }
 0x3f9   :  { %5523 = vst [vmem:[#allocation8 + $0x5d0] sm:$0xff] %v6215_v30  ;;  %5522 = vst [vmem:[#allocation8 + $0x5c8] sm:$0xff] %v6088_v31  ;;  %v3997_v34 = vpop.f32.mrb[94].mxu0 }
 0x3fa   :  { %5524 = vst [vmem:[#allocation8 + $0x5d8] sm:$0xff] %v6216_v33  ;;  %v6089_v35 = vadd.f32 %v7292_v1, %v3997_v34  ;;  %v4446_v36 = vpop.f32.mrb[94].mxu1  ;;  %v3999_v37 = vpop.f32.mrb[95].mxu0 }
 0x3fb   :  { %v6217_v38 = vadd.f32 %v7296_v2, %v4446_v36  ;;  %v6090_v39 = vadd.f32 %v7298_v3, %v3999_v37  ;;  %v4448_v40 = vpop.f32.mrb[95].mxu1 }
 0x3fc   :  { %5525 = vst [vmem:[#allocation8 + $0x5e0] sm:$0xff] %v6089_v35  ;;  %v6218_v41 = vadd.f32 %v7304_v6, %v4448_v40 }
 0x3fd   :  { %5527 = vst [vmem:[#allocation8 + $0x5f0] sm:$0xff] %v6217_v38  ;;  %5526 = vst [vmem:[#allocation8 + $0x5e8] sm:$0xff] %v6090_v39  ;;  %v4003_v42 = vpop.f32.mrb[96].mxu0 }
 0x3fe   :  { %5528 = vst [vmem:[#allocation8 + $0x5f8] sm:$0xff] %v6218_v41  ;;  %v6091_v43 = vadd.f32 %v7292_v1, %v4003_v42  ;;  %v4452_v44 = vpop.f32.mrb[96].mxu1  ;;  %v4005_v4 = vpop.f32.mrb[97].mxu0 }
 0x3ff   :  { %v6219_v45 = vadd.f32 %v7296_v2, %v4452_v44  ;;  %v6092_v46 = vadd.f32 %v7298_v3, %v4005_v4  ;;  %v4454_v47 = vpop.f32.mrb[97].mxu1 }
 0x400   :  { %5529 = vst [vmem:[#allocation8 + $0x600] sm:$0xff] %v6091_v43  ;;  %v6220_v48 = vadd.f32 %v7304_v6, %v4454_v47 }
 0x401   :  { %5531 = vst [vmem:[#allocation8 + $0x610] sm:$0xff] %v6219_v45  ;;  %5530 = vst [vmem:[#allocation8 + $0x608] sm:$0xff] %v6092_v46  ;;  %v4009_v49 = vpop.f32.mrb[98].mxu0 }
 0x402   :  { %5532 = vst [vmem:[#allocation8 + $0x618] sm:$0xff] %v6220_v48  ;;  %v6093_v50 = vadd.f32 %v7292_v1, %v4009_v49  ;;  %v4458_v51 = vpop.f32.mrb[98].mxu1  ;;  %v4011_v52 = vpop.f32.mrb[99].mxu0 }
 0x403   :  { %v6221_v53 = vadd.f32 %v7296_v2, %v4458_v51  ;;  %v6094_v54 = vadd.f32 %v7298_v3, %v4011_v52  ;;  %v4460_v55 = vpop.f32.mrb[99].mxu1 }
 0x404   :  { %5533 = vst [vmem:[#allocation8 + $0x620] sm:$0xff] %v6093_v50  ;;  %v6222_v56 = vadd.f32 %v7304_v6, %v4460_v55 }
 0x405   :  { %5535 = vst [vmem:[#allocation8 + $0x630] sm:$0xff] %v6221_v53  ;;  %5534 = vst [vmem:[#allocation8 + $0x628] sm:$0xff] %v6094_v54  ;;  %v4015_v57 = vpop.f32.mrb[100].mxu0 }
 0x406   :  { %5536 = vst [vmem:[#allocation8 + $0x638] sm:$0xff] %v6222_v56  ;;  %v6095_v58 = vadd.f32 %v7292_v1, %v4015_v57  ;;  %v4464_v59 = vpop.f32.mrb[100].mxu1  ;;  %v4017_v60 = vpop.f32.mrb[101].mxu0 }
 0x407   :  { %v6223_v61 = vadd.f32 %v7296_v2, %v4464_v59  ;;  %v6096_v62 = vadd.f32 %v7298_v3, %v4017_v60  ;;  %v4466_v63 = vpop.f32.mrb[101].mxu1 }
 0x408   :  { %5537 = vst [vmem:[#allocation8 + $0x640] sm:$0xff] %v6095_v58  ;;  %v6224_v0 = vadd.f32 %v7304_v6, %v4466_v63 }
 0x409   :  { %5539 = vst [vmem:[#allocation8 + $0x650] sm:$0xff] %v6223_v61  ;;  %5538 = vst [vmem:[#allocation8 + $0x648] sm:$0xff] %v6096_v62  ;;  %v4021_v5 = vpop.f32.mrb[102].mxu0 }
 0x40a   :  { %5540 = vst [vmem:[#allocation8 + $0x658] sm:$0xff] %v6224_v0  ;;  %v6097_v7 = vadd.f32 %v7292_v1, %v4021_v5  ;;  %v4470_v8 = vpop.f32.mrb[102].mxu1  ;;  %v4023_v9 = vpop.f32.mrb[103].mxu0 }
 0x40b   :  { %v6225_v10 = vadd.f32 %v7296_v2, %v4470_v8  ;;  %v6098_v11 = vadd.f32 %v7298_v3, %v4023_v9  ;;  %v4472_v12 = vpop.f32.mrb[103].mxu1 }
 0x40c   :  { %5541 = vst [vmem:[#allocation8 + $0x660] sm:$0xff] %v6097_v7  ;;  %v6226_v13 = vadd.f32 %v7304_v6, %v4472_v12 }
 0x40d   :  { %5543 = vst [vmem:[#allocation8 + $0x670] sm:$0xff] %v6225_v10  ;;  %5542 = vst [vmem:[#allocation8 + $0x668] sm:$0xff] %v6098_v11  ;;  %v4027_v14 = vpop.f32.mrb[104].mxu0 }
 0x40e   :  { %5544 = vst [vmem:[#allocation8 + $0x678] sm:$0xff] %v6226_v13  ;;  %v6099_v15 = vadd.f32 %v7292_v1, %v4027_v14  ;;  %v4476_v16 = vpop.f32.mrb[104].mxu1  ;;  %v4029_v17 = vpop.f32.mrb[105].mxu0 }
 0x40f   :  { %v6227_v18 = vadd.f32 %v7296_v2, %v4476_v16  ;;  %v6100_v19 = vadd.f32 %v7298_v3, %v4029_v17  ;;  %v4478_v20 = vpop.f32.mrb[105].mxu1 }
 0x410   :  { %5545 = vst [vmem:[#allocation8 + $0x680] sm:$0xff] %v6099_v15  ;;  %v6228_v21 = vadd.f32 %v7304_v6, %v4478_v20 }
 0x411   :  { %5547 = vst [vmem:[#allocation8 + $0x690] sm:$0xff] %v6227_v18  ;;  %5546 = vst [vmem:[#allocation8 + $0x688] sm:$0xff] %v6100_v19  ;;  %v4033_v22 = vpop.f32.mrb[106].mxu0 }
 0x412   :  { %5548 = vst [vmem:[#allocation8 + $0x698] sm:$0xff] %v6228_v21  ;;  %v6101_v23 = vadd.f32 %v7292_v1, %v4033_v22  ;;  %v4482_v24 = vpop.f32.mrb[106].mxu1  ;;  %v4035_v25 = vpop.f32.mrb[107].mxu0 }
 0x413   :  { %v6229_v26 = vadd.f32 %v7296_v2, %v4482_v24  ;;  %v6102_v27 = vadd.f32 %v7298_v3, %v4035_v25  ;;  %v4484_v28 = vpop.f32.mrb[107].mxu1 }
 0x414   :  { %5549 = vst [vmem:[#allocation8 + $0x6a0] sm:$0xff] %v6101_v23  ;;  %v6230_v29 = vadd.f32 %v7304_v6, %v4484_v28 }
 0x415   :  { %5551 = vst [vmem:[#allocation8 + $0x6b0] sm:$0xff] %v6229_v26  ;;  %5550 = vst [vmem:[#allocation8 + $0x6a8] sm:$0xff] %v6102_v27  ;;  %v4039_v30 = vpop.f32.mrb[108].mxu0 }
 0x416   :  { %5552 = vst [vmem:[#allocation8 + $0x6b8] sm:$0xff] %v6230_v29  ;;  %v6103_v31 = vadd.f32 %v7292_v1, %v4039_v30  ;;  %v4488_v32 = vpop.f32.mrb[108].mxu1  ;;  %v4041_v33 = vpop.f32.mrb[109].mxu0 }
 0x417   :  { %v6231_v34 = vadd.f32 %v7296_v2, %v4488_v32  ;;  %v6104_v35 = vadd.f32 %v7298_v3, %v4041_v33  ;;  %v4490_v36 = vpop.f32.mrb[109].mxu1 }
 0x418   :  { %5553 = vst [vmem:[#allocation8 + $0x6c0] sm:$0xff] %v6103_v31  ;;  %v6232_v37 = vadd.f32 %v7304_v6, %v4490_v36 }
 0x419   :  { %5555 = vst [vmem:[#allocation8 + $0x6d0] sm:$0xff] %v6231_v34  ;;  %5554 = vst [vmem:[#allocation8 + $0x6c8] sm:$0xff] %v6104_v35  ;;  %v4045_v38 = vpop.f32.mrb[110].mxu0 }
 0x41a   :  { %5556 = vst [vmem:[#allocation8 + $0x6d8] sm:$0xff] %v6232_v37  ;;  %v6105_v39 = vadd.f32 %v7292_v1, %v4045_v38  ;;  %v4494_v40 = vpop.f32.mrb[110].mxu1  ;;  %v4047_v41 = vpop.f32.mrb[111].mxu0 }
 0x41b   :  { %v6233_v42 = vadd.f32 %v7296_v2, %v4494_v40  ;;  %v6106_v43 = vadd.f32 %v7298_v3, %v4047_v41  ;;  %v4496_v44 = vpop.f32.mrb[111].mxu1 }
 0x41c   :  { %5557 = vst [vmem:[#allocation8 + $0x6e0] sm:$0xff] %v6105_v39  ;;  %v6234_v4 = vadd.f32 %v7304_v6, %v4496_v44 }
 0x41d   :  { %5559 = vst [vmem:[#allocation8 + $0x6f0] sm:$0xff] %v6233_v42  ;;  %5558 = vst [vmem:[#allocation8 + $0x6e8] sm:$0xff] %v6106_v43  ;;  %v4051_v45 = vpop.f32.mrb[112].mxu0 }
 0x41e   :  { %5560 = vst [vmem:[#allocation8 + $0x6f8] sm:$0xff] %v6234_v4  ;;  %v6107_v46 = vadd.f32 %v7292_v1, %v4051_v45  ;;  %v4500_v47 = vpop.f32.mrb[112].mxu1  ;;  %v4053_v48 = vpop.f32.mrb[113].mxu0 }
 0x41f   :  { %v6235_v49 = vadd.f32 %v7296_v2, %v4500_v47  ;;  %v6108_v50 = vadd.f32 %v7298_v3, %v4053_v48  ;;  %v4502_v51 = vpop.f32.mrb[113].mxu1 }
 0x420   :  { %5561 = vst [vmem:[#allocation8 + $0x700] sm:$0xff] %v6107_v46  ;;  %v6236_v52 = vadd.f32 %v7304_v6, %v4502_v51 }
 0x421   :  { %5563 = vst [vmem:[#allocation8 + $0x710] sm:$0xff] %v6235_v49  ;;  %5562 = vst [vmem:[#allocation8 + $0x708] sm:$0xff] %v6108_v50  ;;  %v4057_v53 = vpop.f32.mrb[114].mxu0 }
 0x422   :  { %5564 = vst [vmem:[#allocation8 + $0x718] sm:$0xff] %v6236_v52  ;;  %v6109_v54 = vadd.f32 %v7292_v1, %v4057_v53  ;;  %v4506_v55 = vpop.f32.mrb[114].mxu1  ;;  %v4059_v56 = vpop.f32.mrb[115].mxu0 }
 0x423   :  { %v6237_v57 = vadd.f32 %v7296_v2, %v4506_v55  ;;  %v6110_v58 = vadd.f32 %v7298_v3, %v4059_v56  ;;  %v4508_v59 = vpop.f32.mrb[115].mxu1 }
 0x424   :  { %5565 = vst [vmem:[#allocation8 + $0x720] sm:$0xff] %v6109_v54  ;;  %v6238_v60 = vadd.f32 %v7304_v6, %v4508_v59 }
 0x425   :  { %5567 = vst [vmem:[#allocation8 + $0x730] sm:$0xff] %v6237_v57  ;;  %5566 = vst [vmem:[#allocation8 + $0x728] sm:$0xff] %v6110_v58  ;;  %v4063_v61 = vpop.f32.mrb[116].mxu0 }
 0x426   :  { %5568 = vst [vmem:[#allocation8 + $0x738] sm:$0xff] %v6238_v60  ;;  %v6111_v62 = vadd.f32 %v7292_v1, %v4063_v61  ;;  %v4512_v63 = vpop.f32.mrb[116].mxu1  ;;  %v4065_v0 = vpop.f32.mrb[117].mxu0 }
 0x427   :  { %v6239_v5 = vadd.f32 %v7296_v2, %v4512_v63  ;;  %v6112_v7 = vadd.f32 %v7298_v3, %v4065_v0  ;;  %v4514_v8 = vpop.f32.mrb[117].mxu1 }
 0x428   :  { %5569 = vst [vmem:[#allocation8 + $0x740] sm:$0xff] %v6111_v62  ;;  %v6240_v9 = vadd.f32 %v7304_v6, %v4514_v8 }
 0x429   :  { %5571 = vst [vmem:[#allocation8 + $0x750] sm:$0xff] %v6239_v5  ;;  %5570 = vst [vmem:[#allocation8 + $0x748] sm:$0xff] %v6112_v7  ;;  %v4069_v10 = vpop.f32.mrb[118].mxu0 }
 0x42a   :  { %5572 = vst [vmem:[#allocation8 + $0x758] sm:$0xff] %v6240_v9  ;;  %v6113_v11 = vadd.f32 %v7292_v1, %v4069_v10  ;;  %v4518_v12 = vpop.f32.mrb[118].mxu1  ;;  %v4071_v13 = vpop.f32.mrb[119].mxu0 }
 0x42b   :  { %v6241_v14 = vadd.f32 %v7296_v2, %v4518_v12  ;;  %v6114_v15 = vadd.f32 %v7298_v3, %v4071_v13  ;;  %v4520_v16 = vpop.f32.mrb[119].mxu1 }
 0x42c   :  { %5573 = vst [vmem:[#allocation8 + $0x760] sm:$0xff] %v6113_v11  ;;  %v6242_v17 = vadd.f32 %v7304_v6, %v4520_v16 }
 0x42d   :  { %5575 = vst [vmem:[#allocation8 + $0x770] sm:$0xff] %v6241_v14  ;;  %5574 = vst [vmem:[#allocation8 + $0x768] sm:$0xff] %v6114_v15  ;;  %v4075_v18 = vpop.f32.mrb[120].mxu0 }
 0x42e   :  { %5576 = vst [vmem:[#allocation8 + $0x778] sm:$0xff] %v6242_v17  ;;  %v6115_v19 = vadd.f32 %v7292_v1, %v4075_v18  ;;  %v4524_v20 = vpop.f32.mrb[120].mxu1  ;;  %v4077_v21 = vpop.f32.mrb[121].mxu0 }
 0x42f   :  { %v6243_v22 = vadd.f32 %v7296_v2, %v4524_v20  ;;  %v6116_v23 = vadd.f32 %v7298_v3, %v4077_v21  ;;  %v4526_v24 = vpop.f32.mrb[121].mxu1 }
 0x430   :  { %5577 = vst [vmem:[#allocation8 + $0x780] sm:$0xff] %v6115_v19  ;;  %v6244_v25 = vadd.f32 %v7304_v6, %v4526_v24 }
 0x431   :  { %5579 = vst [vmem:[#allocation8 + $0x790] sm:$0xff] %v6243_v22  ;;  %5578 = vst [vmem:[#allocation8 + $0x788] sm:$0xff] %v6116_v23  ;;  %v4081_v26 = vpop.f32.mrb[122].mxu0 }
 0x432   :  { %5580 = vst [vmem:[#allocation8 + $0x798] sm:$0xff] %v6244_v25  ;;  %v6117_v27 = vadd.f32 %v7292_v1, %v4081_v26  ;;  %v4530_v28 = vpop.f32.mrb[122].mxu1  ;;  %v4083_v29 = vpop.f32.mrb[123].mxu0 }
 0x433   :  { %v6245_v30 = vadd.f32 %v7296_v2, %v4530_v28  ;;  %v6118_v31 = vadd.f32 %v7298_v3, %v4083_v29  ;;  %v4532_v32 = vpop.f32.mrb[123].mxu1 }
 0x434   :  { %5581 = vst [vmem:[#allocation8 + $0x7a0] sm:$0xff] %v6117_v27  ;;  %v6246_v33 = vadd.f32 %v7304_v6, %v4532_v32 }
 0x435   :  { %5583 = vst [vmem:[#allocation8 + $0x7b0] sm:$0xff] %v6245_v30  ;;  %5582 = vst [vmem:[#allocation8 + $0x7a8] sm:$0xff] %v6118_v31  ;;  %v4087_v34 = vpop.f32.mrb[124].mxu0 }
 0x436   :  { %5584 = vst [vmem:[#allocation8 + $0x7b8] sm:$0xff] %v6246_v33  ;;  %v6119_v35 = vadd.f32 %v7292_v1, %v4087_v34  ;;  %v4536_v36 = vpop.f32.mrb[124].mxu1  ;;  %v4089_v37 = vpop.f32.mrb[125].mxu0 }
 0x437   :  { %v6247_v38 = vadd.f32 %v7296_v2, %v4536_v36  ;;  %v6120_v39 = vadd.f32 %v7298_v3, %v4089_v37  ;;  %v4538_v40 = vpop.f32.mrb[125].mxu1 }
 0x438   :  { %5585 = vst [vmem:[#allocation8 + $0x7c0] sm:$0xff] %v6119_v35  ;;  %v6248_v41 = vadd.f32 %v7304_v6, %v4538_v40 }
 0x439   :  { %5587 = vst [vmem:[#allocation8 + $0x7d0] sm:$0xff] %v6247_v38  ;;  %5586 = vst [vmem:[#allocation8 + $0x7c8] sm:$0xff] %v6120_v39  ;;  %v4093_v42 = vpop.f32.mrb[126].mxu0 }
 0x43a   :  { %5588 = vst [vmem:[#allocation8 + $0x7d8] sm:$0xff] %v6248_v41  ;;  %v6121_v43 = vadd.f32 %v7292_v1, %v4093_v42  ;;  %v4542_v44 = vpop.f32.mrb[126].mxu1  ;;  %v4095_v4 = vpop.f32.mrb[127].mxu0 }
 0x43b   :  { %v6249_v45 = vadd.f32 %v7296_v2, %v4542_v44  ;;  %v6122_v46 = vadd.f32 %v7298_v3, %v4095_v4  ;;  %v4544_v47 = vpop.f32.mrb[127].mxu1 }
 0x43c   :  { %5589 = vst [vmem:[#allocation8 + $0x7e0] sm:$0xff] %v6121_v43  ;;  %v6250_v48 = vadd.f32 %v7304_v6, %v4544_v47 }
 0x43d   :  { %5591 = vst [vmem:[#allocation8 + $0x7f0] sm:$0xff] %v6249_v45  ;;  %5590 = vst [vmem:[#allocation8 + $0x7e8] sm:$0xff] %v6122_v46 }
 0x43e   :  { %5592 = vst [vmem:[#allocation8 + $0x7f8] sm:$0xff] %v6250_v48 }
 0x43f   :  { %6824 = shalt.err (!%p6821_p6)
}
 0x440   :  { %s6825_s27 = scalar_lea.hbm %s7654_s5, 32768 }
 0x441   :  { %p6826_p7 = scmp.ne.s32.totalorder %s7654_s5, %s6825_s27  ;;  %p6829_p8 = scmp.lt.u32.totalorder %s6825_s27, %s7654_s5 }
 0x443   :  { %p6831_p9 = pnand %p6829_p8, %p6826_p7 }
 0x445   :  { %6834 = shalt.err (!%p6831_p9)
}
 0x446   :  { %5604 = dma.vmem_to_hbm [thread:$0]  %s5599_s24, 32768, %s7654_s5, [#allocation5], %s6842_s28, %s6842_s28, %s6843_s29  }
 0x447   :  { %6839 = dma.done.wait [#allocation5], 32768  }
 0x448   :  { %6840 = vsyncadd [#allocation5], 4294934528 }
 0x449   :  { %5608 = vsyncpa [#allocation4], 1 }
 0x44a   :  { %5609 = vsyncpa [#allocation7], 1 }
 0x44b   :  { %5610 = vsyncpa [#allocation5], 1 }

</bundles_post_ra>
